<compile_context>
chip_gen: v7x
topology: tpu7x:2x2x1
jax: 0.10.0
libtpu: 0.0.40
codegen_flags: <defaults>
</compile_context>

<pallas_src>
import jax
import jax.numpy as jnp
from jax import lax
from jax.experimental import pallas as pl
from jax.experimental.pallas import tpu as pltpu

# ----------------------------------------------------------------------------
# Config (mirrors the PyTorch module's `config` dict at small synthetic scale)
# ----------------------------------------------------------------------------
CONFIG = dict(
    activation="tanh",            # -> torch.nn.Tanh for both act_s / act_e
    hidden_size=32,
    dataset_highest_number=10,    # ff_e out = 30, ff_s out = 40
    num_layers=6,                 # hidden_states has 7 entries: emb + 6 layers
    ffn_size=128,
    max_seq=8,
    vocab_size=3 + 10,            # [CLS],[SEP],[PAD] + digit tokens 0..Hmax-1
)
# TODO(synk): real BERT is multi-head; this synthetic stand-in uses single-head
# attention (checkpoint weights are not reproducible in-script anyway).

H = CONFIG["hidden_size"]
F = CONFIG["ffn_size"]
S = CONFIG["max_seq"]
N_REAL = 6                        # CLS + 4 number tokens + SEP (rest is PAD)
L_USED = 5                        # hidden_states[5] needs 5 layers; layer 6 and
                                  # the classification head are dead code w.r.t.
                                  # the module's returned (pooler_output, e).
SMALL_W = max(128, F)             # lane width of the packed small-param slab
HEAD_PAD = 128                    # lane-dense head output width (40 + 30 -> 128)

# rows of the packed (L, 10, SMALL_W) small-param slab
_BQ, _BK, _BV, _BO, _LN1G, _LN1B, _B1, _B2, _LN2G, _LN2B = range(10)


def _act(x):
    if CONFIG["activation"] == "tanh":
        return jnp.tanh(x)
    return jnp.where(x >= 0, x, 0.01 * x)  # LeakyReLU(0.01)


# ----------------------------------------------------------------------------
# Fused Pallas kernel: 5 encoder layers + both output heads, one batch element
# per grid step (grid=(B,), "parallel" so v7x shards batch across its 2 TCs).
# ----------------------------------------------------------------------------
def fused_bert_heads_kernel(x_ref, w_attn_ref, w_ff1_ref, w_ff2_ref,
                            small_ref, w_heads_ref, b_heads_ref, out_ref):
    S_ = x_ref.shape[1]
    H_ = x_ref.shape[2]
    F_ = w_ff1_ref.shape[2]

    x = x_ref[0]                                             # (S, H)

    # attention mask: PAD positions (>= N_REAL) do not participate
    col = lax.broadcasted_iota(jnp.int32, (S_, S_), 1)
    attn_mask = col < N_REAL
    scale = 1.0 / jnp.sqrt(jnp.float32(H_))

    def layernorm(h, g, b):
        mu = jnp.mean(h, axis=-1, keepdims=True)
        var = jnp.mean((h - mu) ** 2, axis=-1, keepdims=True)
        return (h - mu) * lax.rsqrt(var + 1e-12) * g + b

    cls4 = x[0:1, :]
    cls5 = x[0:1, :]

    for l in range(L_USED):                                  # fully unrolled
        w_attn = w_attn_ref[l]                               # (4, H, H): q,k,v,o
        small = small_ref[l]                                 # (10, SMALL_W)

        def b_of(i):
            return small[i:i + 1, 0:H_]                      # (1, H)

        # --- self attention (single head) ---
        q = jnp.dot(x, w_attn[0], preferred_element_type=jnp.float32) + b_of(_BQ)
        k = jnp.dot(x, w_attn[1], preferred_element_type=jnp.float32) + b_of(_BK)
        v = jnp.dot(x, w_attn[2], preferred_element_type=jnp.float32) + b_of(_BV)
        # contract hidden dims: (S,H) x (S,H) -> (S,S), no explicit transpose
        scores = lax.dot_general(q, k, (((1,), (1,)), ((), ())),
                                 preferred_element_type=jnp.float32) * scale
        scores = jnp.where(attn_mask, scores, jnp.float32(-1e9))
        scores = scores - jnp.max(scores, axis=-1, keepdims=True)
        p = jnp.exp(scores)
        attn = p * pl.reciprocal(jnp.sum(p, axis=-1, keepdims=True), approx=True)
        ctx = jnp.dot(attn, v, preferred_element_type=jnp.float32)
        attn_out = jnp.dot(ctx, w_attn[3],
                           preferred_element_type=jnp.float32) + b_of(_BO)
        h1 = layernorm(x + attn_out, b_of(_LN1G), b_of(_LN1B))

        # --- feed forward ---
        ff = jnp.dot(h1, w_ff1_ref[l],
                     preferred_element_type=jnp.float32) + small[_B1:_B1 + 1, 0:F_]
        # TODO(synk): HF BERT's default 'gelu' is the exact erf form; tanh
        # approximation used here for guaranteed Mosaic lowering.
        ff = jax.nn.gelu(ff, approximate=True)
        ff = jnp.dot(ff, w_ff2_ref[l],
                     preferred_element_type=jnp.float32) + b_of(_B2)
        x = layernorm(h1 + ff, b_of(_LN2G), b_of(_LN2B))

        if l == 3:                                           # hidden_states[4]
            cls4 = x[0:1, :]
        if l == 4:                                           # hidden_states[5]
            cls5 = x[0:1, :]

    # --- fused heads: row 0 -> ff_s(cls_5), row 1 -> ff_e(cls_4) ---
    head_in = jnp.concatenate([cls5, cls4], axis=0)          # (2, H)
    logits = jnp.dot(head_in, w_heads_ref[...],
                     preferred_element_type=jnp.float32) + b_heads_ref[...]
    out_ref[0] = _act(logits)                                # lane-dense (2, 128)


# ----------------------------------------------------------------------------
# Wrappers: stack / pack parameters and launch the single fused pallas_call
# ----------------------------------------------------------------------------
def _pad_lanes(v, width):
    return jnp.pad(v, ((0, 0), (0, width - v.shape[1])))


def stack_layer_params(layers):
    """Stack per-layer weights along a leading L axis; pack tiny params."""
    w_attn = jnp.stack([jnp.stack([l["wq"], l["wk"], l["wv"], l["wo"]])
                        for l in layers])                    # (L, 4, H, H)
    w_ff1 = jnp.stack([l["w1"] for l in layers])             # (L, H, F)
    w_ff2 = jnp.stack([l["w2"] for l in layers])             # (L, F, H)
    rows = []
    for l in layers:
        rows.append(jnp.concatenate([
            _pad_lanes(l["bq"], SMALL_W), _pad_lanes(l["bk"], SMALL_W),
            _pad_lanes(l["bv"], SMALL_W), _pad_lanes(l["bo"], SMALL_W),
            _pad_lanes(l["ln1_g"], SMALL_W), _pad_lanes(l["ln1_b"], SMALL_W),
            _pad_lanes(l["b1"], SMALL_W), _pad_lanes(l["b2"], SMALL_W),
            _pad_lanes(l["ln2_g"], SMALL_W), _pad_lanes(l["ln2_b"], SMALL_W),
        ], axis=0))
    small = jnp.stack(rows)                                  # (L, 10, SMALL_W)
    return w_attn, w_ff1, w_ff2, small


def pack_head_params(params):
    """Concatenate ff_s / ff_e into one lane-dense (H, 128) weight + bias."""
    Hmax = CONFIG["dataset_highest_number"]
    Ds, De = 4 * Hmax, 3 * Hmax
    w = jnp.zeros((H, HEAD_PAD), jnp.float32)
    w = w.at[:, :Ds].set(params["ff_s_w"]).at[:, Ds:Ds + De].set(params["ff_e_w"])
    b = jnp.zeros((1, HEAD_PAD), jnp.float32)
    b = b.at[:, :Ds].set(params["ff_s_b"]).at[:, Ds:Ds + De].set(params["ff_e_b"])
    return w, b


def fused_forward(h, w_attn, w_ff1, w_ff2, small, w_heads, b_heads):
    B, S_, H_ = h.shape
    L = w_attn.shape[0]
    return pl.pallas_call(
        fused_bert_heads_kernel,
        grid=(B,),
        in_specs=[
            pl.BlockSpec((1, S_, H_), lambda b: (b, 0, 0)),          # x (per-batch)
            pl.BlockSpec((L, 4, H_, H_), lambda b: (0, 0, 0, 0)),    # q/k/v/o weights
            pl.BlockSpec((L, H_, F), lambda b: (0, 0, 0)),           # ffn up
            pl.BlockSpec((L, F, H_), lambda b: (0, 0, 0)),           # ffn down
            pl.BlockSpec((L, 10, SMALL_W), lambda b: (0, 0, 0)),     # packed biases/LN
            pl.BlockSpec((H_, HEAD_PAD), lambda b: (0, 0)),          # fused head weight
            pl.BlockSpec((1, HEAD_PAD), lambda b: (0, 0)),           # fused head bias
        ],
        out_specs=pl.BlockSpec((1, 2, HEAD_PAD), lambda b: (b, 0, 0)),
        out_shape=jax.ShapeDtypeStruct((B, 2, HEAD_PAD), jnp.float32),
        compiler_params=pltpu.CompilerParams(
            dimension_semantics=("parallel",),
            vmem_limit_bytes=8 * 1024 * 1024),
    )(h, w_attn, w_ff1, w_ff2, small, w_heads, b_heads)


# ----------------------------------------------------------------------------
# Parameter init (deterministic, synthetic)
# ----------------------------------------------------------------------------
def init_params(key):
    cfg = CONFIG
    V = cfg["vocab_size"]
    Hmax = cfg["dataset_highest_number"]
    keys = iter(jax.random.split(key, 128))

    def w(shape):
        return (0.02 * jax.random.normal(next(keys), shape)).astype(jnp.float32)

    params = dict(
        word_emb=w((V, H)),
        pos_emb=w((S, H)),
        emb_ln_g=jnp.ones((H,), jnp.float32),
        emb_ln_b=jnp.zeros((H,), jnp.float32),
        ff_s_w=w((H, 4 * Hmax)), ff_s_b=w((1, 4 * Hmax)),
        ff_e_w=w((H, 3 * Hmax)), ff_e_b=w((1, 3 * Hmax)),
        layers=[],
    )
    for _ in range(cfg["num_layers"]):
        params["layers"].append(dict(
            wq=w((H, H)), bq=w((1, H)),
            wk=w((H, H)), bk=w((1, H)),
            wv=w((H, H)), bv=w((1, H)),
            wo=w((H, H)), bo=w((1, H)),
            ln1_g=jnp.ones((1, H), jnp.float32), ln1_b=jnp.zeros((1, H), jnp.float32),
            w1=w((H, F)), b1=w((1, F)),
            w2=w((F, H)), b2=w((1, H)),
            ln2_g=jnp.ones((1, H), jnp.float32), ln2_b=jnp.zeros((1, H), jnp.float32),
        ))
    return params


# ----------------------------------------------------------------------------
# Forward pass (mirrors TransformerArithmetic.forward)
# ----------------------------------------------------------------------------
def transformer_arithmetic_forward(input_nums, params):
    cfg = CONFIG
    B = input_nums.shape[0]
    Hmax = cfg["dataset_highest_number"]
    Ds, De = 4 * Hmax, 3 * Hmax

    # "tokenizer": '{a} {b} {c} {d}' -> [CLS, t_a, t_b, t_c, t_d, SEP, PAD, PAD]
    cls_tok = jnp.zeros((B, 1), jnp.int32)
    sep_tok = jnp.ones((B, 1), jnp.int32)
    pad_tok = jnp.full((B, S - N_REAL), 2, jnp.int32)
    ids = jnp.concatenate(
        [cls_tok, input_nums.astype(jnp.int32) + 3, sep_tok, pad_tok], axis=1)

    # embeddings + layernorm (glue, plain JAX)
    h = params["word_emb"][ids] + params["pos_emb"][None, :, :]
    mu = h.mean(-1, keepdims=True)
    var = ((h - mu) ** 2).mean(-1, keepdims=True)
    h = (h - mu) * lax.rsqrt(var + 1e-12) * params["emb_ln_g"] + params["emb_ln_b"]
    h = h.astype(jnp.float32)

    # stack / pack weights (layer 6 + classification head are unused by the
    # module's return value, so only the first L_USED layers enter the kernel)
    w_attn, w_ff1, w_ff2, small = stack_layer_params(params["layers"][:L_USED])
    w_heads, b_heads = pack_head_params(params)

    heads_out = fused_forward(h, w_attn, w_ff1, w_ff2, small, w_heads, b_heads)
    pooler_output = heads_out[:, 0, :Ds]        # act_s(ff_s(hidden_states[5][:,0]))
    e = heads_out[:, 1, Ds:Ds + De]             # act_e(ff_e(hidden_states[4][:,0]))
    return pooler_output, e


if __name__ == "__main__":
    key = jax.random.PRNGKey(0)
    k_params, k_input = jax.random.split(key)
    params = init_params(k_params)

    B = 2
    # input: (B, 4) arithmetic operands, like the tensor rows formatted into sentences
    input_nums = jax.random.randint(
        k_input, (B, 4), 0, CONFIG["dataset_highest_number"], dtype=jnp.int32)

    pooler_output, e = transformer_arithmetic_forward(input_nums, params)
    jax.block_until_ready((pooler_output, e))

    assert pooler_output.shape == (B, 4 * CONFIG["dataset_highest_number"])
    assert e.shape == (B, 3 * CONFIG["dataset_highest_number"])
    print("KERNEL_OK")
</pallas_src>

<mosaic_0001>
module attributes {stable_mosaic.version = 11 : i64} {
  func.func @fused_bert_heads_kernel(%arg0: i32, %arg1: memref<1x8x32xf32, #tpu.memory_space<vmem>>, %arg2: memref<5x4x32x32xf32, #tpu.memory_space<vmem>>, %arg3: memref<5x32x128xf32, #tpu.memory_space<vmem>>, %arg4: memref<5x128x32xf32, #tpu.memory_space<vmem>>, %arg5: memref<5x10x128xf32, #tpu.memory_space<vmem>>, %arg6: memref<32x128xf32, #tpu.memory_space<vmem>>, %arg7: memref<1x128xf32, #tpu.memory_space<vmem>>, %arg8: memref<1x2x128xf32, #tpu.memory_space<vmem>>) attributes {dimension_semantics = [#tpu.dimension_semantics<parallel>], iteration_bounds = array<i64: 2>, scalar_prefetch = 0 : i64, scratch_operands = 0 : i64, tpu.core_type = #tpu.core_type<tc>, window_params = [{transform_indices = @transform_0, window_bounds = array<i64: 1, 8, 32>}, {pipeline_mode = #tpu.pipeline_mode<synchronous>, transform_indices = @transform_1, window_bounds = array<i64: 5, 4, 32, 32>}, {pipeline_mode = #tpu.pipeline_mode<synchronous>, transform_indices = @transform_2, window_bounds = array<i64: 5, 32, 128>}, {pipeline_mode = #tpu.pipeline_mode<synchronous>, transform_indices = @transform_3, window_bounds = array<i64: 5, 128, 32>}, {pipeline_mode = #tpu.pipeline_mode<synchronous>, transform_indices = @transform_4, window_bounds = array<i64: 5, 10, 128>}, {pipeline_mode = #tpu.pipeline_mode<synchronous>, transform_indices = @transform_5, window_bounds = array<i64: 32, 128>}, {pipeline_mode = #tpu.pipeline_mode<synchronous>, transform_indices = @transform_6, window_bounds = array<i64: 1, 128>}, {transform_indices = @transform_7, window_bounds = array<i64: 1, 2, 128>}]} {
    %c0 = arith.constant 0 : index
    %c0_0 = arith.constant 0 : index
    %c0_1 = arith.constant 0 : index
    %0 = vector.load %arg1[%c0, %c0_0, %c0_1] : memref<1x8x32xf32, #tpu.memory_space<vmem>>, vector<1x8x32xf32>
    %1 = vector.shape_cast %0 : vector<1x8x32xf32> to vector<8x32xf32>
    %2 = tpu.iota {dimensions = array<i32: 1>} : vector<8x8xi32>
    %c6_i32 = arith.constant 6 : i32
    %3 = vector.broadcast %c6_i32 : i32 to vector<8x8xi32>
    %4 = arith.cmpi slt, %2, %3 : vector<8x8xi32>
    %cst = arith.constant 3.200000e+01 : f32
    %5 = math.sqrt %cst : f32
    %cst_2 = arith.constant 1.000000e+00 : f32
    %6 = arith.divf %cst_2, %5 : f32
    %c0_3 = arith.constant 0 : index
    %c0_4 = arith.constant 0 : index
    %c0_5 = arith.constant 0 : index
    %c0_6 = arith.constant 0 : index
    %7 = vector.load %arg2[%c0_3, %c0_4, %c0_5, %c0_6] : memref<5x4x32x32xf32, #tpu.memory_space<vmem>>, vector<1x4x32x32xf32>
    %8 = vector.shape_cast %7 : vector<1x4x32x32xf32> to vector<4x32x32xf32>
    %c0_7 = arith.constant 0 : index
    %c0_8 = arith.constant 0 : index
    %c0_9 = arith.constant 0 : index
    %9 = vector.load %arg5[%c0_7, %c0_8, %c0_9] : memref<5x10x128xf32, #tpu.memory_space<vmem>>, vector<1x10x128xf32>
    %10 = vector.shape_cast %9 : vector<1x10x128xf32> to vector<10x128xf32>
    %11 = vector.extract_strided_slice %8 {offsets = [0, 0, 0], sizes = [1, 32, 32], strides = [1, 1, 1]} : vector<4x32x32xf32> to vector<1x32x32xf32>
    %12 = vector.shape_cast %11 : vector<1x32x32xf32> to vector<32x32xf32>
    %cst_10 = arith.constant dense<0.000000e+00> : vector<8x32xf32>
    %13 = tpu.matmul %1, %12, %cst_10 {dimension_numbers = #tpu.dot_dimension_numbers<[1], [0], [0], [1], [0, 0, 1, 1], [], []>} : vector<8x32xf32>, vector<32x32xf32>, vector<8x32xf32> -> vector<8x32xf32>
    %14 = vector.extract_strided_slice %10 {offsets = [0, 0], sizes = [1, 32], strides = [1, 1]} : vector<10x128xf32> to vector<1x32xf32>
    %15 = vector.broadcast %14 : vector<1x32xf32> to vector<8x32xf32>
    %16 = arith.addf %13, %15 : vector<8x32xf32>
    %17 = vector.extract_strided_slice %8 {offsets = [1, 0, 0], sizes = [1, 32, 32], strides = [1, 1, 1]} : vector<4x32x32xf32> to vector<1x32x32xf32>
    %18 = vector.shape_cast %17 : vector<1x32x32xf32> to vector<32x32xf32>
    %cst_11 = arith.constant dense<0.000000e+00> : vector<8x32xf32>
    %19 = tpu.matmul %1, %18, %cst_11 {dimension_numbers = #tpu.dot_dimension_numbers<[1], [0], [0], [1], [0, 0, 1, 1], [], []>} : vector<8x32xf32>, vector<32x32xf32>, vector<8x32xf32> -> vector<8x32xf32>
    %20 = vector.extract_strided_slice %10 {offsets = [1, 0], sizes = [1, 32], strides = [1, 1]} : vector<10x128xf32> to vector<1x32xf32>
    %21 = vector.broadcast %20 : vector<1x32xf32> to vector<8x32xf32>
    %22 = arith.addf %19, %21 : vector<8x32xf32>
    %23 = vector.extract_strided_slice %8 {offsets = [2, 0, 0], sizes = [1, 32, 32], strides = [1, 1, 1]} : vector<4x32x32xf32> to vector<1x32x32xf32>
    %24 = vector.shape_cast %23 : vector<1x32x32xf32> to vector<32x32xf32>
    %cst_12 = arith.constant dense<0.000000e+00> : vector<8x32xf32>
    %25 = tpu.matmul %1, %24, %cst_12 {dimension_numbers = #tpu.dot_dimension_numbers<[1], [0], [0], [1], [0, 0, 1, 1], [], []>} : vector<8x32xf32>, vector<32x32xf32>, vector<8x32xf32> -> vector<8x32xf32>
    %26 = vector.extract_strided_slice %10 {offsets = [2, 0], sizes = [1, 32], strides = [1, 1]} : vector<10x128xf32> to vector<1x32xf32>
    %27 = vector.broadcast %26 : vector<1x32xf32> to vector<8x32xf32>
    %28 = arith.addf %25, %27 : vector<8x32xf32>
    %cst_13 = arith.constant dense<0.000000e+00> : vector<8x8xf32>
    %29 = tpu.matmul %16, %22, %cst_13 {dimension_numbers = #tpu.dot_dimension_numbers<[1], [1], [0], [0], [0, 0, 1, 0], [], []>} : vector<8x32xf32>, vector<8x32xf32>, vector<8x8xf32> -> vector<8x8xf32>
    %30 = vector.broadcast %6 : f32 to vector<8x8xf32>
    %31 = arith.mulf %29, %30 : vector<8x8xf32>
    %cst_14 = arith.constant -1.000000e+09 : f32
    %32 = vector.broadcast %cst_14 : f32 to vector<8x8xf32>
    %33 = arith.select %4, %31, %32 : vector<8x8xi1>, vector<8x8xf32>
    %cst_15 = arith.constant dense<0xFF800000> : vector<8xf32>
    %34 = vector.multi_reduction <maximumf>, %33, %cst_15 [1] : vector<8x8xf32> to vector<8xf32>
    %35 = vector.shape_cast %34 : vector<8xf32> to vector<8x1xf32>
    %36 = vector.broadcast %35 : vector<8x1xf32> to vector<8x8xf32>
    %37 = arith.subf %33, %36 : vector<8x8xf32>
    %38 = math.exp %37 : vector<8x8xf32>
    %cst_16 = arith.constant dense<0.000000e+00> : vector<8xf32>
    %39 = vector.multi_reduction <add>, %38, %cst_16 [1] : vector<8x8xf32> to vector<8xf32>
    %40 = vector.shape_cast %39 : vector<8xf32> to vector<8x1xf32>
    %41 = tpu.reciprocal %40 {approx = true} : vector<8x1xf32> -> vector<8x1xf32>
    %42 = vector.broadcast %41 : vector<8x1xf32> to vector<8x8xf32>
    %43 = arith.mulf %38, %42 : vector<8x8xf32>
    %cst_17 = arith.constant dense<0.000000e+00> : vector<8x32xf32>
    %44 = tpu.matmul %43, %28, %cst_17 {dimension_numbers = #tpu.dot_dimension_numbers<[1], [0], [0], [1], [0, 0, 1, 1], [], []>} : vector<8x8xf32>, vector<8x32xf32>, vector<8x32xf32> -> vector<8x32xf32>
    %45 = vector.extract_strided_slice %8 {offsets = [3, 0, 0], sizes = [1, 32, 32], strides = [1, 1, 1]} : vector<4x32x32xf32> to vector<1x32x32xf32>
    %46 = vector.shape_cast %45 : vector<1x32x32xf32> to vector<32x32xf32>
    %cst_18 = arith.constant dense<0.000000e+00> : vector<8x32xf32>
    %47 = tpu.matmul %44, %46, %cst_18 {dimension_numbers = #tpu.dot_dimension_numbers<[1], [0], [0], [1], [0, 0, 1, 1], [], []>} : vector<8x32xf32>, vector<32x32xf32>, vector<8x32xf32> -> vector<8x32xf32>
    %48 = vector.extract_strided_slice %10 {offsets = [3, 0], sizes = [1, 32], strides = [1, 1]} : vector<10x128xf32> to vector<1x32xf32>
    %49 = vector.broadcast %48 : vector<1x32xf32> to vector<8x32xf32>
    %50 = arith.addf %47, %49 : vector<8x32xf32>
    %51 = arith.addf %1, %50 : vector<8x32xf32>
    %52 = vector.extract_strided_slice %10 {offsets = [4, 0], sizes = [1, 32], strides = [1, 1]} : vector<10x128xf32> to vector<1x32xf32>
    %53 = vector.extract_strided_slice %10 {offsets = [5, 0], sizes = [1, 32], strides = [1, 1]} : vector<10x128xf32> to vector<1x32xf32>
    %cst_19 = arith.constant dense<0.000000e+00> : vector<8xf32>
    %54 = vector.multi_reduction <add>, %51, %cst_19 [1] : vector<8x32xf32> to vector<8xf32>
    %55 = vector.shape_cast %54 : vector<8xf32> to vector<8x1xf32>
    %cst_20 = arith.constant 3.200000e+01 : f32
    %56 = vector.broadcast %cst_20 : f32 to vector<8x1xf32>
    %57 = arith.divf %55, %56 : vector<8x1xf32>
    %58 = vector.broadcast %57 : vector<8x1xf32> to vector<8x32xf32>
    %59 = arith.subf %51, %58 : vector<8x32xf32>
    %60 = arith.mulf %59, %59 : vector<8x32xf32>
    %cst_21 = arith.constant dense<0.000000e+00> : vector<8xf32>
    %61 = vector.multi_reduction <add>, %60, %cst_21 [1] : vector<8x32xf32> to vector<8xf32>
    %62 = vector.shape_cast %61 : vector<8xf32> to vector<8x1xf32>
    %cst_22 = arith.constant 3.200000e+01 : f32
    %63 = vector.broadcast %cst_22 : f32 to vector<8x1xf32>
    %64 = arith.divf %62, %63 : vector<8x1xf32>
    %65 = vector.broadcast %57 : vector<8x1xf32> to vector<8x32xf32>
    %66 = arith.subf %51, %65 : vector<8x32xf32>
    %cst_23 = arith.constant 9.99999996E-13 : f32
    %67 = vector.broadcast %cst_23 : f32 to vector<8x1xf32>
    %68 = arith.addf %64, %67 : vector<8x1xf32>
    %69 = math.rsqrt %68 : vector<8x1xf32>
    %70 = vector.broadcast %69 : vector<8x1xf32> to vector<8x32xf32>
    %71 = arith.mulf %66, %70 : vector<8x32xf32>
    %72 = vector.broadcast %52 : vector<1x32xf32> to vector<8x32xf32>
    %73 = arith.mulf %71, %72 : vector<8x32xf32>
    %74 = vector.broadcast %53 : vector<1x32xf32> to vector<8x32xf32>
    %75 = arith.addf %73, %74 : vector<8x32xf32>
    %c0_24 = arith.constant 0 : index
    %c0_25 = arith.constant 0 : index
    %c0_26 = arith.constant 0 : index
    %76 = vector.load %arg3[%c0_24, %c0_25, %c0_26] : memref<5x32x128xf32, #tpu.memory_space<vmem>>, vector<1x32x128xf32>
    %77 = vector.shape_cast %76 : vector<1x32x128xf32> to vector<32x128xf32>
    %cst_27 = arith.constant dense<0.000000e+00> : vector<8x128xf32>
    %78 = tpu.matmul %75, %77, %cst_27 {dimension_numbers = #tpu.dot_dimension_numbers<[1], [0], [0], [1], [0, 0, 1, 1], [], []>} : vector<8x32xf32>, vector<32x128xf32>, vector<8x128xf32> -> vector<8x128xf32>
    %79 = vector.extract_strided_slice %10 {offsets = [6, 0], sizes = [1, 128], strides = [1, 1]} : vector<10x128xf32> to vector<1x128xf32>
    %80 = vector.broadcast %79 : vector<1x128xf32> to vector<8x128xf32>
    %81 = arith.addf %78, %80 : vector<8x128xf32>
    %82 = arith.mulf %81, %81 : vector<8x128xf32>
    %83 = arith.mulf %81, %82 : vector<8x128xf32>
    %cst_28 = arith.constant 4.471500e-02 : f32
    %84 = vector.broadcast %cst_28 : f32 to vector<8x128xf32>
    %85 = arith.mulf %84, %83 : vector<8x128xf32>
    %86 = arith.addf %81, %85 : vector<8x128xf32>
    %cst_29 = arith.constant 0.797884583 : f32
    %87 = vector.broadcast %cst_29 : f32 to vector<8x128xf32>
    %88 = arith.mulf %87, %86 : vector<8x128xf32>
    %89 = math.tanh %88 : vector<8x128xf32>
    %cst_30 = arith.constant 1.000000e+00 : f32
    %90 = vector.broadcast %cst_30 : f32 to vector<8x128xf32>
    %91 = arith.addf %90, %89 : vector<8x128xf32>
    %cst_31 = arith.constant 5.000000e-01 : f32
    %92 = vector.broadcast %cst_31 : f32 to vector<8x128xf32>
    %93 = arith.mulf %92, %91 : vector<8x128xf32>
    %94 = arith.mulf %81, %93 : vector<8x128xf32>
    %c0_32 = arith.constant 0 : index
    %c0_33 = arith.constant 0 : index
    %c0_34 = arith.constant 0 : index
    %95 = vector.load %arg4[%c0_32, %c0_33, %c0_34] : memref<5x128x32xf32, #tpu.memory_space<vmem>>, vector<1x128x32xf32>
    %96 = vector.shape_cast %95 : vector<1x128x32xf32> to vector<128x32xf32>
    %cst_35 = arith.constant dense<0.000000e+00> : vector<8x32xf32>
    %97 = tpu.matmul %94, %96, %cst_35 {dimension_numbers = #tpu.dot_dimension_numbers<[1], [0], [0], [1], [0, 0, 1, 1], [], []>} : vector<8x128xf32>, vector<128x32xf32>, vector<8x32xf32> -> vector<8x32xf32>
    %98 = vector.extract_strided_slice %10 {offsets = [7, 0], sizes = [1, 32], strides = [1, 1]} : vector<10x128xf32> to vector<1x32xf32>
    %99 = vector.broadcast %98 : vector<1x32xf32> to vector<8x32xf32>
    %100 = arith.addf %97, %99 : vector<8x32xf32>
    %101 = arith.addf %75, %100 : vector<8x32xf32>
    %102 = vector.extract_strided_slice %10 {offsets = [8, 0], sizes = [1, 32], strides = [1, 1]} : vector<10x128xf32> to vector<1x32xf32>
    %103 = vector.extract_strided_slice %10 {offsets = [9, 0], sizes = [1, 32], strides = [1, 1]} : vector<10x128xf32> to vector<1x32xf32>
    %cst_36 = arith.constant dense<0.000000e+00> : vector<8xf32>
    %104 = vector.multi_reduction <add>, %101, %cst_36 [1] : vector<8x32xf32> to vector<8xf32>
    %105 = vector.shape_cast %104 : vector<8xf32> to vector<8x1xf32>
    %cst_37 = arith.constant 3.200000e+01 : f32
    %106 = vector.broadcast %cst_37 : f32 to vector<8x1xf32>
    %107 = arith.divf %105, %106 : vector<8x1xf32>
    %108 = vector.broadcast %107 : vector<8x1xf32> to vector<8x32xf32>
    %109 = arith.subf %101, %108 : vector<8x32xf32>
    %110 = arith.mulf %109, %109 : vector<8x32xf32>
    %cst_38 = arith.constant dense<0.000000e+00> : vector<8xf32>
    %111 = vector.multi_reduction <add>, %110, %cst_38 [1] : vector<8x32xf32> to vector<8xf32>
    %112 = vector.shape_cast %111 : vector<8xf32> to vector<8x1xf32>
    %cst_39 = arith.constant 3.200000e+01 : f32
    %113 = vector.broadcast %cst_39 : f32 to vector<8x1xf32>
    %114 = arith.divf %112, %113 : vector<8x1xf32>
    %115 = vector.broadcast %107 : vector<8x1xf32> to vector<8x32xf32>
    %116 = arith.subf %101, %115 : vector<8x32xf32>
    %cst_40 = arith.constant 9.99999996E-13 : f32
    %117 = vector.broadcast %cst_40 : f32 to vector<8x1xf32>
    %118 = arith.addf %114, %117 : vector<8x1xf32>
    %119 = math.rsqrt %118 : vector<8x1xf32>
    %120 = vector.broadcast %119 : vector<8x1xf32> to vector<8x32xf32>
    %121 = arith.mulf %116, %120 : vector<8x32xf32>
    %122 = vector.broadcast %102 : vector<1x32xf32> to vector<8x32xf32>
    %123 = arith.mulf %121, %122 : vector<8x32xf32>
    %124 = vector.broadcast %103 : vector<1x32xf32> to vector<8x32xf32>
    %125 = arith.addf %123, %124 : vector<8x32xf32>
    %c1 = arith.constant 1 : index
    %c0_41 = arith.constant 0 : index
    %c0_42 = arith.constant 0 : index
    %c0_43 = arith.constant 0 : index
    %126 = vector.load %arg2[%c1, %c0_41, %c0_42, %c0_43] : memref<5x4x32x32xf32, #tpu.memory_space<vmem>>, vector<1x4x32x32xf32>
    %127 = vector.shape_cast %126 : vector<1x4x32x32xf32> to vector<4x32x32xf32>
    %c1_44 = arith.constant 1 : index
    %c0_45 = arith.constant 0 : index
    %c0_46 = arith.constant 0 : index
    %128 = vector.load %arg5[%c1_44, %c0_45, %c0_46] : memref<5x10x128xf32, #tpu.memory_space<vmem>>, vector<1x10x128xf32>
    %129 = vector.shape_cast %128 : vector<1x10x128xf32> to vector<10x128xf32>
    %130 = vector.extract_strided_slice %127 {offsets = [0, 0, 0], sizes = [1, 32, 32], strides = [1, 1, 1]} : vector<4x32x32xf32> to vector<1x32x32xf32>
    %131 = vector.shape_cast %130 : vector<1x32x32xf32> to vector<32x32xf32>
    %cst_47 = arith.constant dense<0.000000e+00> : vector<8x32xf32>
    %132 = tpu.matmul %125, %131, %cst_47 {dimension_numbers = #tpu.dot_dimension_numbers<[1], [0], [0], [1], [0, 0, 1, 1], [], []>} : vector<8x32xf32>, vector<32x32xf32>, vector<8x32xf32> -> vector<8x32xf32>
    %133 = vector.extract_strided_slice %129 {offsets = [0, 0], sizes = [1, 32], strides = [1, 1]} : vector<10x128xf32> to vector<1x32xf32>
    %134 = vector.broadcast %133 : vector<1x32xf32> to vector<8x32xf32>
    %135 = arith.addf %132, %134 : vector<8x32xf32>
    %136 = vector.extract_strided_slice %127 {offsets = [1, 0, 0], sizes = [1, 32, 32], strides = [1, 1, 1]} : vector<4x32x32xf32> to vector<1x32x32xf32>
    %137 = vector.shape_cast %136 : vector<1x32x32xf32> to vector<32x32xf32>
    %cst_48 = arith.constant dense<0.000000e+00> : vector<8x32xf32>
    %138 = tpu.matmul %125, %137, %cst_48 {dimension_numbers = #tpu.dot_dimension_numbers<[1], [0], [0], [1], [0, 0, 1, 1], [], []>} : vector<8x32xf32>, vector<32x32xf32>, vector<8x32xf32> -> vector<8x32xf32>
    %139 = vector.extract_strided_slice %129 {offsets = [1, 0], sizes = [1, 32], strides = [1, 1]} : vector<10x128xf32> to vector<1x32xf32>
    %140 = vector.broadcast %139 : vector<1x32xf32> to vector<8x32xf32>
    %141 = arith.addf %138, %140 : vector<8x32xf32>
    %142 = vector.extract_strided_slice %127 {offsets = [2, 0, 0], sizes = [1, 32, 32], strides = [1, 1, 1]} : vector<4x32x32xf32> to vector<1x32x32xf32>
    %143 = vector.shape_cast %142 : vector<1x32x32xf32> to vector<32x32xf32>
    %cst_49 = arith.constant dense<0.000000e+00> : vector<8x32xf32>
    %144 = tpu.matmul %125, %143, %cst_49 {dimension_numbers = #tpu.dot_dimension_numbers<[1], [0], [0], [1], [0, 0, 1, 1], [], []>} : vector<8x32xf32>, vector<32x32xf32>, vector<8x32xf32> -> vector<8x32xf32>
    %145 = vector.extract_strided_slice %129 {offsets = [2, 0], sizes = [1, 32], strides = [1, 1]} : vector<10x128xf32> to vector<1x32xf32>
    %146 = vector.broadcast %145 : vector<1x32xf32> to vector<8x32xf32>
    %147 = arith.addf %144, %146 : vector<8x32xf32>
    %cst_50 = arith.constant dense<0.000000e+00> : vector<8x8xf32>
    %148 = tpu.matmul %135, %141, %cst_50 {dimension_numbers = #tpu.dot_dimension_numbers<[1], [1], [0], [0], [0, 0, 1, 0], [], []>} : vector<8x32xf32>, vector<8x32xf32>, vector<8x8xf32> -> vector<8x8xf32>
    %149 = vector.broadcast %6 : f32 to vector<8x8xf32>
    %150 = arith.mulf %148, %149 : vector<8x8xf32>
    %cst_51 = arith.constant -1.000000e+09 : f32
    %151 = vector.broadcast %cst_51 : f32 to vector<8x8xf32>
    %152 = arith.select %4, %150, %151 : vector<8x8xi1>, vector<8x8xf32>
    %cst_52 = arith.constant dense<0xFF800000> : vector<8xf32>
    %153 = vector.multi_reduction <maximumf>, %152, %cst_52 [1] : vector<8x8xf32> to vector<8xf32>
    %154 = vector.shape_cast %153 : vector<8xf32> to vector<8x1xf32>
    %155 = vector.broadcast %154 : vector<8x1xf32> to vector<8x8xf32>
    %156 = arith.subf %152, %155 : vector<8x8xf32>
    %157 = math.exp %156 : vector<8x8xf32>
    %cst_53 = arith.constant dense<0.000000e+00> : vector<8xf32>
    %158 = vector.multi_reduction <add>, %157, %cst_53 [1] : vector<8x8xf32> to vector<8xf32>
    %159 = vector.shape_cast %158 : vector<8xf32> to vector<8x1xf32>
    %160 = tpu.reciprocal %159 {approx = true} : vector<8x1xf32> -> vector<8x1xf32>
    %161 = vector.broadcast %160 : vector<8x1xf32> to vector<8x8xf32>
    %162 = arith.mulf %157, %161 : vector<8x8xf32>
    %cst_54 = arith.constant dense<0.000000e+00> : vector<8x32xf32>
    %163 = tpu.matmul %162, %147, %cst_54 {dimension_numbers = #tpu.dot_dimension_numbers<[1], [0], [0], [1], [0, 0, 1, 1], [], []>} : vector<8x8xf32>, vector<8x32xf32>, vector<8x32xf32> -> vector<8x32xf32>
    %164 = vector.extract_strided_slice %127 {offsets = [3, 0, 0], sizes = [1, 32, 32], strides = [1, 1, 1]} : vector<4x32x32xf32> to vector<1x32x32xf32>
    %165 = vector.shape_cast %164 : vector<1x32x32xf32> to vector<32x32xf32>
    %cst_55 = arith.constant dense<0.000000e+00> : vector<8x32xf32>
    %166 = tpu.matmul %163, %165, %cst_55 {dimension_numbers = #tpu.dot_dimension_numbers<[1], [0], [0], [1], [0, 0, 1, 1], [], []>} : vector<8x32xf32>, vector<32x32xf32>, vector<8x32xf32> -> vector<8x32xf32>
    %167 = vector.extract_strided_slice %129 {offsets = [3, 0], sizes = [1, 32], strides = [1, 1]} : vector<10x128xf32> to vector<1x32xf32>
    %168 = vector.broadcast %167 : vector<1x32xf32> to vector<8x32xf32>
    %169 = arith.addf %166, %168 : vector<8x32xf32>
    %170 = arith.addf %125, %169 : vector<8x32xf32>
    %171 = vector.extract_strided_slice %129 {offsets = [4, 0], sizes = [1, 32], strides = [1, 1]} : vector<10x128xf32> to vector<1x32xf32>
    %172 = vector.extract_strided_slice %129 {offsets = [5, 0], sizes = [1, 32], strides = [1, 1]} : vector<10x128xf32> to vector<1x32xf32>
    %cst_56 = arith.constant dense<0.000000e+00> : vector<8xf32>
    %173 = vector.multi_reduction <add>, %170, %cst_56 [1] : vector<8x32xf32> to vector<8xf32>
    %174 = vector.shape_cast %173 : vector<8xf32> to vector<8x1xf32>
    %cst_57 = arith.constant 3.200000e+01 : f32
    %175 = vector.broadcast %cst_57 : f32 to vector<8x1xf32>
    %176 = arith.divf %174, %175 : vector<8x1xf32>
    %177 = vector.broadcast %176 : vector<8x1xf32> to vector<8x32xf32>
    %178 = arith.subf %170, %177 : vector<8x32xf32>
    %179 = arith.mulf %178, %178 : vector<8x32xf32>
    %cst_58 = arith.constant dense<0.000000e+00> : vector<8xf32>
    %180 = vector.multi_reduction <add>, %179, %cst_58 [1] : vector<8x32xf32> to vector<8xf32>
    %181 = vector.shape_cast %180 : vector<8xf32> to vector<8x1xf32>
    %cst_59 = arith.constant 3.200000e+01 : f32
    %182 = vector.broadcast %cst_59 : f32 to vector<8x1xf32>
    %183 = arith.divf %181, %182 : vector<8x1xf32>
    %184 = vector.broadcast %176 : vector<8x1xf32> to vector<8x32xf32>
    %185 = arith.subf %170, %184 : vector<8x32xf32>
    %cst_60 = arith.constant 9.99999996E-13 : f32
    %186 = vector.broadcast %cst_60 : f32 to vector<8x1xf32>
    %187 = arith.addf %183, %186 : vector<8x1xf32>
    %188 = math.rsqrt %187 : vector<8x1xf32>
    %189 = vector.broadcast %188 : vector<8x1xf32> to vector<8x32xf32>
    %190 = arith.mulf %185, %189 : vector<8x32xf32>
    %191 = vector.broadcast %171 : vector<1x32xf32> to vector<8x32xf32>
    %192 = arith.mulf %190, %191 : vector<8x32xf32>
    %193 = vector.broadcast %172 : vector<1x32xf32> to vector<8x32xf32>
    %194 = arith.addf %192, %193 : vector<8x32xf32>
    %c1_61 = arith.constant 1 : index
    %c0_62 = arith.constant 0 : index
    %c0_63 = arith.constant 0 : index
    %195 = vector.load %arg3[%c1_61, %c0_62, %c0_63] : memref<5x32x128xf32, #tpu.memory_space<vmem>>, vector<1x32x128xf32>
    %196 = vector.shape_cast %195 : vector<1x32x128xf32> to vector<32x128xf32>
    %cst_64 = arith.constant dense<0.000000e+00> : vector<8x128xf32>
    %197 = tpu.matmul %194, %196, %cst_64 {dimension_numbers = #tpu.dot_dimension_numbers<[1], [0], [0], [1], [0, 0, 1, 1], [], []>} : vector<8x32xf32>, vector<32x128xf32>, vector<8x128xf32> -> vector<8x128xf32>
    %198 = vector.extract_strided_slice %129 {offsets = [6, 0], sizes = [1, 128], strides = [1, 1]} : vector<10x128xf32> to vector<1x128xf32>
    %199 = vector.broadcast %198 : vector<1x128xf32> to vector<8x128xf32>
    %200 = arith.addf %197, %199 : vector<8x128xf32>
    %201 = arith.mulf %200, %200 : vector<8x128xf32>
    %202 = arith.mulf %200, %201 : vector<8x128xf32>
    %cst_65 = arith.constant 4.471500e-02 : f32
    %203 = vector.broadcast %cst_65 : f32 to vector<8x128xf32>
    %204 = arith.mulf %203, %202 : vector<8x128xf32>
    %205 = arith.addf %200, %204 : vector<8x128xf32>
    %cst_66 = arith.constant 0.797884583 : f32
    %206 = vector.broadcast %cst_66 : f32 to vector<8x128xf32>
    %207 = arith.mulf %206, %205 : vector<8x128xf32>
    %208 = math.tanh %207 : vector<8x128xf32>
    %cst_67 = arith.constant 1.000000e+00 : f32
    %209 = vector.broadcast %cst_67 : f32 to vector<8x128xf32>
    %210 = arith.addf %209, %208 : vector<8x128xf32>
    %cst_68 = arith.constant 5.000000e-01 : f32
    %211 = vector.broadcast %cst_68 : f32 to vector<8x128xf32>
    %212 = arith.mulf %211, %210 : vector<8x128xf32>
    %213 = arith.mulf %200, %212 : vector<8x128xf32>
    %c1_69 = arith.constant 1 : index
    %c0_70 = arith.constant 0 : index
    %c0_71 = arith.constant 0 : index
    %214 = vector.load %arg4[%c1_69, %c0_70, %c0_71] : memref<5x128x32xf32, #tpu.memory_space<vmem>>, vector<1x128x32xf32>
    %215 = vector.shape_cast %214 : vector<1x128x32xf32> to vector<128x32xf32>
    %cst_72 = arith.constant dense<0.000000e+00> : vector<8x32xf32>
    %216 = tpu.matmul %213, %215, %cst_72 {dimension_numbers = #tpu.dot_dimension_numbers<[1], [0], [0], [1], [0, 0, 1, 1], [], []>} : vector<8x128xf32>, vector<128x32xf32>, vector<8x32xf32> -> vector<8x32xf32>
    %217 = vector.extract_strided_slice %129 {offsets = [7, 0], sizes = [1, 32], strides = [1, 1]} : vector<10x128xf32> to vector<1x32xf32>
    %218 = vector.broadcast %217 : vector<1x32xf32> to vector<8x32xf32>
    %219 = arith.addf %216, %218 : vector<8x32xf32>
    %220 = arith.addf %194, %219 : vector<8x32xf32>
    %221 = vector.extract_strided_slice %129 {offsets = [8, 0], sizes = [1, 32], strides = [1, 1]} : vector<10x128xf32> to vector<1x32xf32>
    %222 = vector.extract_strided_slice %129 {offsets = [9, 0], sizes = [1, 32], strides = [1, 1]} : vector<10x128xf32> to vector<1x32xf32>
    %cst_73 = arith.constant dense<0.000000e+00> : vector<8xf32>
    %223 = vector.multi_reduction <add>, %220, %cst_73 [1] : vector<8x32xf32> to vector<8xf32>
    %224 = vector.shape_cast %223 : vector<8xf32> to vector<8x1xf32>
    %cst_74 = arith.constant 3.200000e+01 : f32
    %225 = vector.broadcast %cst_74 : f32 to vector<8x1xf32>
    %226 = arith.divf %224, %225 : vector<8x1xf32>
    %227 = vector.broadcast %226 : vector<8x1xf32> to vector<8x32xf32>
    %228 = arith.subf %220, %227 : vector<8x32xf32>
    %229 = arith.mulf %228, %228 : vector<8x32xf32>
    %cst_75 = arith.constant dense<0.000000e+00> : vector<8xf32>
    %230 = vector.multi_reduction <add>, %229, %cst_75 [1] : vector<8x32xf32> to vector<8xf32>
    %231 = vector.shape_cast %230 : vector<8xf32> to vector<8x1xf32>
    %cst_76 = arith.constant 3.200000e+01 : f32
    %232 = vector.broadcast %cst_76 : f32 to vector<8x1xf32>
    %233 = arith.divf %231, %232 : vector<8x1xf32>
    %234 = vector.broadcast %226 : vector<8x1xf32> to vector<8x32xf32>
    %235 = arith.subf %220, %234 : vector<8x32xf32>
    %cst_77 = arith.constant 9.99999996E-13 : f32
    %236 = vector.broadcast %cst_77 : f32 to vector<8x1xf32>
    %237 = arith.addf %233, %236 : vector<8x1xf32>
    %238 = math.rsqrt %237 : vector<8x1xf32>
    %239 = vector.broadcast %238 : vector<8x1xf32> to vector<8x32xf32>
    %240 = arith.mulf %235, %239 : vector<8x32xf32>
    %241 = vector.broadcast %221 : vector<1x32xf32> to vector<8x32xf32>
    %242 = arith.mulf %240, %241 : vector<8x32xf32>
    %243 = vector.broadcast %222 : vector<1x32xf32> to vector<8x32xf32>
    %244 = arith.addf %242, %243 : vector<8x32xf32>
    %c2 = arith.constant 2 : index
    %c0_78 = arith.constant 0 : index
    %c0_79 = arith.constant 0 : index
    %c0_80 = arith.constant 0 : index
    %245 = vector.load %arg2[%c2, %c0_78, %c0_79, %c0_80] : memref<5x4x32x32xf32, #tpu.memory_space<vmem>>, vector<1x4x32x32xf32>
    %246 = vector.shape_cast %245 : vector<1x4x32x32xf32> to vector<4x32x32xf32>
    %c2_81 = arith.constant 2 : index
    %c0_82 = arith.constant 0 : index
    %c0_83 = arith.constant 0 : index
    %247 = vector.load %arg5[%c2_81, %c0_82, %c0_83] : memref<5x10x128xf32, #tpu.memory_space<vmem>>, vector<1x10x128xf32>
    %248 = vector.shape_cast %247 : vector<1x10x128xf32> to vector<10x128xf32>
    %249 = vector.extract_strided_slice %246 {offsets = [0, 0, 0], sizes = [1, 32, 32], strides = [1, 1, 1]} : vector<4x32x32xf32> to vector<1x32x32xf32>
    %250 = vector.shape_cast %249 : vector<1x32x32xf32> to vector<32x32xf32>
    %cst_84 = arith.constant dense<0.000000e+00> : vector<8x32xf32>
    %251 = tpu.matmul %244, %250, %cst_84 {dimension_numbers = #tpu.dot_dimension_numbers<[1], [0], [0], [1], [0, 0, 1, 1], [], []>} : vector<8x32xf32>, vector<32x32xf32>, vector<8x32xf32> -> vector<8x32xf32>
    %252 = vector.extract_strided_slice %248 {offsets = [0, 0], sizes = [1, 32], strides = [1, 1]} : vector<10x128xf32> to vector<1x32xf32>
    %253 = vector.broadcast %252 : vector<1x32xf32> to vector<8x32xf32>
    %254 = arith.addf %251, %253 : vector<8x32xf32>
    %255 = vector.extract_strided_slice %246 {offsets = [1, 0, 0], sizes = [1, 32, 32], strides = [1, 1, 1]} : vector<4x32x32xf32> to vector<1x32x32xf32>
    %256 = vector.shape_cast %255 : vector<1x32x32xf32> to vector<32x32xf32>
    %cst_85 = arith.constant dense<0.000000e+00> : vector<8x32xf32>
    %257 = tpu.matmul %244, %256, %cst_85 {dimension_numbers = #tpu.dot_dimension_numbers<[1], [0], [0], [1], [0, 0, 1, 1], [], []>} : vector<8x32xf32>, vector<32x32xf32>, vector<8x32xf32> -> vector<8x32xf32>
    %258 = vector.extract_strided_slice %248 {offsets = [1, 0], sizes = [1, 32], strides = [1, 1]} : vector<10x128xf32> to vector<1x32xf32>
    %259 = vector.broadcast %258 : vector<1x32xf32> to vector<8x32xf32>
    %260 = arith.addf %257, %259 : vector<8x32xf32>
    %261 = vector.extract_strided_slice %246 {offsets = [2, 0, 0], sizes = [1, 32, 32], strides = [1, 1, 1]} : vector<4x32x32xf32> to vector<1x32x32xf32>
    %262 = vector.shape_cast %261 : vector<1x32x32xf32> to vector<32x32xf32>
    %cst_86 = arith.constant dense<0.000000e+00> : vector<8x32xf32>
    %263 = tpu.matmul %244, %262, %cst_86 {dimension_numbers = #tpu.dot_dimension_numbers<[1], [0], [0], [1], [0, 0, 1, 1], [], []>} : vector<8x32xf32>, vector<32x32xf32>, vector<8x32xf32> -> vector<8x32xf32>
    %264 = vector.extract_strided_slice %248 {offsets = [2, 0], sizes = [1, 32], strides = [1, 1]} : vector<10x128xf32> to vector<1x32xf32>
    %265 = vector.broadcast %264 : vector<1x32xf32> to vector<8x32xf32>
    %266 = arith.addf %263, %265 : vector<8x32xf32>
    %cst_87 = arith.constant dense<0.000000e+00> : vector<8x8xf32>
    %267 = tpu.matmul %254, %260, %cst_87 {dimension_numbers = #tpu.dot_dimension_numbers<[1], [1], [0], [0], [0, 0, 1, 0], [], []>} : vector<8x32xf32>, vector<8x32xf32>, vector<8x8xf32> -> vector<8x8xf32>
    %268 = vector.broadcast %6 : f32 to vector<8x8xf32>
    %269 = arith.mulf %267, %268 : vector<8x8xf32>
    %cst_88 = arith.constant -1.000000e+09 : f32
    %270 = vector.broadcast %cst_88 : f32 to vector<8x8xf32>
    %271 = arith.select %4, %269, %270 : vector<8x8xi1>, vector<8x8xf32>
    %cst_89 = arith.constant dense<0xFF800000> : vector<8xf32>
    %272 = vector.multi_reduction <maximumf>, %271, %cst_89 [1] : vector<8x8xf32> to vector<8xf32>
    %273 = vector.shape_cast %272 : vector<8xf32> to vector<8x1xf32>
    %274 = vector.broadcast %273 : vector<8x1xf32> to vector<8x8xf32>
    %275 = arith.subf %271, %274 : vector<8x8xf32>
    %276 = math.exp %275 : vector<8x8xf32>
    %cst_90 = arith.constant dense<0.000000e+00> : vector<8xf32>
    %277 = vector.multi_reduction <add>, %276, %cst_90 [1] : vector<8x8xf32> to vector<8xf32>
    %278 = vector.shape_cast %277 : vector<8xf32> to vector<8x1xf32>
    %279 = tpu.reciprocal %278 {approx = true} : vector<8x1xf32> -> vector<8x1xf32>
    %280 = vector.broadcast %279 : vector<8x1xf32> to vector<8x8xf32>
    %281 = arith.mulf %276, %280 : vector<8x8xf32>
    %cst_91 = arith.constant dense<0.000000e+00> : vector<8x32xf32>
    %282 = tpu.matmul %281, %266, %cst_91 {dimension_numbers = #tpu.dot_dimension_numbers<[1], [0], [0], [1], [0, 0, 1, 1], [], []>} : vector<8x8xf32>, vector<8x32xf32>, vector<8x32xf32> -> vector<8x32xf32>
    %283 = vector.extract_strided_slice %246 {offsets = [3, 0, 0], sizes = [1, 32, 32], strides = [1, 1, 1]} : vector<4x32x32xf32> to vector<1x32x32xf32>
    %284 = vector.shape_cast %283 : vector<1x32x32xf32> to vector<32x32xf32>
    %cst_92 = arith.constant dense<0.000000e+00> : vector<8x32xf32>
    %285 = tpu.matmul %282, %284, %cst_92 {dimension_numbers = #tpu.dot_dimension_numbers<[1], [0], [0], [1], [0, 0, 1, 1], [], []>} : vector<8x32xf32>, vector<32x32xf32>, vector<8x32xf32> -> vector<8x32xf32>
    %286 = vector.extract_strided_slice %248 {offsets = [3, 0], sizes = [1, 32], strides = [1, 1]} : vector<10x128xf32> to vector<1x32xf32>
    %287 = vector.broadcast %286 : vector<1x32xf32> to vector<8x32xf32>
    %288 = arith.addf %285, %287 : vector<8x32xf32>
    %289 = arith.addf %244, %288 : vector<8x32xf32>
    %290 = vector.extract_strided_slice %248 {offsets = [4, 0], sizes = [1, 32], strides = [1, 1]} : vector<10x128xf32> to vector<1x32xf32>
    %291 = vector.extract_strided_slice %248 {offsets = [5, 0], sizes = [1, 32], strides = [1, 1]} : vector<10x128xf32> to vector<1x32xf32>
    %cst_93 = arith.constant dense<0.000000e+00> : vector<8xf32>
    %292 = vector.multi_reduction <add>, %289, %cst_93 [1] : vector<8x32xf32> to vector<8xf32>
    %293 = vector.shape_cast %292 : vector<8xf32> to vector<8x1xf32>
    %cst_94 = arith.constant 3.200000e+01 : f32
    %294 = vector.broadcast %cst_94 : f32 to vector<8x1xf32>
    %295 = arith.divf %293, %294 : vector<8x1xf32>
    %296 = vector.broadcast %295 : vector<8x1xf32> to vector<8x32xf32>
    %297 = arith.subf %289, %296 : vector<8x32xf32>
    %298 = arith.mulf %297, %297 : vector<8x32xf32>
    %cst_95 = arith.constant dense<0.000000e+00> : vector<8xf32>
    %299 = vector.multi_reduction <add>, %298, %cst_95 [1] : vector<8x32xf32> to vector<8xf32>
    %300 = vector.shape_cast %299 : vector<8xf32> to vector<8x1xf32>
    %cst_96 = arith.constant 3.200000e+01 : f32
    %301 = vector.broadcast %cst_96 : f32 to vector<8x1xf32>
    %302 = arith.divf %300, %301 : vector<8x1xf32>
    %303 = vector.broadcast %295 : vector<8x1xf32> to vector<8x32xf32>
    %304 = arith.subf %289, %303 : vector<8x32xf32>
    %cst_97 = arith.constant 9.99999996E-13 : f32
    %305 = vector.broadcast %cst_97 : f32 to vector<8x1xf32>
    %306 = arith.addf %302, %305 : vector<8x1xf32>
    %307 = math.rsqrt %306 : vector<8x1xf32>
    %308 = vector.broadcast %307 : vector<8x1xf32> to vector<8x32xf32>
    %309 = arith.mulf %304, %308 : vector<8x32xf32>
    %310 = vector.broadcast %290 : vector<1x32xf32> to vector<8x32xf32>
    %311 = arith.mulf %309, %310 : vector<8x32xf32>
    %312 = vector.broadcast %291 : vector<1x32xf32> to vector<8x32xf32>
    %313 = arith.addf %311, %312 : vector<8x32xf32>
    %c2_98 = arith.constant 2 : index
    %c0_99 = arith.constant 0 : index
    %c0_100 = arith.constant 0 : index
    %314 = vector.load %arg3[%c2_98, %c0_99, %c0_100] : memref<5x32x128xf32, #tpu.memory_space<vmem>>, vector<1x32x128xf32>
    %315 = vector.shape_cast %314 : vector<1x32x128xf32> to vector<32x128xf32>
    %cst_101 = arith.constant dense<0.000000e+00> : vector<8x128xf32>
    %316 = tpu.matmul %313, %315, %cst_101 {dimension_numbers = #tpu.dot_dimension_numbers<[1], [0], [0], [1], [0, 0, 1, 1], [], []>} : vector<8x32xf32>, vector<32x128xf32>, vector<8x128xf32> -> vector<8x128xf32>
    %317 = vector.extract_strided_slice %248 {offsets = [6, 0], sizes = [1, 128], strides = [1, 1]} : vector<10x128xf32> to vector<1x128xf32>
    %318 = vector.broadcast %317 : vector<1x128xf32> to vector<8x128xf32>
    %319 = arith.addf %316, %318 : vector<8x128xf32>
    %320 = arith.mulf %319, %319 : vector<8x128xf32>
    %321 = arith.mulf %319, %320 : vector<8x128xf32>
    %cst_102 = arith.constant 4.471500e-02 : f32
    %322 = vector.broadcast %cst_102 : f32 to vector<8x128xf32>
    %323 = arith.mulf %322, %321 : vector<8x128xf32>
    %324 = arith.addf %319, %323 : vector<8x128xf32>
    %cst_103 = arith.constant 0.797884583 : f32
    %325 = vector.broadcast %cst_103 : f32 to vector<8x128xf32>
    %326 = arith.mulf %325, %324 : vector<8x128xf32>
    %327 = math.tanh %326 : vector<8x128xf32>
    %cst_104 = arith.constant 1.000000e+00 : f32
    %328 = vector.broadcast %cst_104 : f32 to vector<8x128xf32>
    %329 = arith.addf %328, %327 : vector<8x128xf32>
    %cst_105 = arith.constant 5.000000e-01 : f32
    %330 = vector.broadcast %cst_105 : f32 to vector<8x128xf32>
    %331 = arith.mulf %330, %329 : vector<8x128xf32>
    %332 = arith.mulf %319, %331 : vector<8x128xf32>
    %c2_106 = arith.constant 2 : index
    %c0_107 = arith.constant 0 : index
    %c0_108 = arith.constant 0 : index
    %333 = vector.load %arg4[%c2_106, %c0_107, %c0_108] : memref<5x128x32xf32, #tpu.memory_space<vmem>>, vector<1x128x32xf32>
    %334 = vector.shape_cast %333 : vector<1x128x32xf32> to vector<128x32xf32>
    %cst_109 = arith.constant dense<0.000000e+00> : vector<8x32xf32>
    %335 = tpu.matmul %332, %334, %cst_109 {dimension_numbers = #tpu.dot_dimension_numbers<[1], [0], [0], [1], [0, 0, 1, 1], [], []>} : vector<8x128xf32>, vector<128x32xf32>, vector<8x32xf32> -> vector<8x32xf32>
    %336 = vector.extract_strided_slice %248 {offsets = [7, 0], sizes = [1, 32], strides = [1, 1]} : vector<10x128xf32> to vector<1x32xf32>
    %337 = vector.broadcast %336 : vector<1x32xf32> to vector<8x32xf32>
    %338 = arith.addf %335, %337 : vector<8x32xf32>
    %339 = arith.addf %313, %338 : vector<8x32xf32>
    %340 = vector.extract_strided_slice %248 {offsets = [8, 0], sizes = [1, 32], strides = [1, 1]} : vector<10x128xf32> to vector<1x32xf32>
    %341 = vector.extract_strided_slice %248 {offsets = [9, 0], sizes = [1, 32], strides = [1, 1]} : vector<10x128xf32> to vector<1x32xf32>
    %cst_110 = arith.constant dense<0.000000e+00> : vector<8xf32>
    %342 = vector.multi_reduction <add>, %339, %cst_110 [1] : vector<8x32xf32> to vector<8xf32>
    %343 = vector.shape_cast %342 : vector<8xf32> to vector<8x1xf32>
    %cst_111 = arith.constant 3.200000e+01 : f32
    %344 = vector.broadcast %cst_111 : f32 to vector<8x1xf32>
    %345 = arith.divf %343, %344 : vector<8x1xf32>
    %346 = vector.broadcast %345 : vector<8x1xf32> to vector<8x32xf32>
    %347 = arith.subf %339, %346 : vector<8x32xf32>
    %348 = arith.mulf %347, %347 : vector<8x32xf32>
    %cst_112 = arith.constant dense<0.000000e+00> : vector<8xf32>
    %349 = vector.multi_reduction <add>, %348, %cst_112 [1] : vector<8x32xf32> to vector<8xf32>
    %350 = vector.shape_cast %349 : vector<8xf32> to vector<8x1xf32>
    %cst_113 = arith.constant 3.200000e+01 : f32
    %351 = vector.broadcast %cst_113 : f32 to vector<8x1xf32>
    %352 = arith.divf %350, %351 : vector<8x1xf32>
    %353 = vector.broadcast %345 : vector<8x1xf32> to vector<8x32xf32>
    %354 = arith.subf %339, %353 : vector<8x32xf32>
    %cst_114 = arith.constant 9.99999996E-13 : f32
    %355 = vector.broadcast %cst_114 : f32 to vector<8x1xf32>
    %356 = arith.addf %352, %355 : vector<8x1xf32>
    %357 = math.rsqrt %356 : vector<8x1xf32>
    %358 = vector.broadcast %357 : vector<8x1xf32> to vector<8x32xf32>
    %359 = arith.mulf %354, %358 : vector<8x32xf32>
    %360 = vector.broadcast %340 : vector<1x32xf32> to vector<8x32xf32>
    %361 = arith.mulf %359, %360 : vector<8x32xf32>
    %362 = vector.broadcast %341 : vector<1x32xf32> to vector<8x32xf32>
    %363 = arith.addf %361, %362 : vector<8x32xf32>
    %c3 = arith.constant 3 : index
    %c0_115 = arith.constant 0 : index
    %c0_116 = arith.constant 0 : index
    %c0_117 = arith.constant 0 : index
    %364 = vector.load %arg2[%c3, %c0_115, %c0_116, %c0_117] : memref<5x4x32x32xf32, #tpu.memory_space<vmem>>, vector<1x4x32x32xf32>
    %365 = vector.shape_cast %364 : vector<1x4x32x32xf32> to vector<4x32x32xf32>
    %c3_118 = arith.constant 3 : index
    %c0_119 = arith.constant 0 : index
    %c0_120 = arith.constant 0 : index
    %366 = vector.load %arg5[%c3_118, %c0_119, %c0_120] : memref<5x10x128xf32, #tpu.memory_space<vmem>>, vector<1x10x128xf32>
    %367 = vector.shape_cast %366 : vector<1x10x128xf32> to vector<10x128xf32>
    %368 = vector.extract_strided_slice %365 {offsets = [0, 0, 0], sizes = [1, 32, 32], strides = [1, 1, 1]} : vector<4x32x32xf32> to vector<1x32x32xf32>
    %369 = vector.shape_cast %368 : vector<1x32x32xf32> to vector<32x32xf32>
    %cst_121 = arith.constant dense<0.000000e+00> : vector<8x32xf32>
    %370 = tpu.matmul %363, %369, %cst_121 {dimension_numbers = #tpu.dot_dimension_numbers<[1], [0], [0], [1], [0, 0, 1, 1], [], []>} : vector<8x32xf32>, vector<32x32xf32>, vector<8x32xf32> -> vector<8x32xf32>
    %371 = vector.extract_strided_slice %367 {offsets = [0, 0], sizes = [1, 32], strides = [1, 1]} : vector<10x128xf32> to vector<1x32xf32>
    %372 = vector.broadcast %371 : vector<1x32xf32> to vector<8x32xf32>
    %373 = arith.addf %370, %372 : vector<8x32xf32>
    %374 = vector.extract_strided_slice %365 {offsets = [1, 0, 0], sizes = [1, 32, 32], strides = [1, 1, 1]} : vector<4x32x32xf32> to vector<1x32x32xf32>
    %375 = vector.shape_cast %374 : vector<1x32x32xf32> to vector<32x32xf32>
    %cst_122 = arith.constant dense<0.000000e+00> : vector<8x32xf32>
    %376 = tpu.matmul %363, %375, %cst_122 {dimension_numbers = #tpu.dot_dimension_numbers<[1], [0], [0], [1], [0, 0, 1, 1], [], []>} : vector<8x32xf32>, vector<32x32xf32>, vector<8x32xf32> -> vector<8x32xf32>
    %377 = vector.extract_strided_slice %367 {offsets = [1, 0], sizes = [1, 32], strides = [1, 1]} : vector<10x128xf32> to vector<1x32xf32>
    %378 = vector.broadcast %377 : vector<1x32xf32> to vector<8x32xf32>
    %379 = arith.addf %376, %378 : vector<8x32xf32>
    %380 = vector.extract_strided_slice %365 {offsets = [2, 0, 0], sizes = [1, 32, 32], strides = [1, 1, 1]} : vector<4x32x32xf32> to vector<1x32x32xf32>
    %381 = vector.shape_cast %380 : vector<1x32x32xf32> to vector<32x32xf32>
    %cst_123 = arith.constant dense<0.000000e+00> : vector<8x32xf32>
    %382 = tpu.matmul %363, %381, %cst_123 {dimension_numbers = #tpu.dot_dimension_numbers<[1], [0], [0], [1], [0, 0, 1, 1], [], []>} : vector<8x32xf32>, vector<32x32xf32>, vector<8x32xf32> -> vector<8x32xf32>
    %383 = vector.extract_strided_slice %367 {offsets = [2, 0], sizes = [1, 32], strides = [1, 1]} : vector<10x128xf32> to vector<1x32xf32>
    %384 = vector.broadcast %383 : vector<1x32xf32> to vector<8x32xf32>
    %385 = arith.addf %382, %384 : vector<8x32xf32>
    %cst_124 = arith.constant dense<0.000000e+00> : vector<8x8xf32>
    %386 = tpu.matmul %373, %379, %cst_124 {dimension_numbers = #tpu.dot_dimension_numbers<[1], [1], [0], [0], [0, 0, 1, 0], [], []>} : vector<8x32xf32>, vector<8x32xf32>, vector<8x8xf32> -> vector<8x8xf32>
    %387 = vector.broadcast %6 : f32 to vector<8x8xf32>
    %388 = arith.mulf %386, %387 : vector<8x8xf32>
    %cst_125 = arith.constant -1.000000e+09 : f32
    %389 = vector.broadcast %cst_125 : f32 to vector<8x8xf32>
    %390 = arith.select %4, %388, %389 : vector<8x8xi1>, vector<8x8xf32>
    %cst_126 = arith.constant dense<0xFF800000> : vector<8xf32>
    %391 = vector.multi_reduction <maximumf>, %390, %cst_126 [1] : vector<8x8xf32> to vector<8xf32>
    %392 = vector.shape_cast %391 : vector<8xf32> to vector<8x1xf32>
    %393 = vector.broadcast %392 : vector<8x1xf32> to vector<8x8xf32>
    %394 = arith.subf %390, %393 : vector<8x8xf32>
    %395 = math.exp %394 : vector<8x8xf32>
    %cst_127 = arith.constant dense<0.000000e+00> : vector<8xf32>
    %396 = vector.multi_reduction <add>, %395, %cst_127 [1] : vector<8x8xf32> to vector<8xf32>
    %397 = vector.shape_cast %396 : vector<8xf32> to vector<8x1xf32>
    %398 = tpu.reciprocal %397 {approx = true} : vector<8x1xf32> -> vector<8x1xf32>
    %399 = vector.broadcast %398 : vector<8x1xf32> to vector<8x8xf32>
    %400 = arith.mulf %395, %399 : vector<8x8xf32>
    %cst_128 = arith.constant dense<0.000000e+00> : vector<8x32xf32>
    %401 = tpu.matmul %400, %385, %cst_128 {dimension_numbers = #tpu.dot_dimension_numbers<[1], [0], [0], [1], [0, 0, 1, 1], [], []>} : vector<8x8xf32>, vector<8x32xf32>, vector<8x32xf32> -> vector<8x32xf32>
    %402 = vector.extract_strided_slice %365 {offsets = [3, 0, 0], sizes = [1, 32, 32], strides = [1, 1, 1]} : vector<4x32x32xf32> to vector<1x32x32xf32>
    %403 = vector.shape_cast %402 : vector<1x32x32xf32> to vector<32x32xf32>
    %cst_129 = arith.constant dense<0.000000e+00> : vector<8x32xf32>
    %404 = tpu.matmul %401, %403, %cst_129 {dimension_numbers = #tpu.dot_dimension_numbers<[1], [0], [0], [1], [0, 0, 1, 1], [], []>} : vector<8x32xf32>, vector<32x32xf32>, vector<8x32xf32> -> vector<8x32xf32>
    %405 = vector.extract_strided_slice %367 {offsets = [3, 0], sizes = [1, 32], strides = [1, 1]} : vector<10x128xf32> to vector<1x32xf32>
    %406 = vector.broadcast %405 : vector<1x32xf32> to vector<8x32xf32>
    %407 = arith.addf %404, %406 : vector<8x32xf32>
    %408 = arith.addf %363, %407 : vector<8x32xf32>
    %409 = vector.extract_strided_slice %367 {offsets = [4, 0], sizes = [1, 32], strides = [1, 1]} : vector<10x128xf32> to vector<1x32xf32>
    %410 = vector.extract_strided_slice %367 {offsets = [5, 0], sizes = [1, 32], strides = [1, 1]} : vector<10x128xf32> to vector<1x32xf32>
    %cst_130 = arith.constant dense<0.000000e+00> : vector<8xf32>
    %411 = vector.multi_reduction <add>, %408, %cst_130 [1] : vector<8x32xf32> to vector<8xf32>
    %412 = vector.shape_cast %411 : vector<8xf32> to vector<8x1xf32>
    %cst_131 = arith.constant 3.200000e+01 : f32
    %413 = vector.broadcast %cst_131 : f32 to vector<8x1xf32>
    %414 = arith.divf %412, %413 : vector<8x1xf32>
    %415 = vector.broadcast %414 : vector<8x1xf32> to vector<8x32xf32>
    %416 = arith.subf %408, %415 : vector<8x32xf32>
    %417 = arith.mulf %416, %416 : vector<8x32xf32>
    %cst_132 = arith.constant dense<0.000000e+00> : vector<8xf32>
    %418 = vector.multi_reduction <add>, %417, %cst_132 [1] : vector<8x32xf32> to vector<8xf32>
    %419 = vector.shape_cast %418 : vector<8xf32> to vector<8x1xf32>
    %cst_133 = arith.constant 3.200000e+01 : f32
    %420 = vector.broadcast %cst_133 : f32 to vector<8x1xf32>
    %421 = arith.divf %419, %420 : vector<8x1xf32>
    %422 = vector.broadcast %414 : vector<8x1xf32> to vector<8x32xf32>
    %423 = arith.subf %408, %422 : vector<8x32xf32>
    %cst_134 = arith.constant 9.99999996E-13 : f32
    %424 = vector.broadcast %cst_134 : f32 to vector<8x1xf32>
    %425 = arith.addf %421, %424 : vector<8x1xf32>
    %426 = math.rsqrt %425 : vector<8x1xf32>
    %427 = vector.broadcast %426 : vector<8x1xf32> to vector<8x32xf32>
    %428 = arith.mulf %423, %427 : vector<8x32xf32>
    %429 = vector.broadcast %409 : vector<1x32xf32> to vector<8x32xf32>
    %430 = arith.mulf %428, %429 : vector<8x32xf32>
    %431 = vector.broadcast %410 : vector<1x32xf32> to vector<8x32xf32>
    %432 = arith.addf %430, %431 : vector<8x32xf32>
    %c3_135 = arith.constant 3 : index
    %c0_136 = arith.constant 0 : index
    %c0_137 = arith.constant 0 : index
    %433 = vector.load %arg3[%c3_135, %c0_136, %c0_137] : memref<5x32x128xf32, #tpu.memory_space<vmem>>, vector<1x32x128xf32>
    %434 = vector.shape_cast %433 : vector<1x32x128xf32> to vector<32x128xf32>
    %cst_138 = arith.constant dense<0.000000e+00> : vector<8x128xf32>
    %435 = tpu.matmul %432, %434, %cst_138 {dimension_numbers = #tpu.dot_dimension_numbers<[1], [0], [0], [1], [0, 0, 1, 1], [], []>} : vector<8x32xf32>, vector<32x128xf32>, vector<8x128xf32> -> vector<8x128xf32>
    %436 = vector.extract_strided_slice %367 {offsets = [6, 0], sizes = [1, 128], strides = [1, 1]} : vector<10x128xf32> to vector<1x128xf32>
    %437 = vector.broadcast %436 : vector<1x128xf32> to vector<8x128xf32>
    %438 = arith.addf %435, %437 : vector<8x128xf32>
    %439 = arith.mulf %438, %438 : vector<8x128xf32>
    %440 = arith.mulf %438, %439 : vector<8x128xf32>
    %cst_139 = arith.constant 4.471500e-02 : f32
    %441 = vector.broadcast %cst_139 : f32 to vector<8x128xf32>
    %442 = arith.mulf %441, %440 : vector<8x128xf32>
    %443 = arith.addf %438, %442 : vector<8x128xf32>
    %cst_140 = arith.constant 0.797884583 : f32
    %444 = vector.broadcast %cst_140 : f32 to vector<8x128xf32>
    %445 = arith.mulf %444, %443 : vector<8x128xf32>
    %446 = math.tanh %445 : vector<8x128xf32>
    %cst_141 = arith.constant 1.000000e+00 : f32
    %447 = vector.broadcast %cst_141 : f32 to vector<8x128xf32>
    %448 = arith.addf %447, %446 : vector<8x128xf32>
    %cst_142 = arith.constant 5.000000e-01 : f32
    %449 = vector.broadcast %cst_142 : f32 to vector<8x128xf32>
    %450 = arith.mulf %449, %448 : vector<8x128xf32>
    %451 = arith.mulf %438, %450 : vector<8x128xf32>
    %c3_143 = arith.constant 3 : index
    %c0_144 = arith.constant 0 : index
    %c0_145 = arith.constant 0 : index
    %452 = vector.load %arg4[%c3_143, %c0_144, %c0_145] : memref<5x128x32xf32, #tpu.memory_space<vmem>>, vector<1x128x32xf32>
    %453 = vector.shape_cast %452 : vector<1x128x32xf32> to vector<128x32xf32>
    %cst_146 = arith.constant dense<0.000000e+00> : vector<8x32xf32>
    %454 = tpu.matmul %451, %453, %cst_146 {dimension_numbers = #tpu.dot_dimension_numbers<[1], [0], [0], [1], [0, 0, 1, 1], [], []>} : vector<8x128xf32>, vector<128x32xf32>, vector<8x32xf32> -> vector<8x32xf32>
    %455 = vector.extract_strided_slice %367 {offsets = [7, 0], sizes = [1, 32], strides = [1, 1]} : vector<10x128xf32> to vector<1x32xf32>
    %456 = vector.broadcast %455 : vector<1x32xf32> to vector<8x32xf32>
    %457 = arith.addf %454, %456 : vector<8x32xf32>
    %458 = arith.addf %432, %457 : vector<8x32xf32>
    %459 = vector.extract_strided_slice %367 {offsets = [8, 0], sizes = [1, 32], strides = [1, 1]} : vector<10x128xf32> to vector<1x32xf32>
    %460 = vector.extract_strided_slice %367 {offsets = [9, 0], sizes = [1, 32], strides = [1, 1]} : vector<10x128xf32> to vector<1x32xf32>
    %cst_147 = arith.constant dense<0.000000e+00> : vector<8xf32>
    %461 = vector.multi_reduction <add>, %458, %cst_147 [1] : vector<8x32xf32> to vector<8xf32>
    %462 = vector.shape_cast %461 : vector<8xf32> to vector<8x1xf32>
    %cst_148 = arith.constant 3.200000e+01 : f32
    %463 = vector.broadcast %cst_148 : f32 to vector<8x1xf32>
    %464 = arith.divf %462, %463 : vector<8x1xf32>
    %465 = vector.broadcast %464 : vector<8x1xf32> to vector<8x32xf32>
    %466 = arith.subf %458, %465 : vector<8x32xf32>
    %467 = arith.mulf %466, %466 : vector<8x32xf32>
    %cst_149 = arith.constant dense<0.000000e+00> : vector<8xf32>
    %468 = vector.multi_reduction <add>, %467, %cst_149 [1] : vector<8x32xf32> to vector<8xf32>
    %469 = vector.shape_cast %468 : vector<8xf32> to vector<8x1xf32>
    %cst_150 = arith.constant 3.200000e+01 : f32
    %470 = vector.broadcast %cst_150 : f32 to vector<8x1xf32>
    %471 = arith.divf %469, %470 : vector<8x1xf32>
    %472 = vector.broadcast %464 : vector<8x1xf32> to vector<8x32xf32>
    %473 = arith.subf %458, %472 : vector<8x32xf32>
    %cst_151 = arith.constant 9.99999996E-13 : f32
    %474 = vector.broadcast %cst_151 : f32 to vector<8x1xf32>
    %475 = arith.addf %471, %474 : vector<8x1xf32>
    %476 = math.rsqrt %475 : vector<8x1xf32>
    %477 = vector.broadcast %476 : vector<8x1xf32> to vector<8x32xf32>
    %478 = arith.mulf %473, %477 : vector<8x32xf32>
    %479 = vector.broadcast %459 : vector<1x32xf32> to vector<8x32xf32>
    %480 = arith.mulf %478, %479 : vector<8x32xf32>
    %481 = vector.broadcast %460 : vector<1x32xf32> to vector<8x32xf32>
    %482 = arith.addf %480, %481 : vector<8x32xf32>
    %483 = vector.extract_strided_slice %482 {offsets = [0, 0], sizes = [1, 32], strides = [1, 1]} : vector<8x32xf32> to vector<1x32xf32>
    %c4 = arith.constant 4 : index
    %c0_152 = arith.constant 0 : index
    %c0_153 = arith.constant 0 : index
    %c0_154 = arith.constant 0 : index
    %484 = vector.load %arg2[%c4, %c0_152, %c0_153, %c0_154] : memref<5x4x32x32xf32, #tpu.memory_space<vmem>>, vector<1x4x32x32xf32>
    %485 = vector.shape_cast %484 : vector<1x4x32x32xf32> to vector<4x32x32xf32>
    %c4_155 = arith.constant 4 : index
    %c0_156 = arith.constant 0 : index
    %c0_157 = arith.constant 0 : index
    %486 = vector.load %arg5[%c4_155, %c0_156, %c0_157] : memref<5x10x128xf32, #tpu.memory_space<vmem>>, vector<1x10x128xf32>
    %487 = vector.shape_cast %486 : vector<1x10x128xf32> to vector<10x128xf32>
    %488 = vector.extract_strided_slice %485 {offsets = [0, 0, 0], sizes = [1, 32, 32], strides = [1, 1, 1]} : vector<4x32x32xf32> to vector<1x32x32xf32>
    %489 = vector.shape_cast %488 : vector<1x32x32xf32> to vector<32x32xf32>
    %cst_158 = arith.constant dense<0.000000e+00> : vector<8x32xf32>
    %490 = tpu.matmul %482, %489, %cst_158 {dimension_numbers = #tpu.dot_dimension_numbers<[1], [0], [0], [1], [0, 0, 1, 1], [], []>} : vector<8x32xf32>, vector<32x32xf32>, vector<8x32xf32> -> vector<8x32xf32>
    %491 = vector.extract_strided_slice %487 {offsets = [0, 0], sizes = [1, 32], strides = [1, 1]} : vector<10x128xf32> to vector<1x32xf32>
    %492 = vector.broadcast %491 : vector<1x32xf32> to vector<8x32xf32>
    %493 = arith.addf %490, %492 : vector<8x32xf32>
    %494 = vector.extract_strided_slice %485 {offsets = [1, 0, 0], sizes = [1, 32, 32], strides = [1, 1, 1]} : vector<4x32x32xf32> to vector<1x32x32xf32>
    %495 = vector.shape_cast %494 : vector<1x32x32xf32> to vector<32x32xf32>
    %cst_159 = arith.constant dense<0.000000e+00> : vector<8x32xf32>
    %496 = tpu.matmul %482, %495, %cst_159 {dimension_numbers = #tpu.dot_dimension_numbers<[1], [0], [0], [1], [0, 0, 1, 1], [], []>} : vector<8x32xf32>, vector<32x32xf32>, vector<8x32xf32> -> vector<8x32xf32>
    %497 = vector.extract_strided_slice %487 {offsets = [1, 0], sizes = [1, 32], strides = [1, 1]} : vector<10x128xf32> to vector<1x32xf32>
    %498 = vector.broadcast %497 : vector<1x32xf32> to vector<8x32xf32>
    %499 = arith.addf %496, %498 : vector<8x32xf32>
    %500 = vector.extract_strided_slice %485 {offsets = [2, 0, 0], sizes = [1, 32, 32], strides = [1, 1, 1]} : vector<4x32x32xf32> to vector<1x32x32xf32>
    %501 = vector.shape_cast %500 : vector<1x32x32xf32> to vector<32x32xf32>
    %cst_160 = arith.constant dense<0.000000e+00> : vector<8x32xf32>
    %502 = tpu.matmul %482, %501, %cst_160 {dimension_numbers = #tpu.dot_dimension_numbers<[1], [0], [0], [1], [0, 0, 1, 1], [], []>} : vector<8x32xf32>, vector<32x32xf32>, vector<8x32xf32> -> vector<8x32xf32>
    %503 = vector.extract_strided_slice %487 {offsets = [2, 0], sizes = [1, 32], strides = [1, 1]} : vector<10x128xf32> to vector<1x32xf32>
    %504 = vector.broadcast %503 : vector<1x32xf32> to vector<8x32xf32>
    %505 = arith.addf %502, %504 : vector<8x32xf32>
    %cst_161 = arith.constant dense<0.000000e+00> : vector<8x8xf32>
    %506 = tpu.matmul %493, %499, %cst_161 {dimension_numbers = #tpu.dot_dimension_numbers<[1], [1], [0], [0], [0, 0, 1, 0], [], []>} : vector<8x32xf32>, vector<8x32xf32>, vector<8x8xf32> -> vector<8x8xf32>
    %507 = vector.broadcast %6 : f32 to vector<8x8xf32>
    %508 = arith.mulf %506, %507 : vector<8x8xf32>
    %cst_162 = arith.constant -1.000000e+09 : f32
    %509 = vector.broadcast %cst_162 : f32 to vector<8x8xf32>
    %510 = arith.select %4, %508, %509 : vector<8x8xi1>, vector<8x8xf32>
    %cst_163 = arith.constant dense<0xFF800000> : vector<8xf32>
    %511 = vector.multi_reduction <maximumf>, %510, %cst_163 [1] : vector<8x8xf32> to vector<8xf32>
    %512 = vector.shape_cast %511 : vector<8xf32> to vector<8x1xf32>
    %513 = vector.broadcast %512 : vector<8x1xf32> to vector<8x8xf32>
    %514 = arith.subf %510, %513 : vector<8x8xf32>
    %515 = math.exp %514 : vector<8x8xf32>
    %cst_164 = arith.constant dense<0.000000e+00> : vector<8xf32>
    %516 = vector.multi_reduction <add>, %515, %cst_164 [1] : vector<8x8xf32> to vector<8xf32>
    %517 = vector.shape_cast %516 : vector<8xf32> to vector<8x1xf32>
    %518 = tpu.reciprocal %517 {approx = true} : vector<8x1xf32> -> vector<8x1xf32>
    %519 = vector.broadcast %518 : vector<8x1xf32> to vector<8x8xf32>
    %520 = arith.mulf %515, %519 : vector<8x8xf32>
    %cst_165 = arith.constant dense<0.000000e+00> : vector<8x32xf32>
    %521 = tpu.matmul %520, %505, %cst_165 {dimension_numbers = #tpu.dot_dimension_numbers<[1], [0], [0], [1], [0, 0, 1, 1], [], []>} : vector<8x8xf32>, vector<8x32xf32>, vector<8x32xf32> -> vector<8x32xf32>
    %522 = vector.extract_strided_slice %485 {offsets = [3, 0, 0], sizes = [1, 32, 32], strides = [1, 1, 1]} : vector<4x32x32xf32> to vector<1x32x32xf32>
    %523 = vector.shape_cast %522 : vector<1x32x32xf32> to vector<32x32xf32>
    %cst_166 = arith.constant dense<0.000000e+00> : vector<8x32xf32>
    %524 = tpu.matmul %521, %523, %cst_166 {dimension_numbers = #tpu.dot_dimension_numbers<[1], [0], [0], [1], [0, 0, 1, 1], [], []>} : vector<8x32xf32>, vector<32x32xf32>, vector<8x32xf32> -> vector<8x32xf32>
    %525 = vector.extract_strided_slice %487 {offsets = [3, 0], sizes = [1, 32], strides = [1, 1]} : vector<10x128xf32> to vector<1x32xf32>
    %526 = vector.broadcast %525 : vector<1x32xf32> to vector<8x32xf32>
    %527 = arith.addf %524, %526 : vector<8x32xf32>
    %528 = arith.addf %482, %527 : vector<8x32xf32>
    %529 = vector.extract_strided_slice %487 {offsets = [4, 0], sizes = [1, 32], strides = [1, 1]} : vector<10x128xf32> to vector<1x32xf32>
    %530 = vector.extract_strided_slice %487 {offsets = [5, 0], sizes = [1, 32], strides = [1, 1]} : vector<10x128xf32> to vector<1x32xf32>
    %cst_167 = arith.constant dense<0.000000e+00> : vector<8xf32>
    %531 = vector.multi_reduction <add>, %528, %cst_167 [1] : vector<8x32xf32> to vector<8xf32>
    %532 = vector.shape_cast %531 : vector<8xf32> to vector<8x1xf32>
    %cst_168 = arith.constant 3.200000e+01 : f32
    %533 = vector.broadcast %cst_168 : f32 to vector<8x1xf32>
    %534 = arith.divf %532, %533 : vector<8x1xf32>
    %535 = vector.broadcast %534 : vector<8x1xf32> to vector<8x32xf32>
    %536 = arith.subf %528, %535 : vector<8x32xf32>
    %537 = arith.mulf %536, %536 : vector<8x32xf32>
    %cst_169 = arith.constant dense<0.000000e+00> : vector<8xf32>
    %538 = vector.multi_reduction <add>, %537, %cst_169 [1] : vector<8x32xf32> to vector<8xf32>
    %539 = vector.shape_cast %538 : vector<8xf32> to vector<8x1xf32>
    %cst_170 = arith.constant 3.200000e+01 : f32
    %540 = vector.broadcast %cst_170 : f32 to vector<8x1xf32>
    %541 = arith.divf %539, %540 : vector<8x1xf32>
    %542 = vector.broadcast %534 : vector<8x1xf32> to vector<8x32xf32>
    %543 = arith.subf %528, %542 : vector<8x32xf32>
    %cst_171 = arith.constant 9.99999996E-13 : f32
    %544 = vector.broadcast %cst_171 : f32 to vector<8x1xf32>
    %545 = arith.addf %541, %544 : vector<8x1xf32>
    %546 = math.rsqrt %545 : vector<8x1xf32>
    %547 = vector.broadcast %546 : vector<8x1xf32> to vector<8x32xf32>
    %548 = arith.mulf %543, %547 : vector<8x32xf32>
    %549 = vector.broadcast %529 : vector<1x32xf32> to vector<8x32xf32>
    %550 = arith.mulf %548, %549 : vector<8x32xf32>
    %551 = vector.broadcast %530 : vector<1x32xf32> to vector<8x32xf32>
    %552 = arith.addf %550, %551 : vector<8x32xf32>
    %c4_172 = arith.constant 4 : index
    %c0_173 = arith.constant 0 : index
    %c0_174 = arith.constant 0 : index
    %553 = vector.load %arg3[%c4_172, %c0_173, %c0_174] : memref<5x32x128xf32, #tpu.memory_space<vmem>>, vector<1x32x128xf32>
    %554 = vector.shape_cast %553 : vector<1x32x128xf32> to vector<32x128xf32>
    %cst_175 = arith.constant dense<0.000000e+00> : vector<8x128xf32>
    %555 = tpu.matmul %552, %554, %cst_175 {dimension_numbers = #tpu.dot_dimension_numbers<[1], [0], [0], [1], [0, 0, 1, 1], [], []>} : vector<8x32xf32>, vector<32x128xf32>, vector<8x128xf32> -> vector<8x128xf32>
    %556 = vector.extract_strided_slice %487 {offsets = [6, 0], sizes = [1, 128], strides = [1, 1]} : vector<10x128xf32> to vector<1x128xf32>
    %557 = vector.broadcast %556 : vector<1x128xf32> to vector<8x128xf32>
    %558 = arith.addf %555, %557 : vector<8x128xf32>
    %559 = arith.mulf %558, %558 : vector<8x128xf32>
    %560 = arith.mulf %558, %559 : vector<8x128xf32>
    %cst_176 = arith.constant 4.471500e-02 : f32
    %561 = vector.broadcast %cst_176 : f32 to vector<8x128xf32>
    %562 = arith.mulf %561, %560 : vector<8x128xf32>
    %563 = arith.addf %558, %562 : vector<8x128xf32>
    %cst_177 = arith.constant 0.797884583 : f32
    %564 = vector.broadcast %cst_177 : f32 to vector<8x128xf32>
    %565 = arith.mulf %564, %563 : vector<8x128xf32>
    %566 = math.tanh %565 : vector<8x128xf32>
    %cst_178 = arith.constant 1.000000e+00 : f32
    %567 = vector.broadcast %cst_178 : f32 to vector<8x128xf32>
    %568 = arith.addf %567, %566 : vector<8x128xf32>
    %cst_179 = arith.constant 5.000000e-01 : f32
    %569 = vector.broadcast %cst_179 : f32 to vector<8x128xf32>
    %570 = arith.mulf %569, %568 : vector<8x128xf32>
    %571 = arith.mulf %558, %570 : vector<8x128xf32>
    %c4_180 = arith.constant 4 : index
    %c0_181 = arith.constant 0 : index
    %c0_182 = arith.constant 0 : index
    %572 = vector.load %arg4[%c4_180, %c0_181, %c0_182] : memref<5x128x32xf32, #tpu.memory_space<vmem>>, vector<1x128x32xf32>
    %573 = vector.shape_cast %572 : vector<1x128x32xf32> to vector<128x32xf32>
    %cst_183 = arith.constant dense<0.000000e+00> : vector<8x32xf32>
    %574 = tpu.matmul %571, %573, %cst_183 {dimension_numbers = #tpu.dot_dimension_numbers<[1], [0], [0], [1], [0, 0, 1, 1], [], []>} : vector<8x128xf32>, vector<128x32xf32>, vector<8x32xf32> -> vector<8x32xf32>
    %575 = vector.extract_strided_slice %487 {offsets = [7, 0], sizes = [1, 32], strides = [1, 1]} : vector<10x128xf32> to vector<1x32xf32>
    %576 = vector.broadcast %575 : vector<1x32xf32> to vector<8x32xf32>
    %577 = arith.addf %574, %576 : vector<8x32xf32>
    %578 = arith.addf %552, %577 : vector<8x32xf32>
    %579 = vector.extract_strided_slice %487 {offsets = [8, 0], sizes = [1, 32], strides = [1, 1]} : vector<10x128xf32> to vector<1x32xf32>
    %580 = vector.extract_strided_slice %487 {offsets = [9, 0], sizes = [1, 32], strides = [1, 1]} : vector<10x128xf32> to vector<1x32xf32>
    %cst_184 = arith.constant dense<0.000000e+00> : vector<8xf32>
    %581 = vector.multi_reduction <add>, %578, %cst_184 [1] : vector<8x32xf32> to vector<8xf32>
    %582 = vector.shape_cast %581 : vector<8xf32> to vector<8x1xf32>
    %cst_185 = arith.constant 3.200000e+01 : f32
    %583 = vector.broadcast %cst_185 : f32 to vector<8x1xf32>
    %584 = arith.divf %582, %583 : vector<8x1xf32>
    %585 = vector.broadcast %584 : vector<8x1xf32> to vector<8x32xf32>
    %586 = arith.subf %578, %585 : vector<8x32xf32>
    %587 = arith.mulf %586, %586 : vector<8x32xf32>
    %cst_186 = arith.constant dense<0.000000e+00> : vector<8xf32>
    %588 = vector.multi_reduction <add>, %587, %cst_186 [1] : vector<8x32xf32> to vector<8xf32>
    %589 = vector.shape_cast %588 : vector<8xf32> to vector<8x1xf32>
    %cst_187 = arith.constant 3.200000e+01 : f32
    %590 = vector.broadcast %cst_187 : f32 to vector<8x1xf32>
    %591 = arith.divf %589, %590 : vector<8x1xf32>
    %592 = vector.broadcast %584 : vector<8x1xf32> to vector<8x32xf32>
    %593 = arith.subf %578, %592 : vector<8x32xf32>
    %cst_188 = arith.constant 9.99999996E-13 : f32
    %594 = vector.broadcast %cst_188 : f32 to vector<8x1xf32>
    %595 = arith.addf %591, %594 : vector<8x1xf32>
    %596 = math.rsqrt %595 : vector<8x1xf32>
    %597 = vector.broadcast %596 : vector<8x1xf32> to vector<8x32xf32>
    %598 = arith.mulf %593, %597 : vector<8x32xf32>
    %599 = vector.broadcast %579 : vector<1x32xf32> to vector<8x32xf32>
    %600 = arith.mulf %598, %599 : vector<8x32xf32>
    %601 = vector.broadcast %580 : vector<1x32xf32> to vector<8x32xf32>
    %602 = arith.addf %600, %601 : vector<8x32xf32>
    %603 = vector.extract_strided_slice %602 {offsets = [0, 0], sizes = [1, 32], strides = [1, 1]} : vector<8x32xf32> to vector<1x32xf32>
    %604 = tpu.concatenate %603, %483 in 0 : vector<1x32xf32>, vector<1x32xf32> -> vector<2x32xf32>
    %c0_189 = arith.constant 0 : index
    %c0_190 = arith.constant 0 : index
    %605 = vector.load %arg6[%c0_189, %c0_190] : memref<32x128xf32, #tpu.memory_space<vmem>>, vector<32x128xf32>
    %cst_191 = arith.constant dense<0.000000e+00> : vector<2x128xf32>
    %606 = tpu.matmul %604, %605, %cst_191 {dimension_numbers = #tpu.dot_dimension_numbers<[1], [0], [0], [1], [0, 0, 1, 1], [], []>} : vector<2x32xf32>, vector<32x128xf32>, vector<2x128xf32> -> vector<2x128xf32>
    %c0_192 = arith.constant 0 : index
    %c0_193 = arith.constant 0 : index
    %607 = vector.load %arg7[%c0_192, %c0_193] : memref<1x128xf32, #tpu.memory_space<vmem>>, vector<1x128xf32>
    %608 = vector.broadcast %607 : vector<1x128xf32> to vector<2x128xf32>
    %609 = arith.addf %606, %608 : vector<2x128xf32>
    %610 = math.tanh %609 : vector<2x128xf32>
    %c0_194 = arith.constant 0 : index
    %c0_195 = arith.constant 0 : index
    %c0_196 = arith.constant 0 : index
    %611 = vector.load %arg8[%c0_194, %c0_195, %c0_196] : memref<1x2x128xf32, #tpu.memory_space<vmem>>, vector<1x2x128xf32>
    %612 = vector.shape_cast %611 : vector<1x2x128xf32> to vector<2x128xf32>
    %613 = vector.shape_cast %610 : vector<2x128xf32> to vector<1x2x128xf32>
    tpu.vector_store %arg8[%c0_194, %c0_195, %c0_196], %613 {strides = array<i32>} : memref<1x2x128xf32, #tpu.memory_space<vmem>>, vector<1x2x128xf32>,
    return
  }
  func.func @transform_0(%arg0: i32) -> (i32, i32, i32) {
    %c0_i32 = arith.constant 0 : i32
    %c0_i32_0 = arith.constant 0 : i32
    %c0_i32_1 = arith.constant 0 : i32
    return %arg0, %c0_i32, %c0_i32_0 : i32, i32, i32
  }
  func.func @transform_1(%arg0: i32) -> (i32, i32, i32, i32) {
    %c0_i32 = arith.constant 0 : i32
    %c0_i32_0 = arith.constant 0 : i32
    %c0_i32_1 = arith.constant 0 : i32
    %c0_i32_2 = arith.constant 0 : i32
    %c0_i32_3 = arith.constant 0 : i32
    return %c0_i32, %c0_i32_0, %c0_i32_1, %c0_i32_2 : i32, i32, i32, i32
  }
  func.func @transform_2(%arg0: i32) -> (i32, i32, i32) {
    %c0_i32 = arith.constant 0 : i32
    %c0_i32_0 = arith.constant 0 : i32
    %c0_i32_1 = arith.constant 0 : i32
    %c0_i32_2 = arith.constant 0 : i32
    return %c0_i32, %c0_i32_0, %c0_i32_1 : i32, i32, i32
  }
  func.func @transform_3(%arg0: i32) -> (i32, i32, i32) {
    %c0_i32 = arith.constant 0 : i32
    %c0_i32_0 = arith.constant 0 : i32
    %c0_i32_1 = arith.constant 0 : i32
    %c0_i32_2 = arith.constant 0 : i32
    return %c0_i32, %c0_i32_0, %c0_i32_1 : i32, i32, i32
  }
  func.func @transform_4(%arg0: i32) -> (i32, i32, i32) {
    %c0_i32 = arith.constant 0 : i32
    %c0_i32_0 = arith.constant 0 : i32
    %c0_i32_1 = arith.constant 0 : i32
    %c0_i32_2 = arith.constant 0 : i32
    return %c0_i32, %c0_i32_0, %c0_i32_1 : i32, i32, i32
  }
  func.func @transform_5(%arg0: i32) -> (i32, i32) {
    %c0_i32 = arith.constant 0 : i32
    %c0_i32_0 = arith.constant 0 : i32
    %c0_i32_1 = arith.constant 0 : i32
    return %c0_i32, %c0_i32_0 : i32, i32
  }
  func.func @transform_6(%arg0: i32) -> (i32, i32) {
    %c0_i32 = arith.constant 0 : i32
    %c0_i32_0 = arith.constant 0 : i32
    %c0_i32_1 = arith.constant 0 : i32
    return %c0_i32, %c0_i32_0 : i32, i32
  }
  func.func @transform_7(%arg0: i32) -> (i32, i32, i32) {
    %c0_i32 = arith.constant 0 : i32
    %c0_i32_0 = arith.constant 0 : i32
    %c0_i32_1 = arith.constant 0 : i32
    return %arg0, %c0_i32, %c0_i32_0 : i32, i32, i32
  }
}

</mosaic_0001>

<bundles_post_ra>
// kernel: tpu_custom_call.1
= control target key start
LH: loop header
LB: loop body
LE: loop exit
PB: predicated region body
PF: predicated region fallthrough
CT: control target
= control target key end

     0   :  { %12 = vsyncpa [#allocation3], 0  ;;  %s6842_s0 = inlined_call_operand.hbm [shape: f32[2,8,32], index: 0, kind: input, shape index: {}]   ;;  %s6843_s1 = inlined_call_operand.vmem [shape: f32[5,4,32,32], index: 1, kind: input, shape index: {}]   ;;  %s6844_s2 = inlined_call_operand.vmem [shape: f32[5,32,128], index: 2, kind: input, shape index: {}]   ;;  %s6845_s3 = inlined_call_operand.vmem [shape: f32[5,128,32], index: 3, kind: input, shape index: {}]   ;;  %s6846_s4 = inlined_call_operand.hbm [shape: f32[5,10,128], index: 4, kind: input, shape index: {}]   ;;  %s6847_s5 = inlined_call_operand.hbm [shape: f32[32,128], index: 5, kind: input, shape index: {}]   ;;  %s6848_s6 = inlined_call_operand.vmem [shape: f32[1,128], index: 6, kind: input, shape index: {}]   ;;  %s6849_s7 = inlined_call_operand.hbm [shape: f32[2,2,128], index: 7, kind: output, shape index: {}]  }
   0x1   :  { %14 = vsyncpa [#allocation3 + $0x1], 0 }
   0x2   :  { %15 = vsyncpa [#allocation6], 0 }
   0x3   :  { %16 = vsyncpa [#allocation4], 0 }
   0x4   :  { %18 = vsyncpa [#allocation4 + $0x1], 0  ;;  %s5644_s24 = smov 0   ;;  %s5646_s25 = smov 0  }
   0x5   :  { %s5648_s26 = smov 0   ;;  %s5650_s27 = smov 0  }
   0x6 LB: > { %s5665_s28 = sadd.s32 4294967295, %s5593_s27   ;;  %s4089_s29 = sadd.s32 4294967294, %s5593_s27   ;;  %s5593_s27 = sphi %s5650_s27, %s6869_s27   ;;  %s5589_s26 = sphi %s5648_s26, %s6868_s26   ;;  %s5585_s25 = sphi %s5646_s25, %s6867_s25   ;;  %s5581_s24 = sphi %s5644_s24, %s6866_s24  }
   0x7   : > { %p44_p0 = scmp.ne.s32.totalorder %s5585_s25, %s5581_s24  ;;  %p6850_p1 = scmp.eq.s32.totalorder %s5665_s28, 0 }
   0x8   : > { %p200_p3 = scmp.eq.s32.totalorder %s4089_s29, 1  ;;  %p4090_p5 = scmp.ge.s32.totalorder %s5593_s27, 1 }
   0x9   : > { %p5674_p4 = por %p6850_p1, %p44_p0  ;;  %p207_p7 = scmp.lt.s32.totalorder %s5593_s27, 3 }
   0xa   : > { %p5679_p6 = por %p200_p3, %p44_p0  ;;  %s5595_s10 = smov [#allocation5]  }
   0xb   : > { %s6853_s30 = scalar_select %p5674_p4, 1, 0 }
   0xc   : > { %s6854_s8 = scalar_select %p5679_p6, 1, 0 }
   0xd   : > { %p5684_p8 = pnand %p4090_p5, %p207_p7  ;;  %s228_s11 = sshll.u32 %s5595_s10, 4  ;;  %s5688_s11 = int_to_ptr.vmem [resolvable:$true] %s228_s11 }
   0xe   : > { %s5596_s13 = smov [#allocation7]   ;;  %s5437_s17 = scalar_lea.hbm %s6846_s4, 1280 }
   0xf   : > { %p5325_p9 = pneg %p5684_p8  ;;  %s241_s14 = sshll.u32 %s5596_s13, 4  ;;  %s5699_s14 = int_to_ptr.vmem [resolvable:$true] %s241_s14 }
  0x10   : > { %p5438_p12 = scmp.ne.s32.totalorder %s6846_s4, %s5437_s17  ;;  %p5444_p5 = scmp.lt.u32.totalorder %s5437_s17, %s6846_s4 }
  0x11   : > { %p5695_p11 = pnand %p5325_p9, %p6850_p1 }
  0x13   : > { %p5439_p13 = pneg %p5695_p11 }
  0x15   : > { %p5440_p0 = pnand %p5439_p13, %p5438_p12 }
  0x17   : > { %p5441_p3 = pneg %p5440_p0 }
  0x19   : > { %p5446_p7 = pnand %p5444_p5, %p5441_p3 }
  0x1b   : > { %5449 = shalt.err (!%p5446_p7)
}
  0x1c   : > { %s5450_s22 = scalar_lea.vmem %s5688_s11, 1280  ;;  %p5458_p2 = scmp.lt.s32.totalorder %s5688_s11, %s5688_s11 }
  0x1d   : > { %p5451_p9 = scmp.ne.s32.totalorder %s5688_s11, %s5450_s22  ;;  %p5459_p12 = scmp.lt.s32.totalorder %s5450_s22, %s5450_s22 }
  0x1f   : > { %p5453_p10 = pnand %p5451_p9, %p5439_p13  ;;  %p5460_p0 = por %p5459_p12, %p5458_p2 }
  0x21   : > { %p5454_p1 = pneg %p5453_p10 }
  0x23   : > { %p5461_p6 = pnand %p5460_p0, %p5454_p1 }
  0x25   : > { %5464 = shalt.err (!%p5461_p6)
}
  0x26   : > { %s5597_s23 = smov 128   ;;  %s5598_s29 = smov 8  }
  0x27   : > { %5328 = dma.hbm_to_vmem [thread:$0]  (!%p5695_p11), %s6846_s4, 1280, %s5688_s11, [#allocation6], %s5597_s23, %s5597_s23, %s5598_s29  }
  0x28   : > { %s5465_s17 = scalar_lea.hbm %s6847_s5, 512 }
  0x29   : > { %p5466_p2 = scmp.ne.s32.totalorder %s6847_s5, %s5465_s17  ;;  %p5472_p10 = scmp.lt.u32.totalorder %s5465_s17, %s6847_s5 }
  0x2b   : > { %p5468_p1 = pnand %p5466_p2, %p5439_p13 }
  0x2d   : > { %p5469_p6 = pneg %p5468_p1 }
  0x2f   : > { %p5474_p3 = pnand %p5472_p10, %p5469_p6 }
  0x31   : > { %5477 = shalt.err (!%p5474_p3)
}
  0x32   : > { %s5478_s11 = scalar_lea.vmem %s5699_s14, 512  ;;  %p5486_p12 = scmp.lt.s32.totalorder %s5699_s14, %s5699_s14 }
  0x33   : > { %p5479_p5 = scmp.ne.s32.totalorder %s5699_s14, %s5478_s11  ;;  %p5487_p0 = scmp.lt.s32.totalorder %s5478_s11, %s5478_s11 }
  0x35   : > { %p5481_p7 = pnand %p5479_p5, %p5439_p13  ;;  %p5488_p2 = por %p5487_p0, %p5486_p12 }
  0x37   : > { %p5482_p9 = pneg %p5481_p7 }
  0x39   : > { %p5489_p1 = pnand %p5488_p2, %p5482_p9 }
  0x3b   : > { %5492 = shalt.err (!%p5489_p1)
}
  0x3c   : > { %5331 = dma.hbm_to_vmem [thread:$0]  (!%p5695_p11), %s6847_s5, 512, %s5699_s14, [#allocation6], %s5597_s23, %s5597_s23, %s5598_s29  }
  0x3d   : > { %s5754_s13 = sadd.s32 1, %s5593_s27   ;;  %s31_s12 = sadd.s32 1, %s5589_s26 }
  0x3e   : > { %s28_s15 = ssub.s32 %s5593_s27, %s5754_s13  ;;  %p38_p13 = scmp.ne.s32.totalorder %s5589_s26, %s5585_s25 }
  0x3f   : > { %p29_p6 = scmp.eq.s32.totalorder %s28_s15, 0  ;;  %p39_p10 = scmp.eq.s32.totalorder %s5593_s27, 0 }
  0x40   : > { %p6857_p3 = scmp.eq.s32.totalorder %s5665_s28, 1  ;;  %p5342_p7 = scmp.lt.s32.totalorder %s5593_s27, 2 }
  0x41   : > { %s5770_s17 = scalar_select %p29_p6, %s5589_s26, %s31_s12  }
  0x42   : > { %p5764_p5 = por %p6857_p3, %p38_p13  ;;  %p40_p9 = por %p39_p10, %p38_p13 }
  0x43   : > { %s258_s18 = sand.u32 1, %s5589_s26   ;;  %s4095_s14 = sshll.u32 %s5593_s27, 7 }
  0x44   : > { %s6858_s16 = scalar_select %p5764_p5, 1, 0 }
  0x45   : > { %s4094_s19 = sshll.u32 %s258_s18, 3  ;;  %s5777_s20 = scalar_lea.hbm %s6842_s0, %s4095_s14 }
  0x46   : > { %s262_s21 = scalar_lea.vmem [#allocation2], %s4094_s19  ;;  %p5781_p11 = pnand %p5342_p7, %p40_p9 }
  0x47   : > { %s269_s11 = sshll.u32 %s262_s21, 4  ;;  %s259_s10 = scalar_lea.sflag [#allocation3], %s258_s18  ;;  %s5779_s11 = int_to_ptr.vmem [resolvable:$true] %s269_s11 }
  0x48   : > { %s5493_s12 = scalar_lea.hbm %s5777_s20, 128  ;;  %p5495_p0 = pneg %p5781_p11 }
  0x49   : > { %p5494_p12 = scmp.ne.s32.totalorder %s5777_s20, %s5493_s12  ;;  %s5498_s14 = scalar_lea.hbm %s6842_s0, 256 }
  0x4a   : > { %p5499_p13 = scmp.lt.u32.totalorder %s5777_s20, %s6842_s0  ;;  %p5500_p6 = scmp.lt.u32.totalorder %s5498_s14, %s5493_s12 }
  0x4b   : > { %p5496_p2 = pnand %p5495_p0, %p5494_p12  ;;  %p5502_p3 = scmp.lt.u32.totalorder %s5493_s12, %s5777_s20 }
  0x4c   : > { %p5501_p10 = por %p5500_p6, %p5499_p13 }
  0x4d   : > { %p5497_p1 = pneg %p5496_p2 }
  0x4e   : > { %p5503_p7 = por %p5502_p3, %p5501_p10 }
  0x50   : > { %p5504_p9 = pnand %p5503_p7, %p5497_p1 }
  0x52   : > { %5507 = shalt.err (!%p5504_p9)
}
  0x53   : > { %s5508_s18 = scalar_lea.vmem %s5779_s11, 128  ;;  %s5599_s21 = smov [#allocation2]  }
  0x54   : > { %p5509_p12 = scmp.ne.s32.totalorder %s5779_s11, %s5508_s18  ;;  %s5513_s15 = sshll.u32 %s5599_s21, 4  ;;  %s5514_s15 = int_to_ptr.vmem [resolvable:$false] %s5513_s15 }
  0x55   : > { %s5515_s19 = scalar_lea.vmem %s5514_s15, 256  ;;  %p5516_p4 = scmp.lt.s32.totalorder %s5779_s11, %s5514_s15 }
  0x56   : > { %p5511_p2 = pnand %p5509_p12, %p5495_p0  ;;  %p5517_p13 = scmp.lt.s32.totalorder %s5515_s19, %s5508_s18 }
  0x58   : > { %p5512_p5 = pneg %p5511_p2  ;;  %p5518_p6 = por %p5517_p13, %p5516_p4 }
  0x5a   : > { %p5519_p10 = pnand %p5518_p6, %p5512_p5 }
  0x5c   : > { %5522 = shalt.err (!%p5519_p10)
}
  0x5d   : > { %5335 = dma.hbm_to_vmem [thread:$0]  (!%p5781_p11), %s5777_s20, 128, %s5779_s11, %s259_s10  }
  0x5e   : > { %278 = sbr.rel (%p5684_p8) target bundleno = 11680 (0x2da0), region = 48  ;;  %s5813_s12 = sand.u32 (!%p5684_p8), 1, %s5585_s25  }
  0x5f   : > { %s4097_s14 = sshll.u32 (!%p5684_p8), %s5813_s12, 3  ;;  %s281_s23 = scalar_lea.sflag (!%p5684_p8), [#allocation3], %s5813_s12 }
  0x60   : > { %s284_s29 = scalar_lea.vmem (!%p5684_p8), [#allocation2], %s4097_s14  ;;  %p6860_p4 = scmp.ne.s32.totalorder (!%p5684_p8), %s6853_s30, 0 }
  0x65   : > { %5568 = dma.done.wait (%p6860_p4), %s281_s23, 128  }
  0x66   : > { %5570 = vsyncadd (%p6860_p4), %s281_s23, 4294967168  ;;  %p6861_p5 = scmp.eq.s32.totalorder %s5665_s28, 0 }
  0x68   : > { %5572 = dma.done.wait (%p6861_p5), [#allocation6], 1792   ;;  %p6862_p11 = pmov %p6861_p5 }
  0x69   : > { %v5600_v0 = vmov 0.0|0.0   ;;  %vm5601_vm0 = vmmov 0   ;;  %v5602_v1 = vmov 0.0   ;;  %v327_v2 = vld [vmem:[%s6843_s1] sm:$0xff]  ;;  %v328_v3 = vld [vmem:[%s6843_s1 + $0x8] sm:$0xff]  ;;  %v329_v4 = vld [vmem:[%s6843_s1 + $0x10] sm:$0xff]  ;;  %v324_v15 = vlaneseq }
  0x6a   : > { %5574 = vsyncadd (%p6862_p11), [#allocation6], 4294965504  ;;  %5037 = vmatprep.subr.bf16.mxu1 %v5600_v0  ;;  %4534 = vmatprep.mubr.msk.f32.mxu1 %vm5601_vm0, %v5602_v1  ;;  %v5038_v5 = vpack.c.bf16 %v328_v3, %v327_v2  ;;  %v330_v6 = vld [vmem:[%s6843_s1 + $0x18] sm:$0xff]  ;;  %v331_v8 = vld [vmem:[%s6843_s1 + $0x20] sm:$0xff]  ;;  %vm349_vm1 = vcmask 261120   ;;  %vm649_vm3 = vcmask 64512  }
  0x6b   : > { %5049 = vmatprep.subr.bf16.mxu0 %v5600_v0  ;;  %4556 = vmatprep.mubr.msk.f32.mxu0 %vm5601_vm0, %v5602_v1  ;;  %v5041_v7 = vpack.c.bf16 %v330_v6, %v329_v4  ;;  %v332_v9 = vld [vmem:[%s6843_s1 + $0x28] sm:$0xff]  ;;  %v333_v12 = vld [vmem:[%s6843_s1 + $0x30] sm:$0xff]  ;;  %v334_v13 = vld [vmem:[%s6843_s1 + $0x38] sm:$0xff]  ;;  %v5869_v16 = vshrl.u32 %v324_v15, 7  ;;  %v5906_v34 = vand.u32 127, %v324_v15  ;;  %vm3898_vm4 = vcmask 1040384  }
  0x6c   : > { %5039 = vmatpush3.bf16.msra.mxu1 %v5038_v5  ;;  %v5850_v10 = vld [vmem:[%s284_s29] sm:$0xff]  ;;  %v5044_v11 = vpack.c.bf16 %v332_v9, %v331_v8  ;;  %v5047_v14 = vpack.c.bf16 %v334_v13, %v333_v12  ;;  %v5874_v20 = vld [vmem:[#allocation5] sm:$0xff]  ;;  %v338_v32 = vld [vmem:[%s6843_s1 + $0x58] sm:$0xff]  ;;  %s4100_s23 = sshll.u32 %s5813_s12, 1  ;;  %s4288_s30 = sshll.u32 %s5665_s28, 5 }
  0x6d   : > { %5040 = vmatprep.subr.bf16.mxu1 %v5600_v0  ;;  %v5872_v19 = vsub.s32 1, %v5869_v16  ;;  %v5877_v21 = vsub.s32 0, %v5869_v16  ;;  %v335_v28 = vld [vmem:[%s6843_s1 + $0x40] sm:$0xff]  ;;  %v336_v29 = vld [vmem:[%s6843_s1 + $0x48] sm:$0xff]  ;;  %v337_v30 = vld [vmem:[%s6843_s1 + $0x50] sm:$0xff]  ;;  %vm326_vm2 = vcmp.lt.s32.totalorder %v5906_v34, 6  ;;  %s6798_s22 = scalar_lea.hbm %s6849_s7, %s4288_s30 }
  0x6e   : > { %v5050_v31 = vpack.c.bf16 %v336_v29, %v335_v28  ;;  %v5053_v33 = vpack.c.bf16 %v338_v32, %v337_v30  ;;  %v5914_v45 = vsub.s32 2, %v5869_v16  ;;  %v339_v50 = vld [vmem:[%s6843_s1 + $0x60] sm:$0xff]  ;;  %v340_v51 = vld [vmem:[%s6843_s1 + $0x68] sm:$0xff]  ;;  %v341_v52 = vld [vmem:[%s6843_s1 + $0x70] sm:$0xff]  ;;  %v5940_v61 = vsub.s32 3, %v5869_v16  ;;  %s322_s9 = scalar_lea.vmem [#allocation8], %s4100_s23 }
  0x6f   : > { %v426_v22 = vrot.slane %v5874_v20, %v5872_v19  ;;  %v348_v23 = vrot.slane %v5874_v20, %v5877_v21  ;;  %v5056_v53 = vpack.c.bf16 %v340_v51, %v339_v50  ;;  %v342_v54 = vld [vmem:[%s6843_s1 + $0x78] sm:$0xff]  ;;  %v836_v12 = vld [vmem:[%s6844_s2] sm:$0xff]  ;;  %v837_v13 = vld [vmem:[%s6844_s2 + $0x8] sm:$0xff]  ;;  %v5972_v28 = vsub.s32 5, %v5869_v16  ;;  %s4000_s20 = sshll.u32 %s322_s9, 4  ;;  %s3987_s10 = scalar_lea.sflag [#allocation4], %s5813_s12  ;;  %s6800_s20 = int_to_ptr.vmem [resolvable:$true] %s4000_s20 }
  0x70   : > { %5042 = vmatpush3.bf16.msra.mxu1 %v5041_v7  ;;  %5051 = vmatpush3.bf16.msra.mxu0 %v5050_v31  ;;  %v500_v46 = vrot.slane %v5874_v20, %v5914_v45  ;;  %v5059_v55 = vpack.c.bf16 %v342_v54, %v341_v52  ;;  %v737_v62 = vrot.slane %v5874_v20, %v5940_v61  ;;  %v839_v15 = vld [vmem:[%s6844_s2 + $0x18] sm:$0xff]  ;;  %v938_v52 = vld [vmem:[%s6845_s3 + $0x60] sm:$0xff]  ;;  %v4254_v34 = vld [vmem:[%s6843_s1 + $0x268] sm:$0xff]  ;;  %s5523_s18 = scalar_lea.vmem %s6800_s20, 32  ;;  %p6863_p0 = scmp.ne.s32.totalorder %s6858_s16, 0 }
  0x71   : > { %5043 = vmatprep.subr.bf16.mxu1 %v5600_v0  ;;  %5052 = vmatprep.subr.bf16.mxu0 %v5600_v0  ;;  %v834_v32 = vrot.slane %v5874_v20, %v5972_v28  ;;  %v937_v50 = vld [vmem:[%s6845_s3 + $0x58] sm:$0xff]  ;;  %p5524_p8 = scmp.ne.s32.totalorder %s6800_s20, %s5523_s18  ;;  %s5603_s28 = smov [#allocation8]  }
  0x72   : > { %s5527_s21 = sshll.u32 %s5603_s28, 4  ;;  %s5528_s21 = int_to_ptr.vmem [resolvable:$false] %s5527_s21 }
  0x73   : > { %4535 = vmatmul.mubr.msk.f32.vlgmr.msra.gmra.mrb[0].mxu1 %vm349_vm1, %v5850_v10  ;;  %p5525_p1 = pnand %p5524_p8, %p6863_p0  ;;  %s5529_s15 = scalar_lea.vmem %s5528_s21, 64 }
  0x74   : > { %5045 = vmatpush3.bf16.msra.mxu1 %v5044_v11  ;;  %4545 = vmatprep.mubr.msk.f32.mxu1 %vm5601_vm0, %v5602_v1  ;;  %p5530_p7 = scmp.lt.s32.totalorder %s6800_s20, %s5528_s21  ;;  %p5531_p9 = scmp.lt.s32.totalorder %s5529_s15, %s5523_s18 }
  0x75   : > { %5046 = vmatprep.subr.bf16.mxu1 %v5600_v0  ;;  %5054 = vmatpush3.bf16.msra.mxu0 %v5053_v33  ;;  %p5526_p3 = pneg %p5525_p1 }
  0x76   : > { %5055 = vmatprep.subr.bf16.mxu0 %v5600_v0  ;;  %p5532_p12 = por %p5531_p9, %p5530_p7 }
  0x78   : > { %5048 = vmatpush3.bf16.msra.mxu1 %v5047_v14  ;;  %4557 = vmatmul.mubr.msk.f32.vlgmr.msra.gmra.mrb[0].mxu0 %vm349_vm1, %v5850_v10  ;;  %v5062_v14 = vpack.c.bf16 %v837_v13, %v836_v12  ;;  %v6038_v12 = vsub.s32 7, %v5869_v16  ;;  %p5533_p2 = pnand %p5532_p12, %p5526_p3 }
  0x79   : > { %4559 = vmatprep.subr.mxu1 %v5602_v1  ;;  %4577 = vmatprep.mubr.msk.f32.mxu0 %vm5601_vm0, %v5602_v1 }
  0x7a   : > { %5057 = vmatpush3.bf16.msra.mxu0 %v5056_v53  ;;  %v939_v53 = vld [vmem:[%s6845_s3 + $0x68] sm:$0xff]  ;;  %v945_v13 = vrot.slane %v5874_v20, %v6038_v12 }
  0x7b   : > { %4546 = vmatmul.mubr.msk.f32.vlgmr.msra.gmra.mrb[2].mxu1 %vm349_vm1, %v5850_v10  ;;  %5058 = vmatprep.subr.bf16.mxu0 %v5600_v0  ;;  %v5086_v54 = vpack.c.bf16 %v939_v53, %v938_v52  ;;  %v4118_v52 = vld [vmem:[%s6843_s1 + $0xc8] sm:$0xff] }
  0x7c   : > { %4561 = vmatprep.mubr.msk.f32.mxu1 %vm5601_vm0, %v5602_v1 }
  0x7e   : > { %5060 = vmatpush3.bf16.msra.mxu0 %v5059_v55  ;;  %v940_v55 = vld [vmem:[%s6845_s3 + $0x70] sm:$0xff] }
  0x7f   : > { %5067 = vmatprep.subr.bf16.mxu0 %v5600_v0 }
 0x146   : > { %v419_v17 = vpop.f32.mrb[0].mxu1 }
 0x147   : > { %v4536_v18 = vpop.f32.mrb[1].mxu1  ;;  %v420_v27 = vadd.f32 %v419_v17, %v348_v23 }
 0x148   : > { %v926_v18 = vld [vmem:[%s6845_s3] sm:$0xff] }
 0x14b   : > { %v567_v47 = vpop.f32.mrb[0].mxu0 }
 0x14c   : > { %v4558_v48 = vpop.f32.mrb[1].mxu0  ;;  %v568_v49 = vadd.f32 %v567_v47, %v500_v46  ;;  %v934_v46 = vld [vmem:[%s6845_s3 + $0x40] sm:$0xff]  ;;  %v935_v47 = vld [vmem:[%s6845_s3 + $0x48] sm:$0xff] }
 0x14d   : > { %v5080_v48 = vpack.c.bf16 %v935_v47, %v934_v46 }
 0x14e   : > { %v493_v24 = vpop.f32.mrb[2].mxu1 }
 0x14f   : > { %v494_v25 = vadd.f32 %v493_v24, %v426_v22  ;;  %v4547_v26 = vpop.f32.mrb[3].mxu1  ;;  %v927_v22 = vld [vmem:[%s6845_s3 + $0x8] sm:$0xff] }
 0x150   : > { %v5068_v23 = vpack.c.bf16 %v927_v22, %v926_v18 }
 0x151   : > { %4560 = vmatpush3.xpose.msk.msra.mxu1 %vm349_vm1, %v494_v25 }
 0x152   : > { %4564 = vmatprep.subr.mxu1 %v5602_v1 }
 0x154   : > { %4562 = vmatmul.mubr.msk.f32.vlgmr.msra.gmra.mrb[4].mxu1 %vm349_vm1, %v420_v27  ;;  %v5969_v27 = vsub.s32 4, %v5869_v16 }
 0x155   : > { %4566 = vmatprep.mubr.msk.f32.mxu1 %vm5601_vm0, %v5602_v1  ;;  %4565 = vmatpush3.msra.mxu1 %v568_v49  ;;  %v936_v49 = vld [vmem:[%s6845_s3 + $0x50] sm:$0xff] }
 0x156   : > { %5061 = vmatprep.subr.bf16.mxu1 %v5600_v0  ;;  %v829_v29 = vrot.slane %v5874_v20, %v5969_v27  ;;  %v5083_v51 = vpack.c.bf16 %v937_v50, %v936_v49  ;;  %v4116_v49 = vld [vmem:[%s6843_s1 + $0xb8] sm:$0xff] }
 0x227   : > { %v643_v35 = vpop.f32.mrb[4].mxu1 }
 0x228   : > { %v647_v36 = vmul.f32 0.17677669, %v643_v35  ;;  %v4563_v37 = vpop.f32.mrb[5].mxu1 }
 0x229   : > { %v929_v37 = vld [vmem:[%s6845_s3 + $0x18] sm:$0xff] }
 0x22a   : > { %v648_v38 = vsel %vm326_vm2, %v647_v36, -1e+09  ;;  %v928_v36 = vld [vmem:[%s6845_s3 + $0x10] sm:$0xff] }
 0x22b   : > { %v650_v39 = vsel %vm649_vm3, %v648_v38, -inf }
 0x22c   : > { %651 = vmax.xlane.f32.xlu0 %v650_v39  ;;  %v930_v39 = vld [vmem:[%s6845_s3 + $0x20] sm:$0xff] }
 0x2b9   : > { %v652_v40 = vpop.xlane.xlu0 %651 }
 0x2ba   : > { %v653_v41 = vsub.f32 %v648_v38, %v652_v40  ;;  %v5071_v38 = vpack.c.bf16 %v929_v37, %v928_v36  ;;  %v931_v40 = vld [vmem:[%s6845_s3 + $0x28] sm:$0xff]  ;;  %v344_v37 = vld [vmem:[#allocation5 + $0x8] sm:$0x3] }
 0x2bc   : > { %v654_v42 = vmul.f32 1.442695, %v653_v41  ;;  %v5074_v41 = vpack.c.bf16 %v931_v40, %v930_v39 }
 0x2be   : > { %5385 = vpow2.f32 %v654_v42  ;;  %v932_v42 = vld [vmem:[%s6845_s3 + $0x30] sm:$0xff] }
 0x2c8   : > { %v5386_v43 = vpop.eup %5385 }
 0x2c9   : > { %v656_v44 = vsel %vm649_vm3, %v5386_v43, 0.0 }
 0x2ca   : > { %657 = vadd.xlane.f32.xlu0 %v656_v44 }
 0x357   : > { %v658_v56 = vpop.xlane.xlu0 %657 }
 0x358   : > { %5387 = vrcp.f32 %v658_v56  ;;  %v941_v56 = vld [vmem:[%s6845_s3 + $0x78] sm:$0xff] }
 0x362   : > { %v5388_v57 = vpop.eup %5387 }
 0x363   : > { %v660_v58 = vmul.f32 %v5388_v57, %v5386_v43  ;;  %v933_v43 = vld [vmem:[%s6845_s3 + $0x38] sm:$0xff]  ;;  %v5089_v57 = vpack.c.bf16 %v941_v56, %v940_v55 }
 0x364   : > { %v5077_v44 = vpack.c.bf16 %v933_v43, %v932_v42  ;;  %v4113_v42 = vld [vmem:[%s6843_s1 + $0xa0] sm:$0xff]  ;;  %v4114_v43 = vld [vmem:[%s6843_s1 + $0xa8] sm:$0xff]  ;;  %v4120_v55 = vld [vmem:[%s6843_s1 + $0xd8] sm:$0xff] }
 0x365   : > { %4567 = vmatmul.mubr.msk.f32.vlgmr.msra.gmra.mrb[6].mxu1 %vm649_vm3, %v660_v58  ;;  %v6031_v58 = vsub.s32 6, %v5869_v16  ;;  %v4109_v16 = vld [vmem:[%s6843_s1 + $0x80] sm:$0xff]  ;;  %v5098_v46 = vpack.c.bf16 %v4114_v43, %v4113_v42 }
 0x366   : > { %4588 = vmatprep.mubr.msk.f32.mxu1 %vm5601_vm0, %v5602_v1  ;;  %5063 = vmatpush3.bf16.msra.mxu1 %v5062_v14 }
 0x367   : > { %5064 = vmatprep.subr.bf16.mxu1 %v5600_v0 }
 0x438   : > { %v730_v59 = vpop.f32.mrb[6].mxu1 }
 0x439   : > { %v4568_v60 = vpop.f32.mrb[7].mxu1  ;;  %4578 = vmatmul.mubr.msk.f32.vlgmr.msra.gmra.mrb[2].mxu0 %vm349_vm1, %v730_v59  ;;  %v843_v59 = vrot.slane %v5874_v20, %v6031_v58  ;;  %v4110_v20 = vld [vmem:[%s6843_s1 + $0x88] sm:$0xff] }
 0x43a   : > { %4623 = vmatprep.mubr.msk.f32.mxu0 %vm5601_vm0, %v5602_v1  ;;  %5069 = vmatpush3.bf16.msra.mxu0 %v5068_v23 }
 0x43b   : > { %5070 = vmatprep.subr.bf16.mxu0 %v5600_v0 }
 0x43e   : > { %5072 = vmatpush3.bf16.msra.mxu0 %v5071_v38  ;;  %v1033_v38 = vrot.slane %v344_v37, %v5877_v21 }
 0x43f   : > { %5073 = vmatprep.subr.bf16.mxu0 %v5600_v0 }
 0x442   : > { %5075 = vmatpush3.bf16.msra.mxu0 %v5074_v41  ;;  %v1038_v41 = vrot.slane %v344_v37, %v5872_v19 }
 0x443   : > { %5076 = vmatprep.subr.bf16.mxu0 %v5600_v0 }
 0x446   : > { %5078 = vmatpush3.bf16.msra.mxu0 %v5077_v44 }
 0x447   : > { %5079 = vmatprep.subr.bf16.mxu0 %v5600_v0 }
 0x44a   : > { %5081 = vmatpush3.bf16.msra.mxu0 %v5080_v48  ;;  %v4115_v48 = vld [vmem:[%s6843_s1 + $0xb0] sm:$0xff] }
 0x44b   : > { %5082 = vmatprep.subr.bf16.mxu0 %v5600_v0  ;;  %v5101_v50 = vpack.c.bf16 %v4116_v49, %v4115_v48 }
 0x44e   : > { %5084 = vmatpush3.bf16.msra.mxu0 %v5083_v51  ;;  %v4117_v51 = vld [vmem:[%s6843_s1 + $0xc0] sm:$0xff] }
 0x44f   : > { %5085 = vmatprep.subr.bf16.mxu0 %v5600_v0  ;;  %v5104_v53 = vpack.c.bf16 %v4118_v52, %v4117_v51  ;;  %v4133_v51 = vld [vmem:[%s6844_s2 + $0x28] sm:$0xff] }
 0x452   : > { %5087 = vmatpush3.bf16.msra.mxu0 %v5086_v54  ;;  %v4119_v54 = vld [vmem:[%s6843_s1 + $0xd0] sm:$0xff] }
 0x453   : > { %5088 = vmatprep.subr.bf16.mxu0 %v5600_v0  ;;  %v5107_v56 = vpack.c.bf16 %v4120_v55, %v4119_v54  ;;  %v4137_v55 = vld [vmem:[%s6845_s3 + $0x80] sm:$0xff] }
 0x456   : > { %5090 = vmatpush3.bf16.msra.mxu0 %v5089_v57 }
 0x457   : > { %5109 = vmatprep.subr.bf16.mxu0 %v5600_v0 }
 0x50c   : > { %v807_v63 = vpop.f32.mrb[2].mxu0 }
 0x50d   : > { %v808_v2 = vadd.f32 %v807_v63, %v737_v62  ;;  %v4579_v3 = vpop.f32.mrb[3].mxu0 }
 0x50f   : > { %v811_v4 = vadd.f32 %v808_v2, %v5850_v10  ;;  %v838_v10 = vld [vmem:[%s6844_s2 + $0x10] sm:$0xff] }
 0x510   : > { %v5065_v17 = vpack.c.bf16 %v839_v15, %v838_v10 }
 0x511   : > { %v812_v5 = vsel %vm349_vm1, %v811_v4, 0.0 }
 0x512   : > { %813 = vadd.xlane.f32.xlu1 %v812_v5  ;;  %5066 = vmatpush3.bf16.msra.mxu1 %v5065_v17 }
 0x513   : > { %5091 = vmatprep.subr.bf16.mxu1 %v5600_v0 }
 0x59f   : > { %v814_v6 = vpop.xlane.xlu1 %813 }
 0x5a0   : > { %v816_v7 = vmul.f32 0.03125, %v814_v6 }
 0x5a2   : > { %v817_v8 = vsub.f32 %v811_v4, %v816_v7 }
 0x5a4   : > { %v818_v9 = vmul.f32 %v817_v8, %v817_v8 }
 0x5a6   : > { %v819_v11 = vsel %vm349_vm1, %v818_v9, 0.0 }
 0x5a7   : > { %820 = vadd.xlane.f32.xlu1 %v819_v11 }
 0x634   : > { %v821_v24 = vpop.xlane.xlu1 %820 }
 0x635   : > { %v822_v25 = vmul.f32 0.03125, %v821_v24 }
 0x637   : > { %v823_v26 = vadd.f32 1e-12, %v822_v25 }
 0x639   : > { %5389 = vrsqrt.f32 %v823_v26 }
 0x643   : > { %v5390_v30 = vpop.eup %5389 }
 0x644   : > { %v825_v31 = vmul.f32 %v5390_v30, %v817_v8  ;;  %v4111_v30 = vld [vmem:[%s6843_s1 + $0x90] sm:$0xff] }
 0x646   : > { %v830_v33 = vmul.f32 %v829_v29, %v825_v31  ;;  %v5092_v29 = vpack.c.bf16 %v4110_v20, %v4109_v16  ;;  %v4112_v31 = vld [vmem:[%s6843_s1 + $0x98] sm:$0xff]  ;;  %v4123_v16 = vld [vmem:[%s6843_s1 + $0xf0] sm:$0xff] }
 0x648   : > { %v835_v35 = vadd.f32 %v834_v32, %v830_v33  ;;  %v5095_v32 = vpack.c.bf16 %v4112_v31, %v4111_v30 }
 0x64a   : > { %4589 = vmatmul.mubr.msk.f32.vlgmr.msra.gmra.mrb[8].mxu1 %vm349_vm1, %v835_v35 }
 0x64b   : > { %4634 = vmatprep.mubr.msk.f32.mxu1 %vm5601_vm0, %v5602_v1  ;;  %5093 = vmatpush3.bf16.msra.mxu1 %v5092_v29  ;;  %v4124_v29 = vld [vmem:[%s6843_s1 + $0xf8] sm:$0xff] }
 0x64c   : > { %5094 = vmatprep.subr.bf16.mxu1 %v5600_v0  ;;  %v5113_v30 = vpack.c.bf16 %v4124_v29, %v4123_v16  ;;  %v4150_v29 = vld [vmem:[%s6845_s3 + $0xe8] sm:$0xff] }
 0x64f   : > { %5096 = vmatpush3.bf16.msra.mxu1 %v5095_v32 }
 0x650   : > { %5097 = vmatprep.subr.bf16.mxu1 %v5600_v0 }
 0x71d   : > { %v913_v60 = vpop.f32.mrb[8].mxu1 }
 0x71e   : > { %v914_v62 = vadd.f32 %v913_v60, %v843_v59  ;;  %v4590_v63 = vpop.f32.mrb[9].mxu1  ;;  %v6102_v60 = vld [vmem:[#allocation5 + $0x10] sm:$0xff] }
 0x71f   : > { %v1063_v63 = vrot.slane %v6102_v60, %v5877_v21  ;;  %v1450_v37 = vrot.slane %v6102_v60, %v5940_v61 }
 0x720   : > { %v917_v2 = vmul.f32 %v914_v62, %v914_v62 }
 0x722   : > { %v918_v3 = vmul.f32 %v917_v2, %v914_v62 }
 0x724   : > { %v919_v4 = vmul.f32 0.044715, %v918_v3 }
 0x726   : > { %v920_v5 = vadd.f32 %v919_v4, %v914_v62 }
 0x728   : > { %v921_v6 = vmul.f32 0.7978846, %v920_v5 }
 0x72a   : > { %5391 = vtanh.f32 %v921_v6  ;;  %v1214_v6 = vrot.slane %v6102_v60, %v5914_v45 }
 0x734   : > { %v5392_v7 = vpop.eup %5391 }
 0x735   : > { %v923_v8 = vadd.f32 1.0, %v5392_v7 }
 0x737   : > { %v924_v9 = vmul.f32 0.5, %v923_v8 }
 0x739   : > { %v925_v11 = vmul.f32 %v924_v9, %v914_v62  ;;  %v1140_v62 = vrot.slane %v6102_v60, %v5872_v19 }
 0x73b   : > { %4624 = vmatmul.mubr.f32.vlgmr.msra.gmra.mrb[4].mxu0 %v925_v11 }
 0x73c   : > { %4677 = vmatprep.mubr.msk.f32.mxu0 %vm5601_vm0, %v5602_v1 }
 0x80e   : > { %v1012_v14 = vpop.f32.mrb[4].mxu0 }
 0x80f   : > { %v1013_v10 = vadd.f32 %v1012_v14, %v945_v13  ;;  %v4625_v15 = vpop.f32.mrb[5].mxu0 }
 0x811   : > { %v1016_v17 = vadd.f32 %v1013_v10, %v835_v35 }
 0x813   : > { %v1017_v18 = vsel %vm349_vm1, %v1016_v17, 0.0 }
 0x814   : > { %1018 = vadd.xlane.f32.xlu0 %v1017_v18 }
 0x8a1   : > { %v1019_v22 = vpop.xlane.xlu0 %1018 }
 0x8a2   : > { %v1020_v23 = vmul.f32 0.03125, %v1019_v22 }
 0x8a4   : > { %v1021_v24 = vsub.f32 %v1016_v17, %v1020_v23 }
 0x8a6   : > { %v1022_v25 = vmul.f32 %v1021_v24, %v1021_v24 }
 0x8a8   : > { %v1023_v26 = vsel %vm349_vm1, %v1022_v25, 0.0  ;;  %v4121_v25 = vld [vmem:[%s6843_s1 + $0xe0] sm:$0xff] }
 0x8a9   : > { %1024 = vadd.xlane.f32.xlu1 %v1023_v26  ;;  %v4122_v26 = vld [vmem:[%s6843_s1 + $0xe8] sm:$0xff] }
 0x8aa   : > { %v5110_v20 = vpack.c.bf16 %v4122_v26, %v4121_v25  ;;  %v4147_v25 = vld [vmem:[%s6845_s3 + $0xd0] sm:$0xff]  ;;  %v4148_v26 = vld [vmem:[%s6845_s3 + $0xd8] sm:$0xff] }
 0x8ab   : > { %v5137_v16 = vpack.c.bf16 %v4148_v26, %v4147_v25  ;;  %v4160_v25 = vld [vmem:[%s6843_s1 + $0x138] sm:$0xff] }
 0x8ac   : > { %5111 = vmatpush3.bf16.msra.mxu0 %v5110_v20  ;;  %v4149_v20 = vld [vmem:[%s6845_s3 + $0xe0] sm:$0xff] }
 0x8ad   : > { %5112 = vmatprep.subr.bf16.mxu0 %v5600_v0 }
 0x8b0   : > { %5114 = vmatpush3.bf16.msra.mxu0 %v5113_v30  ;;  %v5140_v30 = vpack.c.bf16 %v4150_v29, %v4149_v20  ;;  %v4162_v20 = vld [vmem:[%s6843_s1 + $0x148] sm:$0xff] }
 0x8b1   : > { %5121 = vmatprep.subr.bf16.mxu0 %v5600_v0 }
 0x936   : > { %v1025_v33 = vpop.xlane.xlu1 %1024 }
 0x937   : > { %v1026_v35 = vmul.f32 0.03125, %v1025_v33 }
 0x939   : > { %v1027_v36 = vadd.f32 1e-12, %v1026_v35 }
 0x93b   : > { %5393 = vrsqrt.f32 %v1027_v36 }
 0x945   : > { %v5394_v39 = vpop.eup %5393 }
 0x946   : > { %v1029_v40 = vmul.f32 %v5394_v39, %v1021_v24 }
 0x948   : > { %v1034_v44 = vmul.f32 %v1033_v38, %v1029_v40 }
 0x94a   : > { %v6066_v47 = vadd.f32 %v1038_v41, %v1034_v44 }
 0x94c   : > { %4635 = vmatmul.mubr.msk.f32.vlgmr.msra.gmra.mrb[10].mxu1 %vm349_vm1, %v6066_v47 }
 0x94d   : > { %5099 = vmatpush3.bf16.msra.mxu1 %v5098_v46  ;;  %4645 = vmatprep.mubr.msk.f32.mxu1 %vm5601_vm0, %v5602_v1 }
 0x94e   : > { %5100 = vmatprep.subr.bf16.mxu1 %v5600_v0 }
 0x951   : > { %5102 = vmatpush3.bf16.msra.mxu1 %v5101_v50  ;;  %v4132_v50 = vld [vmem:[%s6844_s2 + $0x20] sm:$0xff] }
 0x952   : > { %5103 = vmatprep.subr.bf16.mxu1 %v5600_v0  ;;  %v5116_v52 = vpack.c.bf16 %v4133_v51, %v4132_v50  ;;  %v1659_v50 = vrot.slane %v6102_v60, %v6038_v12 }
 0x954   : > { %4646 = vmatmul.mubr.msk.f32.vlgmr.msra.gmra.mrb[12].mxu1 %vm349_vm1, %v6066_v47 }
 0x955   : > { %5105 = vmatpush3.bf16.msra.mxu1 %v5104_v53  ;;  %4656 = vmatprep.mubr.msk.f32.mxu1 %vm5601_vm0, %v5602_v1  ;;  %v4135_v53 = vld [vmem:[%s6844_s2 + $0x38] sm:$0xff] }
 0x956   : > { %5106 = vmatprep.subr.bf16.mxu1 %v5600_v0 }
 0x959   : > { %5108 = vmatpush3.bf16.msra.mxu1 %v5107_v56  ;;  %v4138_v56 = vld [vmem:[%s6845_s3 + $0x88] sm:$0xff] }
 0x95a   : > { %4659 = vmatprep.subr.mxu1 %v5602_v1 }
 0x95c   : > { %4657 = vmatmul.mubr.msk.f32.vlgmr.msra.gmra.mrb[14].mxu1 %vm349_vm1, %v6066_v47 }
 0x95d   : > { %4661 = vmatprep.mubr.msk.f32.mxu1 %vm5601_vm0, %v5602_v1 }
 0xa1f   : > { %v1133_v57 = vpop.f32.mrb[10].mxu1 }
 0xa20   : > { %v4636_v59 = vpop.f32.mrb[11].mxu1  ;;  %v1134_v5 = vadd.f32 %v1133_v57, %v1063_v63  ;;  %v5122_v57 = vpack.c.bf16 %v4138_v56, %v4137_v55 }
 0xa27   : > { %v1207_v2 = vpop.f32.mrb[12].mxu1 }
 0xa28   : > { %v1208_v3 = vadd.f32 %v1207_v2, %v1140_v62  ;;  %v4647_v4 = vpop.f32.mrb[13].mxu1  ;;  %v1541_v2 = vrot.slane %v6102_v60, %v5969_v27 }
 0xa2a   : > { %4660 = vmatpush3.xpose.msk.msra.mxu1 %vm349_vm1, %v1208_v3 }
 0xa2b   : > { %4664 = vmatprep.subr.mxu1 %v5602_v1 }
 0xa2d   : > { %4662 = vmatmul.mubr.msk.f32.vlgmr.msra.gmra.mrb[16].mxu1 %vm349_vm1, %v1134_v5  ;;  %v1546_v5 = vrot.slane %v6102_v60, %v5972_v28 }
 0xa2e   : > { %4666 = vmatprep.mubr.msk.f32.mxu1 %vm5601_vm0, %v5602_v1 }
 0xa2f   : > { %v1281_v7 = vpop.f32.mrb[14].mxu1 }
 0xa30   : > { %v1282_v8 = vadd.f32 %v1281_v7, %v1214_v6  ;;  %v4658_v9 = vpop.f32.mrb[15].mxu1 }
 0xa31   : > { %v4140_v9 = vld [vmem:[%s6845_s3 + $0x98] sm:$0xff] }
 0xa32   : > { %4665 = vmatpush3.msra.mxu1 %v1282_v8  ;;  %v4139_v8 = vld [vmem:[%s6845_s3 + $0x90] sm:$0xff] }
 0xa33   : > { %5115 = vmatprep.subr.bf16.mxu1 %v5600_v0 }
 0xb00   : > { %v1357_v11 = vpop.f32.mrb[16].mxu1 }
 0xb01   : > { %v1361_v13 = vmul.f32 0.17677669, %v1357_v11  ;;  %v4663_v14 = vpop.f32.mrb[17].mxu1  ;;  %v5125_v11 = vpack.c.bf16 %v4140_v9, %v4139_v8  ;;  %v1059_v9 = vld [vmem:[#allocation5 + $0x18] sm:$0x3] }
 0xb02   : > { %v4142_v14 = vld [vmem:[%s6845_s3 + $0xa8] sm:$0xff] }
 0xb03   : > { %v1362_v10 = vsel %vm326_vm2, %v1361_v13, -1e+09  ;;  %v4141_v13 = vld [vmem:[%s6845_s3 + $0xa0] sm:$0xff] }
 0xb04   : > { %v1363_v15 = vsel %vm649_vm3, %v1362_v10, -inf }
 0xb05   : > { %1364 = vmax.xlane.f32.xlu0 %v1363_v15  ;;  %v4143_v15 = vld [vmem:[%s6845_s3 + $0xb0] sm:$0xff] }
 0xb92   : > { %v1365_v17 = vpop.xlane.xlu0 %1364 }
 0xb93   : > { %v1366_v18 = vsub.f32 %v1362_v10, %v1365_v17  ;;  %v5128_v10 = vpack.c.bf16 %v4142_v14, %v4141_v13  ;;  %v4144_v17 = vld [vmem:[%s6845_s3 + $0xb8] sm:$0xff] }
 0xb95   : > { %v1367_v22 = vmul.f32 1.442695, %v1366_v18  ;;  %v5131_v18 = vpack.c.bf16 %v4144_v17, %v4143_v15  ;;  %v4157_v15 = vld [vmem:[%s6843_s1 + $0x120] sm:$0xff]  ;;  %v4158_v17 = vld [vmem:[%s6843_s1 + $0x128] sm:$0xff] }
 0xb97   : > { %5395 = vpow2.f32 %v1367_v22  ;;  %v4145_v22 = vld [vmem:[%s6845_s3 + $0xc0] sm:$0xff] }
 0xba1   : > { %v5396_v23 = vpop.eup %5395 }
 0xba2   : > { %v1369_v24 = vsel %vm649_vm3, %v5396_v23, 0.0 }
 0xba3   : > { %1370 = vadd.xlane.f32.xlu1 %v1369_v24 }
 0xc30   : > { %v1371_v31 = vpop.xlane.xlu1 %1370 }
 0xc31   : > { %5397 = vrcp.f32 %v1371_v31  ;;  %v4151_v31 = vld [vmem:[%s6845_s3 + $0xf0] sm:$0xff] }
 0xc3b   : > { %v5398_v32 = vpop.eup %5397 }
 0xc3c   : > { %v1373_v33 = vmul.f32 %v5398_v32, %v5396_v23  ;;  %v4146_v23 = vld [vmem:[%s6845_s3 + $0xc8] sm:$0xff]  ;;  %v4152_v32 = vld [vmem:[%s6845_s3 + $0xf8] sm:$0xff] }
 0xc3d   : > { %v5134_v24 = vpack.c.bf16 %v4146_v23, %v4145_v22  ;;  %v5152_v22 = vpack.c.bf16 %v4158_v17, %v4157_v15 }
 0xc3e   : > { %4667 = vmatmul.mubr.msk.f32.vlgmr.msra.gmra.mrb[18].mxu1 %vm649_vm3, %v1373_v33  ;;  %v5143_v33 = vpack.c.bf16 %v4152_v32, %v4151_v31  ;;  %v4164_v31 = vld [vmem:[%s6843_s1 + $0x158] sm:$0xff] }
 0xc3f   : > { %4688 = vmatprep.mubr.msk.f32.mxu1 %vm5601_vm0, %v5602_v1  ;;  %5117 = vmatpush3.bf16.msra.mxu1 %v5116_v52 }
 0xc40   : > { %5118 = vmatprep.subr.bf16.mxu1 %v5600_v0 }
 0xd11   : > { %v1443_v35 = vpop.f32.mrb[18].mxu1 }
 0xd12   : > { %v4668_v36 = vpop.f32.mrb[19].mxu1  ;;  %4678 = vmatmul.mubr.msk.f32.vlgmr.msra.gmra.mrb[6].mxu0 %vm349_vm1, %v1443_v35  ;;  %v1556_v35 = vrot.slane %v6102_v60, %v6031_v58  ;;  %v4154_v60 = vld [vmem:[%s6843_s1 + $0x108] sm:$0xff] }
 0xd13   : > { %4723 = vmatprep.mubr.msk.f32.mxu0 %vm5601_vm0, %v5602_v1  ;;  %5123 = vmatpush3.bf16.msra.mxu0 %v5122_v57 }
 0xd14   : > { %5124 = vmatprep.subr.bf16.mxu0 %v5600_v0 }
 0xd17   : > { %5126 = vmatpush3.bf16.msra.mxu0 %v5125_v11  ;;  %v1747_v11 = vrot.slane %v1059_v9, %v5877_v21 }
 0xd18   : > { %5127 = vmatprep.subr.bf16.mxu0 %v5600_v0 }
 0xd1b   : > { %5129 = vmatpush3.bf16.msra.mxu0 %v5128_v10  ;;  %v1752_v10 = vrot.slane %v1059_v9, %v5872_v19 }
 0xd1c   : > { %5130 = vmatprep.subr.bf16.mxu0 %v5600_v0 }
 0xd1f   : > { %5132 = vmatpush3.bf16.msra.mxu0 %v5131_v18 }
 0xd20   : > { %5133 = vmatprep.subr.bf16.mxu0 %v5600_v0 }
 0xd23   : > { %5135 = vmatpush3.bf16.msra.mxu0 %v5134_v24  ;;  %v4159_v24 = vld [vmem:[%s6843_s1 + $0x130] sm:$0xff] }
 0xd24   : > { %5136 = vmatprep.subr.bf16.mxu0 %v5600_v0  ;;  %v5155_v26 = vpack.c.bf16 %v4160_v25, %v4159_v24 }
 0xd27   : > { %5138 = vmatpush3.bf16.msra.mxu0 %v5137_v16  ;;  %v4161_v16 = vld [vmem:[%s6843_s1 + $0x140] sm:$0xff] }
 0xd28   : > { %5139 = vmatprep.subr.bf16.mxu0 %v5600_v0  ;;  %v5158_v29 = vpack.c.bf16 %v4162_v20, %v4161_v16  ;;  %v4177_v16 = vld [vmem:[%s6844_s2 + $0x48] sm:$0xff] }
 0xd2b   : > { %5141 = vmatpush3.bf16.msra.mxu0 %v5140_v30  ;;  %v4163_v30 = vld [vmem:[%s6843_s1 + $0x150] sm:$0xff] }
 0xd2c   : > { %5142 = vmatprep.subr.bf16.mxu0 %v5600_v0  ;;  %v5161_v32 = vpack.c.bf16 %v4164_v31, %v4163_v30  ;;  %v4181_v31 = vld [vmem:[%s6845_s3 + $0x100] sm:$0xff] }
 0xd2f   : > { %5144 = vmatpush3.bf16.msra.mxu0 %v5143_v33 }
 0xd30   : > { %5163 = vmatprep.subr.bf16.mxu0 %v5600_v0 }
 0xde5   : > { %v1520_v38 = vpop.f32.mrb[6].mxu0 }
 0xde6   : > { %v1521_v39 = vadd.f32 %v1520_v38, %v1450_v37  ;;  %v4679_v40 = vpop.f32.mrb[7].mxu0 }
 0xde8   : > { %v1524_v41 = vadd.f32 %v1521_v39, %v6066_v47  ;;  %v4134_v47 = vld [vmem:[%s6844_s2 + $0x30] sm:$0xff] }
 0xde9   : > { %v5119_v54 = vpack.c.bf16 %v4135_v53, %v4134_v47 }
 0xdea   : > { %v1525_v42 = vsel %vm349_vm1, %v1524_v41, 0.0 }
 0xdeb   : > { %1526 = vadd.xlane.f32.xlu0 %v1525_v42  ;;  %5120 = vmatpush3.bf16.msra.mxu1 %v5119_v54 }
 0xdec   : > { %5145 = vmatprep.subr.bf16.mxu1 %v5600_v0 }
 0xe78   : > { %v1527_v43 = vpop.xlane.xlu0 %1526 }
 0xe79   : > { %v1528_v44 = vmul.f32 0.03125, %v1527_v43 }
 0xe7b   : > { %v1529_v46 = vsub.f32 %v1524_v41, %v1528_v44 }
 0xe7d   : > { %v1530_v48 = vmul.f32 %v1529_v46, %v1529_v46 }
 0xe7f   : > { %v1531_v49 = vsel %vm349_vm1, %v1530_v48, 0.0 }
 0xe80   : > { %1532 = vadd.xlane.f32.xlu1 %v1531_v49 }
 0xf0d   : > { %v1533_v59 = vpop.xlane.xlu1 %1532 }
 0xf0e   : > { %v1534_v62 = vmul.f32 0.03125, %v1533_v59 }
 0xf10   : > { %v1535_v63 = vadd.f32 1e-12, %v1534_v62 }
 0xf12   : > { %5399 = vrsqrt.f32 %v1535_v63  ;;  %v4153_v63 = vld [vmem:[%s6843_s1 + $0x100] sm:$0xff] }
 0xf1c   : > { %v5400_v3 = vpop.eup %5399 }
 0xf1d   : > { %v1537_v4 = vmul.f32 %v5400_v3, %v1529_v46  ;;  %v4155_v3 = vld [vmem:[%s6843_s1 + $0x110] sm:$0xff] }
 0xf1f   : > { %v1542_v6 = vmul.f32 %v1541_v2, %v1537_v4  ;;  %v5146_v2 = vpack.c.bf16 %v4154_v60, %v4153_v63  ;;  %v4156_v4 = vld [vmem:[%s6843_s1 + $0x118] sm:$0xff]  ;;  %v4167_v63 = vld [vmem:[%s6843_s1 + $0x170] sm:$0xff] }
 0xf21   : > { %v1547_v7 = vadd.f32 %v1546_v5, %v1542_v6  ;;  %v5149_v5 = vpack.c.bf16 %v4156_v4, %v4155_v3 }
 0xf23   : > { %4689 = vmatmul.mubr.msk.f32.vlgmr.msra.gmra.mrb[20].mxu1 %vm349_vm1, %v1547_v7 }
 0xf24   : > { %4734 = vmatprep.mubr.msk.f32.mxu1 %vm5601_vm0, %v5602_v1  ;;  %5147 = vmatpush3.bf16.msra.mxu1 %v5146_v2  ;;  %v4168_v2 = vld [vmem:[%s6843_s1 + $0x178] sm:$0xff] }
 0xf25   : > { %5148 = vmatprep.subr.bf16.mxu1 %v5600_v0  ;;  %v5167_v3 = vpack.c.bf16 %v4168_v2, %v4167_v63  ;;  %v4194_v2 = vld [vmem:[%s6845_s3 + $0x168] sm:$0xff] }
 0xf28   : > { %5150 = vmatpush3.bf16.msra.mxu1 %v5149_v5 }
 0xf29   : > { %5151 = vmatprep.subr.bf16.mxu1 %v5600_v0 }
 0xff6   : > { %v1626_v36 = vpop.f32.mrb[20].mxu1 }
 0xff7   : > { %v1627_v37 = vadd.f32 %v1626_v36, %v1556_v35  ;;  %v4690_v38 = vpop.f32.mrb[21].mxu1  ;;  %v6288_v36 = vld [vmem:[#allocation5 + $0x20] sm:$0xff] }
 0xff8   : > { %v1777_v38 = vrot.slane %v6288_v36, %v5877_v21  ;;  %v2164_v9 = vrot.slane %v6288_v36, %v5940_v61 }
 0xff9   : > { %v1630_v39 = vmul.f32 %v1627_v37, %v1627_v37 }
 0xffb   : > { %v1631_v40 = vmul.f32 %v1630_v39, %v1627_v37 }
 0xffd   : > { %v1632_v41 = vmul.f32 0.044715, %v1631_v40 }
 0xfff   : > { %v1633_v42 = vadd.f32 %v1632_v41, %v1627_v37 }
0x1001   : > { %v1634_v43 = vmul.f32 0.7978846, %v1633_v42 }
0x1003   : > { %5401 = vtanh.f32 %v1634_v43  ;;  %v1928_v43 = vrot.slane %v6288_v36, %v5914_v45 }
0x100d   : > { %v5402_v44 = vpop.eup %5401 }
0x100e   : > { %v1636_v46 = vadd.f32 1.0, %v5402_v44 }
0x1010   : > { %v1637_v48 = vmul.f32 0.5, %v1636_v46 }
0x1012   : > { %v1638_v49 = vmul.f32 %v1637_v48, %v1627_v37  ;;  %v1854_v37 = vrot.slane %v6288_v36, %v5872_v19 }
0x1014   : > { %4724 = vmatmul.mubr.f32.vlgmr.msra.gmra.mrb[8].mxu0 %v1638_v49 }
0x1015   : > { %4777 = vmatprep.mubr.msk.f32.mxu0 %vm5601_vm0, %v5602_v1 }
0x10e7   : > { %v1726_v51 = vpop.f32.mrb[8].mxu0 }
0x10e8   : > { %v1727_v52 = vadd.f32 %v1726_v51, %v1659_v50  ;;  %v4725_v47 = vpop.f32.mrb[9].mxu0 }
0x10ea   : > { %v1730_v53 = vadd.f32 %v1727_v52, %v1547_v7 }
0x10ec   : > { %v1731_v54 = vsel %vm349_vm1, %v1730_v53, 0.0 }
0x10ed   : > { %1732 = vadd.xlane.f32.xlu0 %v1731_v54 }
0x117a   : > { %v1733_v55 = vpop.xlane.xlu0 %1732 }
0x117b   : > { %v1734_v56 = vmul.f32 0.03125, %v1733_v55 }
0x117d   : > { %v1735_v57 = vsub.f32 %v1730_v53, %v1734_v56 }
0x117f   : > { %v1736_v59 = vmul.f32 %v1735_v57, %v1735_v57 }
0x1181   : > { %v1737_v62 = vsel %vm349_vm1, %v1736_v59, 0.0  ;;  %v4165_v59 = vld [vmem:[%s6843_s1 + $0x160] sm:$0xff] }
0x1182   : > { %1738 = vadd.xlane.f32.xlu1 %v1737_v62  ;;  %v4166_v62 = vld [vmem:[%s6843_s1 + $0x168] sm:$0xff] }
0x1183   : > { %v5164_v60 = vpack.c.bf16 %v4166_v62, %v4165_v59  ;;  %v4191_v59 = vld [vmem:[%s6845_s3 + $0x150] sm:$0xff]  ;;  %v4192_v62 = vld [vmem:[%s6845_s3 + $0x158] sm:$0xff] }
0x1184   : > { %v5191_v63 = vpack.c.bf16 %v4192_v62, %v4191_v59  ;;  %v4204_v59 = vld [vmem:[%s6843_s1 + $0x1b8] sm:$0xff] }
0x1185   : > { %5165 = vmatpush3.bf16.msra.mxu0 %v5164_v60  ;;  %v4193_v60 = vld [vmem:[%s6845_s3 + $0x160] sm:$0xff] }
0x1186   : > { %5166 = vmatprep.subr.bf16.mxu0 %v5600_v0 }
0x1189   : > { %5168 = vmatpush3.bf16.msra.mxu0 %v5167_v3  ;;  %v5194_v3 = vpack.c.bf16 %v4194_v2, %v4193_v60  ;;  %v4206_v60 = vld [vmem:[%s6843_s1 + $0x1c8] sm:$0xff] }
0x118a   : > { %5175 = vmatprep.subr.bf16.mxu0 %v5600_v0 }
0x120f   : > { %v1739_v6 = vpop.xlane.xlu1 %1738 }
0x1210   : > { %v1740_v7 = vmul.f32 0.03125, %v1739_v6 }
0x1212   : > { %v1741_v8 = vadd.f32 1e-12, %v1740_v7 }
0x1214   : > { %5403 = vrsqrt.f32 %v1741_v8 }
0x121e   : > { %v5404_v13 = vpop.eup %5403 }
0x121f   : > { %v1743_v14 = vmul.f32 %v5404_v13, %v1735_v57 }
0x1221   : > { %v1748_v18 = vmul.f32 %v1747_v11, %v1743_v14 }
0x1223   : > { %v6252_v23 = vadd.f32 %v1752_v10, %v1748_v18 }
0x1225   : > { %4735 = vmatmul.mubr.msk.f32.vlgmr.msra.gmra.mrb[22].mxu1 %vm349_vm1, %v6252_v23 }
0x1226   : > { %5153 = vmatpush3.bf16.msra.mxu1 %v5152_v22  ;;  %4745 = vmatprep.mubr.msk.f32.mxu1 %vm5601_vm0, %v5602_v1 }
0x1227   : > { %5154 = vmatprep.subr.bf16.mxu1 %v5600_v0 }
0x122a   : > { %5156 = vmatpush3.bf16.msra.mxu1 %v5155_v26  ;;  %v4176_v26 = vld [vmem:[%s6844_s2 + $0x40] sm:$0xff] }
0x122b   : > { %5157 = vmatprep.subr.bf16.mxu1 %v5600_v0  ;;  %v5170_v20 = vpack.c.bf16 %v4177_v16, %v4176_v26  ;;  %v2373_v26 = vrot.slane %v6288_v36, %v6038_v12 }
0x122d   : > { %4746 = vmatmul.mubr.msk.f32.vlgmr.msra.gmra.mrb[24].mxu1 %vm349_vm1, %v6252_v23 }
0x122e   : > { %5159 = vmatpush3.bf16.msra.mxu1 %v5158_v29  ;;  %4756 = vmatprep.mubr.msk.f32.mxu1 %vm5601_vm0, %v5602_v1  ;;  %v4179_v29 = vld [vmem:[%s6844_s2 + $0x58] sm:$0xff] }
0x122f   : > { %5160 = vmatprep.subr.bf16.mxu1 %v5600_v0 }
0x1232   : > { %5162 = vmatpush3.bf16.msra.mxu1 %v5161_v32  ;;  %v4182_v32 = vld [vmem:[%s6845_s3 + $0x108] sm:$0xff] }
0x1233   : > { %4759 = vmatprep.subr.mxu1 %v5602_v1 }
0x1235   : > { %4757 = vmatmul.mubr.msk.f32.vlgmr.msra.gmra.mrb[26].mxu1 %vm349_vm1, %v6252_v23 }
0x1236   : > { %4761 = vmatprep.mubr.msk.f32.mxu1 %vm5601_vm0, %v5602_v1 }
0x12f8   : > { %v1847_v33 = vpop.f32.mrb[22].mxu1 }
0x12f9   : > { %v4736_v35 = vpop.f32.mrb[23].mxu1  ;;  %v1848_v42 = vadd.f32 %v1847_v33, %v1777_v38  ;;  %v5176_v33 = vpack.c.bf16 %v4182_v32, %v4181_v31 }
0x1300   : > { %v1921_v39 = vpop.f32.mrb[24].mxu1 }
0x1301   : > { %v1922_v40 = vadd.f32 %v1921_v39, %v1854_v37  ;;  %v4747_v41 = vpop.f32.mrb[25].mxu1  ;;  %v2255_v39 = vrot.slane %v6288_v36, %v5969_v27 }
0x1303   : > { %4760 = vmatpush3.xpose.msk.msra.mxu1 %vm349_vm1, %v1922_v40 }
0x1304   : > { %4764 = vmatprep.subr.mxu1 %v5602_v1 }
0x1306   : > { %4762 = vmatmul.mubr.msk.f32.vlgmr.msra.gmra.mrb[28].mxu1 %vm349_vm1, %v1848_v42  ;;  %v2260_v42 = vrot.slane %v6288_v36, %v5972_v28 }
0x1307   : > { %4766 = vmatprep.mubr.msk.f32.mxu1 %vm5601_vm0, %v5602_v1 }
0x1308   : > { %v1995_v44 = vpop.f32.mrb[26].mxu1 }
0x1309   : > { %v1996_v46 = vadd.f32 %v1995_v44, %v1928_v43  ;;  %v4758_v48 = vpop.f32.mrb[27].mxu1 }
0x130a   : > { %v4184_v48 = vld [vmem:[%s6845_s3 + $0x118] sm:$0xff] }
0x130b   : > { %4765 = vmatpush3.msra.mxu1 %v1996_v46  ;;  %v4183_v46 = vld [vmem:[%s6845_s3 + $0x110] sm:$0xff] }
0x130c   : > { %5169 = vmatprep.subr.bf16.mxu1 %v5600_v0 }
0x13d9   : > { %v2071_v49 = vpop.f32.mrb[28].mxu1 }
0x13da   : > { %v2075_v50 = vmul.f32 0.17677669, %v2071_v49  ;;  %v4763_v51 = vpop.f32.mrb[29].mxu1  ;;  %v5179_v49 = vpack.c.bf16 %v4184_v48, %v4183_v46  ;;  %v1773_v48 = vld [vmem:[#allocation5 + $0x28] sm:$0x3] }
0x13db   : > { %v4186_v51 = vld [vmem:[%s6845_s3 + $0x128] sm:$0xff] }
0x13dc   : > { %v2076_v52 = vsel %vm326_vm2, %v2075_v50, -1e+09  ;;  %v4185_v50 = vld [vmem:[%s6845_s3 + $0x120] sm:$0xff] }
0x13dd   : > { %v2077_v47 = vsel %vm649_vm3, %v2076_v52, -inf }
0x13de   : > { %2078 = vmax.xlane.f32.xlu0 %v2077_v47  ;;  %v4187_v47 = vld [vmem:[%s6845_s3 + $0x130] sm:$0xff] }
0x146b   : > { %v2079_v53 = vpop.xlane.xlu0 %2078 }
0x146c   : > { %v2080_v54 = vsub.f32 %v2076_v52, %v2079_v53  ;;  %v5182_v52 = vpack.c.bf16 %v4186_v51, %v4185_v50  ;;  %v4188_v53 = vld [vmem:[%s6845_s3 + $0x138] sm:$0xff] }
0x146e   : > { %v2081_v55 = vmul.f32 1.442695, %v2080_v54  ;;  %v5185_v54 = vpack.c.bf16 %v4188_v53, %v4187_v47  ;;  %v4201_v47 = vld [vmem:[%s6843_s1 + $0x1a0] sm:$0xff]  ;;  %v4202_v53 = vld [vmem:[%s6843_s1 + $0x1a8] sm:$0xff] }
0x1470   : > { %5405 = vpow2.f32 %v2081_v55  ;;  %v4189_v55 = vld [vmem:[%s6845_s3 + $0x140] sm:$0xff] }
0x147a   : > { %v5406_v56 = vpop.eup %5405 }
0x147b   : > { %v2083_v57 = vsel %vm649_vm3, %v5406_v56, 0.0 }
0x147c   : > { %2084 = vadd.xlane.f32.xlu1 %v2083_v57 }
0x1509   : > { %v2085_v4 = vpop.xlane.xlu1 %2084 }
0x150a   : > { %5407 = vrcp.f32 %v2085_v4  ;;  %v4195_v4 = vld [vmem:[%s6845_s3 + $0x170] sm:$0xff] }
0x1514   : > { %v5408_v5 = vpop.eup %5407 }
0x1515   : > { %v2087_v6 = vmul.f32 %v5408_v5, %v5406_v56  ;;  %v4190_v56 = vld [vmem:[%s6845_s3 + $0x148] sm:$0xff]  ;;  %v4196_v5 = vld [vmem:[%s6845_s3 + $0x178] sm:$0xff] }
0x1516   : > { %v5188_v57 = vpack.c.bf16 %v4190_v56, %v4189_v55  ;;  %v5206_v55 = vpack.c.bf16 %v4202_v53, %v4201_v47 }
0x1517   : > { %4767 = vmatmul.mubr.msk.f32.vlgmr.msra.gmra.mrb[30].mxu1 %vm649_vm3, %v2087_v6  ;;  %v5197_v6 = vpack.c.bf16 %v4196_v5, %v4195_v4  ;;  %v4208_v4 = vld [vmem:[%s6843_s1 + $0x1d8] sm:$0xff] }
0x1518   : > { %4788 = vmatprep.mubr.msk.f32.mxu1 %vm5601_vm0, %v5602_v1  ;;  %5171 = vmatpush3.bf16.msra.mxu1 %v5170_v20 }
0x1519   : > { %5172 = vmatprep.subr.bf16.mxu1 %v5600_v0 }
0x15ea   : > { %v2157_v7 = vpop.f32.mrb[30].mxu1 }
0x15eb   : > { %v4768_v8 = vpop.f32.mrb[31].mxu1  ;;  %4778 = vmatmul.mubr.msk.f32.vlgmr.msra.gmra.mrb[10].mxu0 %vm349_vm1, %v2157_v7  ;;  %v2270_v7 = vrot.slane %v6288_v36, %v6031_v58  ;;  %v4198_v36 = vld [vmem:[%s6843_s1 + $0x188] sm:$0xff] }
0x15ec   : > { %4823 = vmatprep.mubr.msk.f32.mxu0 %vm5601_vm0, %v5602_v1  ;;  %5177 = vmatpush3.bf16.msra.mxu0 %v5176_v33 }
0x15ed   : > { %5178 = vmatprep.subr.bf16.mxu0 %v5600_v0 }
0x15f0   : > { %5180 = vmatpush3.bf16.msra.mxu0 %v5179_v49  ;;  %v2461_v49 = vrot.slane %v1773_v48, %v5877_v21 }
0x15f1   : > { %5181 = vmatprep.subr.bf16.mxu0 %v5600_v0 }
0x15f4   : > { %5183 = vmatpush3.bf16.msra.mxu0 %v5182_v52  ;;  %v2466_v52 = vrot.slane %v1773_v48, %v5872_v19 }
0x15f5   : > { %5184 = vmatprep.subr.bf16.mxu0 %v5600_v0 }
0x15f8   : > { %5186 = vmatpush3.bf16.msra.mxu0 %v5185_v54 }
0x15f9   : > { %5187 = vmatprep.subr.bf16.mxu0 %v5600_v0 }
0x15fc   : > { %5189 = vmatpush3.bf16.msra.mxu0 %v5188_v57  ;;  %v4203_v57 = vld [vmem:[%s6843_s1 + $0x1b0] sm:$0xff] }
0x15fd   : > { %5190 = vmatprep.subr.bf16.mxu0 %v5600_v0  ;;  %v5209_v62 = vpack.c.bf16 %v4204_v59, %v4203_v57 }
0x1600   : > { %5192 = vmatpush3.bf16.msra.mxu0 %v5191_v63  ;;  %v4205_v63 = vld [vmem:[%s6843_s1 + $0x1c0] sm:$0xff] }
0x1601   : > { %5193 = vmatprep.subr.bf16.mxu0 %v5600_v0  ;;  %v5212_v2 = vpack.c.bf16 %v4206_v60, %v4205_v63  ;;  %v4221_v63 = vld [vmem:[%s6844_s2 + $0x68] sm:$0xff] }
0x1604   : > { %5195 = vmatpush3.bf16.msra.mxu0 %v5194_v3  ;;  %v4207_v3 = vld [vmem:[%s6843_s1 + $0x1d0] sm:$0xff] }
0x1605   : > { %5196 = vmatprep.subr.bf16.mxu0 %v5600_v0  ;;  %v5215_v5 = vpack.c.bf16 %v4208_v4, %v4207_v3  ;;  %v4225_v4 = vld [vmem:[%s6845_s3 + $0x180] sm:$0xff] }
0x1608   : > { %5198 = vmatpush3.bf16.msra.mxu0 %v5197_v6 }
0x1609   : > { %5217 = vmatprep.subr.bf16.mxu0 %v5600_v0 }
0x16be   : > { %v2234_v11 = vpop.f32.mrb[10].mxu0 }
0x16bf   : > { %v2235_v13 = vadd.f32 %v2234_v11, %v2164_v9  ;;  %v4779_v14 = vpop.f32.mrb[11].mxu0 }
0x16c1   : > { %v2238_v10 = vadd.f32 %v2235_v13, %v6252_v23  ;;  %v4178_v23 = vld [vmem:[%s6844_s2 + $0x50] sm:$0xff] }
0x16c2   : > { %v5173_v30 = vpack.c.bf16 %v4179_v29, %v4178_v23 }
0x16c3   : > { %v2239_v15 = vsel %vm349_vm1, %v2238_v10, 0.0 }
0x16c4   : > { %2240 = vadd.xlane.f32.xlu0 %v2239_v15  ;;  %5174 = vmatpush3.bf16.msra.mxu1 %v5173_v30 }
0x16c5   : > { %5199 = vmatprep.subr.bf16.mxu1 %v5600_v0 }
0x1751   : > { %v2241_v17 = vpop.xlane.xlu0 %2240 }
0x1752   : > { %v2242_v18 = vmul.f32 0.03125, %v2241_v17 }
0x1754   : > { %v2243_v22 = vsub.f32 %v2238_v10, %v2242_v18 }
0x1756   : > { %v2244_v24 = vmul.f32 %v2243_v22, %v2243_v22 }
0x1758   : > { %v2245_v25 = vsel %vm349_vm1, %v2244_v24, 0.0 }
0x1759   : > { %2246 = vadd.xlane.f32.xlu1 %v2245_v25 }
0x17e6   : > { %v2247_v35 = vpop.xlane.xlu1 %2246 }
0x17e7   : > { %v2248_v37 = vmul.f32 0.03125, %v2247_v35 }
0x17e9   : > { %v2249_v38 = vadd.f32 1e-12, %v2248_v37 }
0x17eb   : > { %5409 = vrsqrt.f32 %v2249_v38  ;;  %v4197_v38 = vld [vmem:[%s6843_s1 + $0x180] sm:$0xff] }
0x17f5   : > { %v5410_v40 = vpop.eup %5409 }
0x17f6   : > { %v2251_v41 = vmul.f32 %v5410_v40, %v2243_v22  ;;  %v4199_v40 = vld [vmem:[%s6843_s1 + $0x190] sm:$0xff] }
0x17f8   : > { %v2256_v43 = vmul.f32 %v2255_v39, %v2251_v41  ;;  %v5200_v39 = vpack.c.bf16 %v4198_v36, %v4197_v38  ;;  %v4200_v41 = vld [vmem:[%s6843_s1 + $0x198] sm:$0xff]  ;;  %v4211_v38 = vld [vmem:[%s6843_s1 + $0x1f0] sm:$0xff] }
0x17fa   : > { %v2261_v44 = vadd.f32 %v2260_v42, %v2256_v43  ;;  %v5203_v42 = vpack.c.bf16 %v4200_v41, %v4199_v40 }
0x17fc   : > { %4789 = vmatmul.mubr.msk.f32.vlgmr.msra.gmra.mrb[32].mxu1 %vm349_vm1, %v2261_v44 }
0x17fd   : > { %4834 = vmatprep.mubr.msk.f32.mxu1 %vm5601_vm0, %v5602_v1  ;;  %5201 = vmatpush3.bf16.msra.mxu1 %v5200_v39  ;;  %v4212_v39 = vld [vmem:[%s6843_s1 + $0x1f8] sm:$0xff] }
0x17fe   : > { %5202 = vmatprep.subr.bf16.mxu1 %v5600_v0  ;;  %v5221_v40 = vpack.c.bf16 %v4212_v39, %v4211_v38  ;;  %v4238_v39 = vld [vmem:[%s6845_s3 + $0x1e8] sm:$0xff] }
0x1801   : > { %5204 = vmatpush3.bf16.msra.mxu1 %v5203_v42 }
0x1802   : > { %5205 = vmatprep.subr.bf16.mxu1 %v5600_v0 }
0x18cf   : > { %v2340_v8 = vpop.f32.mrb[32].mxu1 }
0x18d0   : > { %v2341_v9 = vadd.f32 %v2340_v8, %v2270_v7  ;;  %v4790_v11 = vpop.f32.mrb[33].mxu1  ;;  %v6474_v8 = vld [vmem:[#allocation5 + $0x30] sm:$0xff] }
0x18d1   : > { %v2491_v11 = vrot.slane %v6474_v8, %v5877_v21  ;;  %v2878_v48 = vrot.slane %v6474_v8, %v5940_v61 }
0x18d2   : > { %v2344_v13 = vmul.f32 %v2341_v9, %v2341_v9 }
0x18d4   : > { %v2345_v14 = vmul.f32 %v2344_v13, %v2341_v9 }
0x18d6   : > { %v2346_v10 = vmul.f32 0.044715, %v2345_v14 }
0x18d8   : > { %v2347_v15 = vadd.f32 %v2346_v10, %v2341_v9 }
0x18da   : > { %v2348_v17 = vmul.f32 0.7978846, %v2347_v15 }
0x18dc   : > { %5411 = vtanh.f32 %v2348_v17  ;;  %v2642_v17 = vrot.slane %v6474_v8, %v5914_v45 }
0x18e6   : > { %v5412_v18 = vpop.eup %5411 }
0x18e7   : > { %v2350_v22 = vadd.f32 1.0, %v5412_v18 }
0x18e9   : > { %v2351_v24 = vmul.f32 0.5, %v2350_v22 }
0x18eb   : > { %v2352_v25 = vmul.f32 %v2351_v24, %v2341_v9  ;;  %v2568_v9 = vrot.slane %v6474_v8, %v5872_v19 }
0x18ed   : > { %4824 = vmatmul.mubr.f32.vlgmr.msra.gmra.mrb[12].mxu0 %v2352_v25 }
0x18ee   : > { %4877 = vmatprep.mubr.msk.f32.mxu0 %vm5601_vm0, %v5602_v1 }
0x19c0   : > { %v2440_v16 = vpop.f32.mrb[12].mxu0 }
0x19c1   : > { %v2441_v20 = vadd.f32 %v2440_v16, %v2373_v26  ;;  %v4825_v23 = vpop.f32.mrb[13].mxu0 }
0x19c3   : > { %v2444_v29 = vadd.f32 %v2441_v20, %v2261_v44 }
0x19c5   : > { %v2445_v30 = vsel %vm349_vm1, %v2444_v29, 0.0 }
0x19c6   : > { %2446 = vadd.xlane.f32.xlu0 %v2445_v30 }
0x1a53   : > { %v2447_v31 = vpop.xlane.xlu0 %2446 }
0x1a54   : > { %v2448_v32 = vmul.f32 0.03125, %v2447_v31 }
0x1a56   : > { %v2449_v33 = vsub.f32 %v2444_v29, %v2448_v32 }
0x1a58   : > { %v2450_v35 = vmul.f32 %v2449_v33, %v2449_v33 }
0x1a5a   : > { %v2451_v37 = vsel %vm349_vm1, %v2450_v35, 0.0  ;;  %v4209_v35 = vld [vmem:[%s6843_s1 + $0x1e0] sm:$0xff] }
0x1a5b   : > { %2452 = vadd.xlane.f32.xlu1 %v2451_v37  ;;  %v4210_v37 = vld [vmem:[%s6843_s1 + $0x1e8] sm:$0xff] }
0x1a5c   : > { %v5218_v36 = vpack.c.bf16 %v4210_v37, %v4209_v35  ;;  %v4235_v35 = vld [vmem:[%s6845_s3 + $0x1d0] sm:$0xff]  ;;  %v4236_v37 = vld [vmem:[%s6845_s3 + $0x1d8] sm:$0xff] }
0x1a5d   : > { %v5245_v38 = vpack.c.bf16 %v4236_v37, %v4235_v35  ;;  %v4248_v35 = vld [vmem:[%s6843_s1 + $0x238] sm:$0xff] }
0x1a5e   : > { %5219 = vmatpush3.bf16.msra.mxu0 %v5218_v36  ;;  %v4237_v36 = vld [vmem:[%s6845_s3 + $0x1e0] sm:$0xff] }
0x1a5f   : > { %5220 = vmatprep.subr.bf16.mxu0 %v5600_v0 }
0x1a62   : > { %5222 = vmatpush3.bf16.msra.mxu0 %v5221_v40  ;;  %v5248_v40 = vpack.c.bf16 %v4238_v39, %v4237_v36  ;;  %v4250_v36 = vld [vmem:[%s6843_s1 + $0x248] sm:$0xff] }
0x1a63   : > { %5229 = vmatprep.subr.bf16.mxu0 %v5600_v0 }
0x1ae8   : > { %v2453_v43 = vpop.xlane.xlu1 %2452 }
0x1ae9   : > { %v2454_v44 = vmul.f32 0.03125, %v2453_v43 }
0x1aeb   : > { %v2455_v46 = vadd.f32 1e-12, %v2454_v44 }
0x1aed   : > { %5413 = vrsqrt.f32 %v2455_v46 }
0x1af7   : > { %v5414_v50 = vpop.eup %5413 }
0x1af8   : > { %v2457_v51 = vmul.f32 %v5414_v50, %v2449_v33 }
0x1afa   : > { %v2462_v54 = vmul.f32 %v2461_v49, %v2457_v51 }
0x1afc   : > { %v6438_v56 = vadd.f32 %v2466_v52, %v2462_v54 }
0x1afe   : > { %4835 = vmatmul.mubr.msk.f32.vlgmr.msra.gmra.mrb[34].mxu1 %vm349_vm1, %v6438_v56 }
0x1aff   : > { %5207 = vmatpush3.bf16.msra.mxu1 %v5206_v55  ;;  %4845 = vmatprep.mubr.msk.f32.mxu1 %vm5601_vm0, %v5602_v1 }
0x1b00   : > { %5208 = vmatprep.subr.bf16.mxu1 %v5600_v0 }
0x1b03   : > { %5210 = vmatpush3.bf16.msra.mxu1 %v5209_v62  ;;  %v4220_v62 = vld [vmem:[%s6844_s2 + $0x60] sm:$0xff] }
0x1b04   : > { %5211 = vmatprep.subr.bf16.mxu1 %v5600_v0  ;;  %v5224_v60 = vpack.c.bf16 %v4221_v63, %v4220_v62  ;;  %v3087_v62 = vrot.slane %v6474_v8, %v6038_v12 }
0x1b06   : > { %4846 = vmatmul.mubr.msk.f32.vlgmr.msra.gmra.mrb[36].mxu1 %vm349_vm1, %v6438_v56 }
0x1b07   : > { %5213 = vmatpush3.bf16.msra.mxu1 %v5212_v2  ;;  %4856 = vmatprep.mubr.msk.f32.mxu1 %vm5601_vm0, %v5602_v1  ;;  %v4223_v2 = vld [vmem:[%s6844_s2 + $0x78] sm:$0xff] }
0x1b08   : > { %5214 = vmatprep.subr.bf16.mxu1 %v5600_v0 }
0x1b0b   : > { %5216 = vmatpush3.bf16.msra.mxu1 %v5215_v5  ;;  %v4226_v5 = vld [vmem:[%s6845_s3 + $0x188] sm:$0xff] }
0x1b0c   : > { %4859 = vmatprep.subr.mxu1 %v5602_v1 }
0x1b0e   : > { %4857 = vmatmul.mubr.msk.f32.vlgmr.msra.gmra.mrb[38].mxu1 %vm349_vm1, %v6438_v56 }
0x1b0f   : > { %4861 = vmatprep.mubr.msk.f32.mxu1 %vm5601_vm0, %v5602_v1 }
0x1bd1   : > { %v2561_v6 = vpop.f32.mrb[34].mxu1 }
0x1bd2   : > { %v4836_v7 = vpop.f32.mrb[35].mxu1  ;;  %v2562_v15 = vadd.f32 %v2561_v6, %v2491_v11  ;;  %v5230_v6 = vpack.c.bf16 %v4226_v5, %v4225_v4 }
0x1bd9   : > { %v2635_v13 = vpop.f32.mrb[36].mxu1 }
0x1bda   : > { %v2636_v14 = vadd.f32 %v2635_v13, %v2568_v9  ;;  %v4847_v10 = vpop.f32.mrb[37].mxu1  ;;  %v2969_v13 = vrot.slane %v6474_v8, %v5969_v27 }
0x1bdc   : > { %4860 = vmatpush3.xpose.msk.msra.mxu1 %vm349_vm1, %v2636_v14 }
0x1bdd   : > { %4864 = vmatprep.subr.mxu1 %v5602_v1 }
0x1bdf   : > { %4862 = vmatmul.mubr.msk.f32.vlgmr.msra.gmra.mrb[40].mxu1 %vm349_vm1, %v2562_v15  ;;  %v2974_v15 = vrot.slane %v6474_v8, %v5972_v28 }
0x1be0   : > { %4866 = vmatprep.mubr.msk.f32.mxu1 %vm5601_vm0, %v5602_v1 }
0x1be1   : > { %v2709_v18 = vpop.f32.mrb[38].mxu1 }
0x1be2   : > { %v2710_v22 = vadd.f32 %v2709_v18, %v2642_v17  ;;  %v4858_v24 = vpop.f32.mrb[39].mxu1 }
0x1be3   : > { %v4228_v24 = vld [vmem:[%s6845_s3 + $0x198] sm:$0xff] }
0x1be4   : > { %4865 = vmatpush3.msra.mxu1 %v2710_v22  ;;  %v4227_v22 = vld [vmem:[%s6845_s3 + $0x190] sm:$0xff] }
0x1be5   : > { %5223 = vmatprep.subr.bf16.mxu1 %v5600_v0 }
0x1cb2   : > { %v2785_v25 = vpop.f32.mrb[40].mxu1 }
0x1cb3   : > { %v2789_v26 = vmul.f32 0.17677669, %v2785_v25  ;;  %v4863_v16 = vpop.f32.mrb[41].mxu1  ;;  %v5233_v25 = vpack.c.bf16 %v4228_v24, %v4227_v22  ;;  %v2487_v24 = vld [vmem:[#allocation5 + $0x38] sm:$0x3] }
0x1cb4   : > { %v4230_v16 = vld [vmem:[%s6845_s3 + $0x1a8] sm:$0xff] }
0x1cb5   : > { %v2790_v20 = vsel %vm326_vm2, %v2789_v26, -1e+09  ;;  %v4229_v26 = vld [vmem:[%s6845_s3 + $0x1a0] sm:$0xff] }
0x1cb6   : > { %v2791_v23 = vsel %vm649_vm3, %v2790_v20, -inf }
0x1cb7   : > { %2792 = vmax.xlane.f32.xlu0 %v2791_v23  ;;  %v4231_v23 = vld [vmem:[%s6845_s3 + $0x1b0] sm:$0xff] }
0x1d44   : > { %v2793_v29 = vpop.xlane.xlu0 %2792 }
0x1d45   : > { %v2794_v30 = vsub.f32 %v2790_v20, %v2793_v29  ;;  %v5236_v20 = vpack.c.bf16 %v4230_v16, %v4229_v26  ;;  %v4232_v29 = vld [vmem:[%s6845_s3 + $0x1b8] sm:$0xff] }
0x1d47   : > { %v2795_v31 = vmul.f32 1.442695, %v2794_v30  ;;  %v5239_v30 = vpack.c.bf16 %v4232_v29, %v4231_v23  ;;  %v4245_v23 = vld [vmem:[%s6843_s1 + $0x220] sm:$0xff]  ;;  %v4246_v29 = vld [vmem:[%s6843_s1 + $0x228] sm:$0xff] }
0x1d49   : > { %5415 = vpow2.f32 %v2795_v31  ;;  %v4233_v31 = vld [vmem:[%s6845_s3 + $0x1c0] sm:$0xff] }
0x1d53   : > { %v5416_v32 = vpop.eup %5415 }
0x1d54   : > { %v2797_v33 = vsel %vm649_vm3, %v5416_v32, 0.0 }
0x1d55   : > { %2798 = vadd.xlane.f32.xlu1 %v2797_v33 }
0x1de2   : > { %v2799_v41 = vpop.xlane.xlu1 %2798 }
0x1de3   : > { %5417 = vrcp.f32 %v2799_v41  ;;  %v4239_v41 = vld [vmem:[%s6845_s3 + $0x1f0] sm:$0xff] }
0x1ded   : > { %v5418_v42 = vpop.eup %5417 }
0x1dee   : > { %v2801_v43 = vmul.f32 %v5418_v42, %v5416_v32  ;;  %v4234_v32 = vld [vmem:[%s6845_s3 + $0x1c8] sm:$0xff]  ;;  %v4240_v42 = vld [vmem:[%s6845_s3 + $0x1f8] sm:$0xff] }
0x1def   : > { %v5242_v33 = vpack.c.bf16 %v4234_v32, %v4233_v31  ;;  %v5260_v31 = vpack.c.bf16 %v4246_v29, %v4245_v23 }
0x1df0   : > { %4867 = vmatmul.mubr.msk.f32.vlgmr.msra.gmra.mrb[42].mxu1 %vm649_vm3, %v2801_v43  ;;  %v5251_v43 = vpack.c.bf16 %v4240_v42, %v4239_v41  ;;  %v4252_v41 = vld [vmem:[%s6843_s1 + $0x258] sm:$0xff] }
0x1df1   : > { %4888 = vmatprep.mubr.msk.f32.mxu1 %vm5601_vm0, %v5602_v1  ;;  %5225 = vmatpush3.bf16.msra.mxu1 %v5224_v60 }
0x1df2   : > { %5226 = vmatprep.subr.bf16.mxu1 %v5600_v0 }
0x1ec3   : > { %v2871_v44 = vpop.f32.mrb[42].mxu1 }
0x1ec4   : > { %v4868_v46 = vpop.f32.mrb[43].mxu1  ;;  %4878 = vmatmul.mubr.msk.f32.vlgmr.msra.gmra.mrb[14].mxu0 %vm349_vm1, %v2871_v44  ;;  %v2984_v44 = vrot.slane %v6474_v8, %v6031_v58  ;;  %v4242_v8 = vld [vmem:[%s6843_s1 + $0x208] sm:$0xff] }
0x1ec5   : > { %4923 = vmatprep.mubr.msk.f32.mxu0 %vm5601_vm0, %v5602_v1  ;;  %5231 = vmatpush3.bf16.msra.mxu0 %v5230_v6 }
0x1ec6   : > { %5232 = vmatprep.subr.bf16.mxu0 %v5600_v0 }
0x1ec9   : > { %5234 = vmatpush3.bf16.msra.mxu0 %v5233_v25  ;;  %v3175_v25 = vrot.slane %v2487_v24, %v5877_v21 }
0x1eca   : > { %5235 = vmatprep.subr.bf16.mxu0 %v5600_v0 }
0x1ecd   : > { %5237 = vmatpush3.bf16.msra.mxu0 %v5236_v20  ;;  %v3180_v20 = vrot.slane %v2487_v24, %v5872_v19 }
0x1ece   : > { %5238 = vmatprep.subr.bf16.mxu0 %v5600_v0 }
0x1ed1   : > { %5240 = vmatpush3.bf16.msra.mxu0 %v5239_v30 }
0x1ed2   : > { %5241 = vmatprep.subr.bf16.mxu0 %v5600_v0 }
0x1ed5   : > { %5243 = vmatpush3.bf16.msra.mxu0 %v5242_v33  ;;  %v4247_v33 = vld [vmem:[%s6843_s1 + $0x230] sm:$0xff] }
0x1ed6   : > { %5244 = vmatprep.subr.bf16.mxu0 %v5600_v0  ;;  %v5263_v37 = vpack.c.bf16 %v4248_v35, %v4247_v33  ;;  %v4264_v33 = vld [vmem:[%s6844_s2 + $0x80] sm:$0xff] }
0x1ed9   : > { %5246 = vmatpush3.bf16.msra.mxu0 %v5245_v38  ;;  %v4249_v38 = vld [vmem:[%s6843_s1 + $0x240] sm:$0xff] }
0x1eda   : > { %5247 = vmatprep.subr.bf16.mxu0 %v5600_v0  ;;  %v5266_v39 = vpack.c.bf16 %v4250_v36, %v4249_v38  ;;  %v4267_v38 = vld [vmem:[%s6844_s2 + $0x98] sm:$0xff] }
0x1edd   : > { %5249 = vmatpush3.bf16.msra.mxu0 %v5248_v40  ;;  %v4251_v40 = vld [vmem:[%s6843_s1 + $0x250] sm:$0xff] }
0x1ede   : > { %5250 = vmatprep.subr.bf16.mxu0 %v5600_v0  ;;  %v5269_v42 = vpack.c.bf16 %v4252_v41, %v4251_v40  ;;  %v4270_v40 = vld [vmem:[%s6845_s3 + $0x208] sm:$0xff] }
0x1ee1   : > { %5252 = vmatpush3.bf16.msra.mxu0 %v5251_v43 }
0x1ee2   : > { %5271 = vmatprep.subr.bf16.mxu0 %v5600_v0 }
0x1f97   : > { %v2948_v49 = vpop.f32.mrb[14].mxu0 }
0x1f98   : > { %v2949_v50 = vadd.f32 %v2948_v49, %v2878_v48  ;;  %v4879_v51 = vpop.f32.mrb[15].mxu0 }
0x1f9a   : > { %v2952_v52 = vadd.f32 %v2949_v50, %v6438_v56  ;;  %v4222_v56 = vld [vmem:[%s6844_s2 + $0x70] sm:$0xff] }
0x1f9b   : > { %v5227_v3 = vpack.c.bf16 %v4223_v2, %v4222_v56 }
0x1f9c   : > { %v2953_v47 = vsel %vm349_vm1, %v2952_v52, 0.0 }
0x1f9d   : > { %2954 = vadd.xlane.f32.xlu0 %v2953_v47  ;;  %5228 = vmatpush3.bf16.msra.mxu1 %v5227_v3 }
0x1f9e   : > { %5253 = vmatprep.subr.bf16.mxu1 %v5600_v0 }
0x202a   : > { %v2955_v53 = vpop.xlane.xlu0 %2954 }
0x202b   : > { %v2956_v54 = vmul.f32 0.03125, %v2955_v53 }
0x202d   : > { %v2957_v55 = vsub.f32 %v2952_v52, %v2956_v54 }
0x202f   : > { %v2958_v57 = vmul.f32 %v2957_v55, %v2957_v55 }
0x2031   : > { %v2959_v59 = vsel %vm349_vm1, %v2958_v57, 0.0 }
0x2032   : > { %2960 = vadd.xlane.f32.xlu1 %v2959_v59 }
0x20bf   : > { %v2961_v7 = vpop.xlane.xlu1 %2960 }
0x20c0   : > { %v2962_v9 = vmul.f32 0.03125, %v2961_v7 }
0x20c2   : > { %v2963_v11 = vadd.f32 1e-12, %v2962_v9 }
0x20c4   : > { %5419 = vrsqrt.f32 %v2963_v11  ;;  %v4241_v11 = vld [vmem:[%s6843_s1 + $0x200] sm:$0xff] }
0x20ce   : > { %v5420_v14 = vpop.eup %5419 }
0x20cf   : > { %v2965_v10 = vmul.f32 %v5420_v14, %v2957_v55  ;;  %v4243_v14 = vld [vmem:[%s6843_s1 + $0x210] sm:$0xff] }
0x20d1   : > { %v2970_v17 = vmul.f32 %v2969_v13, %v2965_v10  ;;  %v5254_v13 = vpack.c.bf16 %v4242_v8, %v4241_v11  ;;  %v4244_v10 = vld [vmem:[%s6843_s1 + $0x218] sm:$0xff] }
0x20d2   : > { %v4256_v11 = vld [vmem:[%s6843_s1 + $0x278] sm:$0xff] }
0x20d3   : > { %v2975_v18 = vadd.f32 %v2974_v15, %v2970_v17  ;;  %v5257_v15 = vpack.c.bf16 %v4244_v10, %v4243_v14 }
0x20d5   : > { %4889 = vmatmul.mubr.msk.f32.vlgmr.msra.gmra.mrb[44].mxu1 %vm349_vm1, %v2975_v18 }
0x20d6   : > { %4934 = vmatprep.mubr.msk.f32.mxu1 %vm5601_vm0, %v5602_v1  ;;  %5255 = vmatpush3.bf16.msra.mxu1 %v5254_v13 }
0x20d7   : > { %5256 = vmatprep.subr.bf16.mxu1 %v5600_v0 }
0x20da   : > { %5258 = vmatpush3.bf16.msra.mxu1 %v5257_v15 }
0x20db   : > { %5259 = vmatprep.subr.bf16.mxu1 %v5600_v0 }
0x21a8   : > { %v3054_v46 = vpop.f32.mrb[44].mxu1 }
0x21a9   : > { %v3055_v48 = vadd.f32 %v3054_v46, %v2984_v44  ;;  %v4890_v49 = vpop.f32.mrb[45].mxu1  ;;  %v6660_v46 = vld [vmem:[#allocation5 + $0x40] sm:$0xff] }
0x21aa   : > { %v3205_v49 = vrot.slane %v6660_v46, %v5877_v21 }
0x21ab   : > { %v3058_v50 = vmul.f32 %v3055_v48, %v3055_v48 }
0x21ad   : > { %v3059_v51 = vmul.f32 %v3058_v50, %v3055_v48 }
0x21af   : > { %v3060_v52 = vmul.f32 0.044715, %v3059_v51 }
0x21b1   : > { %v3061_v47 = vadd.f32 %v3060_v52, %v3055_v48 }
0x21b3   : > { %v3062_v53 = vmul.f32 0.7978846, %v3061_v47 }
0x21b5   : > { %5421 = vtanh.f32 %v3062_v53  ;;  %v3356_v53 = vrot.slane %v6660_v46, %v5914_v45 }
0x21bf   : > { %v5422_v54 = vpop.eup %5421 }
0x21c0   : > { %v3064_v55 = vadd.f32 1.0, %v5422_v54 }
0x21c2   : > { %v3065_v57 = vmul.f32 0.5, %v3064_v55 }
0x21c4   : > { %v3066_v59 = vmul.f32 %v3065_v57, %v3055_v48  ;;  %v3282_v48 = vrot.slane %v6660_v46, %v5872_v19 }
0x21c6   : > { %4924 = vmatmul.mubr.f32.vlgmr.msra.gmra.mrb[16].mxu0 %v3066_v59 }
0x21c7   : > { %4977 = vmatprep.mubr.msk.f32.mxu0 %vm5601_vm0, %v5602_v1 }
0x2299   : > { %v3154_v63 = vpop.f32.mrb[16].mxu0 }
0x229a   : > { %v3155_v60 = vadd.f32 %v3154_v63, %v3087_v62  ;;  %v4925_v56 = vpop.f32.mrb[17].mxu0 }
0x229c   : > { %v3158_v2 = vadd.f32 %v3155_v60, %v2975_v18 }
0x229e   : > { %v3159_v3 = vsel %vm349_vm1, %v3158_v2, 0.0 }
0x229f   : > { %3160 = vadd.xlane.f32.xlu0 %v3159_v3 }
0x232c   : > { %v3161_v4 = vpop.xlane.xlu0 %3160 }
0x232d   : > { %v3162_v5 = vmul.f32 0.03125, %v3161_v4 }
0x232f   : > { %v3163_v6 = vsub.f32 %v3158_v2, %v3162_v5 }
0x2331   : > { %v3164_v7 = vmul.f32 %v3163_v6, %v3163_v6 }
0x2333   : > { %v3165_v9 = vsel %vm349_vm1, %v3164_v7, 0.0  ;;  %v4255_v7 = vld [vmem:[%s6843_s1 + $0x270] sm:$0xff] }
0x2334   : > { %3166 = vadd.xlane.f32.xlu1 %v3165_v9  ;;  %v5275_v8 = vpack.c.bf16 %v4256_v11, %v4255_v7  ;;  %v4284_v7 = vld [vmem:[%s6845_s3 + $0x278] sm:$0xff]  ;;  %v3698_v11 = vrot.slane %v6660_v46, %v6031_v58 }
0x23c1   : > { %v3167_v17 = vpop.xlane.xlu1 %3166 }
0x23c2   : > { %v3168_v18 = vmul.f32 0.03125, %v3167_v17 }
0x23c4   : > { %v3169_v22 = vadd.f32 1e-12, %v3168_v18  ;;  %v3592_v18 = vrot.slane %v6660_v46, %v5940_v61  ;;  %v4265_v61 = vld [vmem:[%s6844_s2 + $0x88] sm:$0xff] }
0x23c5   : > { %v5278_v35 = vpack.c.bf16 %v4265_v61, %v4264_v33 }
0x23c6   : > { %5423 = vrsqrt.f32 %v3169_v22 }
0x23d0   : > { %v5424_v26 = vpop.eup %5423 }
0x23d1   : > { %v3171_v16 = vmul.f32 %v5424_v26, %v3163_v6  ;;  %v4253_v6 = vld [vmem:[%s6843_s1 + $0x260] sm:$0xff] }
0x23d2   : > { %v5272_v9 = vpack.c.bf16 %v4254_v34, %v4253_v6  ;;  %v4283_v34 = vld [vmem:[%s6845_s3 + $0x270] sm:$0xff] }
0x23d3   : > { %v3176_v30 = vmul.f32 %v3175_v25, %v3171_v16 }
0x23d4   : > { %5273 = vmatpush3.bf16.msra.mxu0 %v5272_v9  ;;  %v5305_v9 = vpack.c.bf16 %v4284_v7, %v4283_v34 }
0x23d5   : > { %v6624_v32 = vadd.f32 %v3180_v20, %v3176_v30  ;;  %5274 = vmatprep.subr.bf16.mxu0 %v5600_v0 }
0x23d7   : > { %4935 = vmatmul.mubr.msk.f32.vlgmr.msra.gmra.mrb[46].mxu1 %vm349_vm1, %v6624_v32 }
0x23d8   : > { %5261 = vmatpush3.bf16.msra.mxu1 %v5260_v31  ;;  %4945 = vmatprep.mubr.msk.f32.mxu1 %vm5601_vm0, %v5602_v1 }
0x23d9   : > { %5262 = vmatprep.subr.bf16.mxu1 %v5600_v0  ;;  %5276 = vmatpush3.bf16.msra.mxu0 %v5275_v8 }
0x23da   : > { %5283 = vmatprep.subr.bf16.mxu0 %v5600_v0 }
0x23dc   : > { %5264 = vmatpush3.bf16.msra.mxu1 %v5263_v37  ;;  %v4266_v37 = vld [vmem:[%s6844_s2 + $0x90] sm:$0xff] }
0x23dd   : > { %5265 = vmatprep.subr.bf16.mxu1 %v5600_v0  ;;  %v5281_v36 = vpack.c.bf16 %v4267_v38, %v4266_v37 }
0x23df   : > { %4946 = vmatmul.mubr.msk.f32.vlgmr.msra.gmra.mrb[48].mxu1 %vm349_vm1, %v6624_v32 }
0x23e0   : > { %5267 = vmatpush3.bf16.msra.mxu1 %v5266_v39  ;;  %4956 = vmatprep.mubr.msk.f32.mxu1 %vm5601_vm0, %v5602_v1  ;;  %v4269_v39 = vld [vmem:[%s6845_s3 + $0x200] sm:$0xff] }
0x23e1   : > { %5268 = vmatprep.subr.bf16.mxu1 %v5600_v0  ;;  %v5284_v41 = vpack.c.bf16 %v4270_v40, %v4269_v39  ;;  %v3901_v39 = vld [vmem:[#allocation7 + $0x8] sm:$0xff] }
0x23e4   : > { %5270 = vmatpush3.bf16.msra.mxu1 %v5269_v42 }
0x23e5   : > { %4959 = vmatprep.subr.mxu1 %v5602_v1 }
0x23e7   : > { %4957 = vmatmul.mubr.msk.f32.vlgmr.msra.gmra.mrb[50].mxu1 %vm349_vm1, %v6624_v32 }
0x23e8   : > { %4961 = vmatprep.mubr.msk.f32.mxu1 %vm5601_vm0, %v5602_v1 }
0x24aa   : > { %v3275_v43 = vpop.f32.mrb[46].mxu1 }
0x24ab   : > { %v4936_v44 = vpop.f32.mrb[47].mxu1  ;;  %v3276_v47 = vadd.f32 %v3275_v43, %v3205_v49 }
0x24b2   : > { %v3349_v50 = vpop.f32.mrb[48].mxu1 }
0x24b3   : > { %v3350_v51 = vadd.f32 %v3349_v50, %v3282_v48  ;;  %v4947_v52 = vpop.f32.mrb[49].mxu1  ;;  %v3683_v48 = vrot.slane %v6660_v46, %v5969_v27  ;;  %v4272_v27 = vld [vmem:[%s6845_s3 + $0x218] sm:$0xff] }
0x24b5   : > { %4960 = vmatpush3.xpose.msk.msra.mxu1 %vm349_vm1, %v3350_v51  ;;  %v3688_v51 = vrot.slane %v6660_v46, %v5972_v28  ;;  %v4273_v28 = vld [vmem:[%s6845_s3 + $0x220] sm:$0xff] }
0x24b6   : > { %4964 = vmatprep.subr.mxu1 %v5602_v1 }
0x24b8   : > { %4962 = vmatmul.mubr.msk.f32.vlgmr.msra.gmra.mrb[52].mxu1 %vm349_vm1, %v3276_v47 }
0x24b9   : > { %4966 = vmatprep.mubr.msk.f32.mxu1 %vm5601_vm0, %v5602_v1 }
0x24ba   : > { %v3423_v54 = vpop.f32.mrb[50].mxu1 }
0x24bb   : > { %v3424_v55 = vadd.f32 %v3423_v54, %v3356_v53  ;;  %v4958_v57 = vpop.f32.mrb[51].mxu1  ;;  %v4271_v53 = vld [vmem:[%s6845_s3 + $0x210] sm:$0xff] }
0x24bc   : > { %v5287_v54 = vpack.c.bf16 %v4272_v27, %v4271_v53  ;;  %v4275_v57 = vld [vmem:[%s6845_s3 + $0x230] sm:$0xff] }
0x24bd   : > { %4965 = vmatpush3.msra.mxu1 %v3424_v55 }
0x24be   : > { %5277 = vmatprep.subr.bf16.mxu1 %v5600_v0 }
0x258b   : > { %v3499_v59 = vpop.f32.mrb[52].mxu1 }
0x258c   : > { %v3503_v62 = vmul.f32 0.17677669, %v3499_v59  ;;  %v4963_v63 = vpop.f32.mrb[53].mxu1  ;;  %v4276_v59 = vld [vmem:[%s6845_s3 + $0x238] sm:$0xff] }
0x258d   : > { %v4277_v63 = vld [vmem:[%s6845_s3 + $0x240] sm:$0xff] }
0x258e   : > { %v3504_v60 = vsel %vm326_vm2, %v3503_v62, -1e+09  ;;  %v5293_v62 = vpack.c.bf16 %v4276_v59, %v4275_v57 }
0x258f   : > { %v3505_v56 = vsel %vm649_vm3, %v3504_v60, -inf }
0x2590   : > { %3506 = vmax.xlane.f32.xlu0 %v3505_v56 }
0x261d   : > { %v3507_v45 = vpop.xlane.xlu0 %3506 }
0x261e   : > { %v3508_v2 = vsub.f32 %v3504_v60, %v3507_v45  ;;  %v4278_v60 = vld [vmem:[%s6845_s3 + $0x248] sm:$0xff]  ;;  %v4279_v45 = vld [vmem:[%s6845_s3 + $0x250] sm:$0xff] }
0x261f   : > { %v5296_v56 = vpack.c.bf16 %v4278_v60, %v4277_v63 }
0x2620   : > { %v3509_v3 = vmul.f32 1.442695, %v3508_v2  ;;  %v4280_v2 = vld [vmem:[%s6845_s3 + $0x258] sm:$0xff] }
0x2622   : > { %5425 = vpow2.f32 %v3509_v3  ;;  %v5299_v3 = vpack.c.bf16 %v4280_v2, %v4279_v45 }
0x262c   : > { %v5426_v4 = vpop.eup %5425 }
0x262d   : > { %v3511_v5 = vsel %vm649_vm3, %v5426_v4, 0.0 }
0x262e   : > { %3512 = vadd.xlane.f32.xlu1 %v3511_v5  ;;  %v4282_v5 = vld [vmem:[%s6845_s3 + $0x268] sm:$0xff] }
0x26bb   : > { %v3513_v13 = vpop.xlane.xlu1 %3512 }
0x26bc   : > { %5427 = vrcp.f32 %v3513_v13 }
0x26c6   : > { %v5428_v14 = vpop.eup %5427 }
0x26c7   : > { %v3515_v10 = vmul.f32 %v5428_v14, %v5426_v4  ;;  %v4281_v4 = vld [vmem:[%s6845_s3 + $0x260] sm:$0xff] }
0x26c8   : > { %v5302_v6 = vpack.c.bf16 %v4282_v5, %v4281_v4 }
0x26c9   : > { %4967 = vmatmul.mubr.msk.f32.vlgmr.msra.gmra.mrb[54].mxu1 %vm649_vm3, %v3515_v10 }
0x26ca   : > { %4988 = vmatprep.mubr.msk.f32.mxu1 %vm5601_vm0, %v5602_v1  ;;  %5279 = vmatpush3.bf16.msra.mxu1 %v5278_v35 }
0x26cb   : > { %5280 = vmatprep.subr.bf16.mxu1 %v5600_v0 }
0x26ce   : > { %5282 = vmatpush3.bf16.msra.mxu1 %v5281_v36  ;;  %v3900_v36 = vld [vmem:[#allocation7] sm:$0xff] }
0x26cf   : > { %5307 = vmatprep.subr.bf16.mxu1 %v5600_v0  ;;  %v5308_v40 = vpack.c.bf16 %v3901_v39, %v3900_v36 }
0x279c   : > { %v3585_v15 = vpop.f32.mrb[54].mxu1 }
0x279d   : > { %v4968_v17 = vpop.f32.mrb[55].mxu1  ;;  %4978 = vmatmul.mubr.msk.f32.vlgmr.msra.gmra.mrb[18].mxu0 %vm349_vm1, %v3585_v15 }
0x279e   : > { %5023 = vmatprep.mubr.msk.f32.mxu0 %vm5601_vm0, %v5602_v1  ;;  %5285 = vmatpush3.bf16.msra.mxu0 %v5284_v41  ;;  %v3902_v41 = vld [vmem:[#allocation7 + $0x10] sm:$0xff] }
0x279f   : > { %5286 = vmatprep.subr.bf16.mxu0 %v5600_v0 }
0x27a2   : > { %5288 = vmatpush3.bf16.msra.mxu0 %v5287_v54  ;;  %v4285_v54 = vld [vmem:[%s6848_s6] ss:$0 sm:$0xff] }
0x27a3   : > { %5289 = vmatprep.subr.bf16.mxu0 %v5600_v0 }
0x2870   : > { %v3662_v22 = vpop.f32.mrb[18].mxu0 }
0x2871   : > { %v3663_v24 = vadd.f32 %v3662_v22, %v3592_v18  ;;  %v4979_v25 = vpop.f32.mrb[19].mxu0 }
0x2873   : > { %v3666_v26 = vadd.f32 %v3663_v24, %v6624_v32 }
0x2875   : > { %v3667_v16 = vsel %vm349_vm1, %v3666_v26, 0.0 }
0x2876   : > { %3668 = vadd.xlane.f32.xlu0 %v3667_v16 }
0x2903   : > { %v3669_v20 = vpop.xlane.xlu0 %3668 }
0x2904   : > { %v3670_v23 = vmul.f32 0.03125, %v3669_v20  ;;  %v3801_v20 = vrot.slane %v6660_v46, %v6038_v12  ;;  %v3903_v12 = vld [vmem:[#allocation7 + $0x18] sm:$0xff] }
0x2905   : > { %v5311_v46 = vpack.c.bf16 %v3903_v12, %v3902_v41 }
0x2906   : > { %v3671_v29 = vsub.f32 %v3666_v26, %v3670_v23 }
0x2908   : > { %v3672_v30 = vmul.f32 %v3671_v29, %v3671_v29 }
0x290a   : > { %v3673_v31 = vsel %vm349_vm1, %v3672_v30, 0.0 }
0x290b   : > { %3674 = vadd.xlane.f32.xlu1 %v3673_v31 }
0x2998   : > { %v3675_v42 = vpop.xlane.xlu1 %3674 }
0x2999   : > { %v3676_v43 = vmul.f32 0.03125, %v3675_v42 }
0x299b   : > { %v3677_v44 = vadd.f32 1e-12, %v3676_v43 }
0x299d   : > { %5429 = vrsqrt.f32 %v3677_v44 }
0x29a7   : > { %v5430_v49 = vpop.eup %5429 }
0x29a8   : > { %v3679_v50 = vmul.f32 %v5430_v49, %v3671_v29 }
0x29aa   : > { %v3684_v52 = vmul.f32 %v3683_v48, %v3679_v50  ;;  %v3201_v48 = vld [vmem:[#allocation5 + $0x48] sm:$0x3] }
0x29ab   : > { %v3889_v49 = vrot.slane %v3201_v48, %v5877_v21 }
0x29ac   : > { %v3689_v47 = vadd.f32 %v3688_v51, %v3684_v52  ;;  %v3894_v52 = vrot.slane %v3201_v48, %v5872_v19 }
0x29ae   : > { %4989 = vmatmul.mubr.msk.f32.vlgmr.msra.gmra.mrb[56].mxu1 %vm349_vm1, %v3689_v47 }
0x29af   : > { %5034 = vmatprep.mubr.msk.f32.mxu1 %vm5601_vm0, %v5602_v1  ;;  %v4274_v1 = vld [vmem:[%s6845_s3 + $0x228] sm:$0xff]  ;;  %5309 = vmatpush3.bf16.msra.mxu1 %v5308_v40 }
0x29b0   : > { %v5290_v55 = vpack.c.bf16 %v4274_v1, %v4273_v28  ;;  %5310 = vmatprep.subr.bf16.mxu1 %v5600_v0 }
0x29b2   : > { %5291 = vmatpush3.bf16.msra.mxu0 %v5290_v55 }
0x29b3   : > { %5292 = vmatprep.subr.bf16.mxu0 %v5600_v0  ;;  %5312 = vmatpush3.bf16.msra.mxu1 %v5311_v46 }
0x29b6   : > { %5294 = vmatpush3.bf16.msra.mxu0 %v5293_v62 }
0x29b7   : > { %5295 = vmatprep.subr.bf16.mxu0 %v5600_v0 }
0x29ba   : > { %5297 = vmatpush3.bf16.msra.mxu0 %v5296_v56 }
0x29bb   : > { %5298 = vmatprep.subr.bf16.mxu0 %v5600_v0 }
0x29be   : > { %5300 = vmatpush3.bf16.msra.mxu0 %v5299_v3 }
0x29bf   : > { %5301 = vmatprep.subr.bf16.mxu0 %v5600_v0 }
0x29c2   : > { %5303 = vmatpush3.bf16.msra.mxu0 %v5302_v6 }
0x29c3   : > { %5304 = vmatprep.subr.bf16.mxu0 %v5600_v0  ;;  %v3896_v0 = vrot.slane %v6624_v32, 7 }
0x29c6   : > { %5306 = vmatpush3.bf16.msra.mxu0 %v5305_v9 }
0x2a81   : > { %v3768_v8 = vpop.f32.mrb[56].mxu1 }
0x2a82   : > { %v3769_v13 = vadd.f32 %v3768_v8, %v3698_v11  ;;  %v4990_v14 = vpop.f32.mrb[57].mxu1 }
0x2a84   : > { %v3772_v10 = vmul.f32 %v3769_v13, %v3769_v13 }
0x2a86   : > { %v3773_v15 = vmul.f32 %v3772_v10, %v3769_v13 }
0x2a88   : > { %v3774_v17 = vmul.f32 0.044715, %v3773_v15 }
0x2a8a   : > { %v3775_v18 = vadd.f32 %v3774_v17, %v3769_v13 }
0x2a8c   : > { %v3776_v22 = vmul.f32 0.7978846, %v3775_v18 }
0x2a8e   : > { %5431 = vtanh.f32 %v3776_v22 }
0x2a98   : > { %v5432_v24 = vpop.eup %5431 }
0x2a99   : > { %v3778_v25 = vadd.f32 1.0, %v5432_v24 }
0x2a9b   : > { %v3779_v26 = vmul.f32 0.5, %v3778_v25 }
0x2a9d   : > { %v3780_v16 = vmul.f32 %v3779_v26, %v3769_v13 }
0x2a9f   : > { %5024 = vmatmul.mubr.f32.vlgmr.msra.gmra.mrb[20].mxu0 %v3780_v16 }
0x2b72   : > { %v3868_v23 = vpop.f32.mrb[20].mxu0 }
0x2b73   : > { %v3869_v29 = vadd.f32 %v3868_v23, %v3801_v20  ;;  %v5025_v58 = vpop.f32.mrb[21].mxu0 }
0x2b75   : > { %v3872_v30 = vadd.f32 %v3869_v29, %v3689_v47 }
0x2b77   : > { %v3873_v31 = vsel %vm349_vm1, %v3872_v30, 0.0 }
0x2b78   : > { %3874 = vadd.xlane.f32.xlu0 %v3873_v31 }
0x2c05   : > { %v3875_v33 = vpop.xlane.xlu0 %3874 }
0x2c06   : > { %v3876_v61 = vmul.f32 0.03125, %v3875_v33 }
0x2c08   : > { %v3877_v35 = vsub.f32 %v3872_v30, %v3876_v61 }
0x2c0a   : > { %v3878_v37 = vmul.f32 %v3877_v35, %v3877_v35 }
0x2c0c   : > { %v3879_v38 = vsel %vm349_vm1, %v3878_v37, 0.0 }
0x2c0d   : > { %3880 = vadd.xlane.f32.xlu1 %v3879_v38 }
0x2c9a   : > { %v3881_v42 = vpop.xlane.xlu1 %3880 }
0x2c9b   : > { %v3882_v43 = vmul.f32 0.03125, %v3881_v42 }
0x2c9d   : > { %v3883_v44 = vadd.f32 1e-12, %v3882_v43 }
0x2c9f   : > { %5433 = vrsqrt.f32 %v3883_v44 }
0x2ca9   : > { %v5434_v50 = vpop.eup %5433 }
0x2caa   : > { %v3885_v51 = vmul.f32 %v5434_v50, %v3877_v35 }
0x2cac   : > { %v3890_v47 = vmul.f32 %v3889_v49, %v3885_v51 }
0x2cae   : > { %v3895_v53 = vadd.f32 %v3894_v52, %v3890_v47 }
0x2cb0   : > { %v3899_v27 = vsel %vm3898_vm4, %v3895_v53, %v3896_v0 }
0x2cb1   : > { %5035 = vmatmul.mubr.msk.f32.vlgmr.msra.gmra.mrb[58].mxu1 %vm349_vm1, %v3899_v27 }
0x2d84   : > { %v3980_v21 = vpop.f32.mrb[58].mxu1 }
0x2d85   : > { %v3981_v28 = vadd.f32 %v4285_v54, %v3980_v21  ;;  %v5036_v1 = vpop.f32.mrb[59].mxu1 }
0x2d87   : > { %5435 = vtanh.f32 %v3981_v28 }
0x2d91   : > { %v5436_v19 = vpop.eup %5435 }
0x2d92   : > { %3985 = vst [vmem:[%s322_s9] sm:$0x3] %v5436_v19 }
0x2d93   : > { %5536 = shalt.err (!%p5533_p2)
}
0x2d94   : > { %s5537_s12 = scalar_lea.hbm %s6798_s22, 32  ;;  %s5541_s23 = scalar_lea.hbm %s6849_s7, 64 }
0x2d95   : > { %p5538_p13 = scmp.ne.s32.totalorder %s6798_s22, %s5537_s12  ;;  %p5542_p4 = scmp.lt.u32.totalorder %s6798_s22, %s6849_s7 }
0x2d96   : > { %p5543_p5 = scmp.lt.u32.totalorder %s5541_s23, %s5537_s12  ;;  %p5545_p8 = scmp.lt.u32.totalorder %s5537_s12, %s6798_s22 }
0x2d97   : > { %p5539_p6 = pnand %p5538_p13, %p6863_p0 }
0x2d98   : > { %p5544_p11 = por %p5543_p5, %p5542_p4 }
0x2d99   : > { %p5540_p10 = pneg %p5539_p6 }
0x2d9a   : > { %p5546_p1 = por %p5545_p8, %p5544_p11 }
0x2d9c   : > { %p5547_p3 = pnand %p5546_p1, %p5540_p10 }
0x2d9e   : > { %5550 = shalt.err (!%p5547_p3)
}
0x2d9f   : > { %5323 = dma.vmem_to_hbm [thread:$0]  (%p6863_p0), %s6800_s20, 32, %s6798_s22, %s3987_s10  }
0x2da0 PF: > { %s4012_s11 = sand.u32 1, %s5581_s24   ;;  %p6864_p7 = scmp.ne.s32.totalorder %s6854_s8, 0 }
0x2da1   : > { %p6865_p9 = scmp.ge.s32.totalorder %s5593_s27, 2  ;;  %s4013_s29 = scalar_lea.sflag [#allocation4], %s4012_s11 }
0x2da3   : > { %p5337_p12 = pnand %p6865_p9, %p6864_p7 }
0x2da5   : > { %5576 = dma.done.wait (!%p5337_p12), %s4013_s29, 32  }
0x2da6   : > { %5578 = vsyncadd (!%p5337_p12), %s4013_s29, 4294967264  ;;  %p21_p2 = scmp.ge.s32.totalorder %s5754_s13, 4   ;;  %s6866_s24 = smov %s5585_s25 }
0x2da7   : > { %s6867_s25 = smov %s5589_s26  ;;  %s6868_s26 = smov %s5770_s17 }
0x2da8   : > { %s6869_s27 = smov %s5754_s13  ;;  %23 = sbr.rel (!%p21_p2) target bundleno = 6 (0x6), region = 117 }
0x2daf   :  { %4018 = vsyncpa [#allocation3], 1 }
0x2db0   :  { %4020 = vsyncpa [#allocation3 + $0x1], 1 }
0x2db1   :  { %4021 = vsyncpa [#allocation6], 1 }
0x2db2   :  { %4022 = vsyncpa [#allocation4], 1 }
0x2db3   :  { %4024 = vsyncpa [#allocation4 + $0x1], 1 }

</bundles_post_ra>
